<compile_context>
chip_gen: v6e
topology: v6e:2x2x1
jax: 0.10.0
libtpu: 0.0.40
codegen_flags: <defaults>
</compile_context>

<pallas_src>
import jax
import jax.numpy as jnp
from jax import lax
from jax.experimental import pallas as pl
from jax.experimental.pallas import tpu as pltpu


# ---------------------------------------------------------------------------
# Kernel
# ---------------------------------------------------------------------------
def weighted_mlp_kernel(
    x_ref,                  # packed cat([u,i,a],1) tile: (TB, 3E) f32
    wg_ref, bg_ref,         # gate: (3E, 3) bf16, (1, 3) f32
    w0_ref, b0_ref,         # stacked first layer: (3E, Hp) bf16, (1, Hp) f32
    w1_ref, b1_ref,         # hidden layer 1: (Hp, Hp) bf16, (1, Hp) f32
    w2_ref, b2_ref,         # hidden layer 2: (Hp, Hp) bf16, (1, Hp) f32
    wl_ref, bl_ref,         # last layer: (Hp, 8) bf16 (col 0 real), (1, 1) f32
    out_ref,                # output tile: (TB, 1) f32
):
    f32, bf16 = jnp.float32, jnp.bfloat16
    E = x_ref.shape[-1] // 3

    x = x_ref[...]                                               # (TB, 3E) f32

    # Gate logits: single K=3E, N=3 dot (bf16 MXU operands, f32 accumulation).
    z = jnp.dot(x.astype(bf16), wg_ref[...],
                preferred_element_type=f32) + bg_ref[...]        # (TB, 3) f32
    g = jnp.where(z >= 0, z, 0.01 * z)                           # LeakyReLU, VPU

    # Lane-expand the gate over the three packed E-wide groups and fold the
    # 3-way weighted sum into the stacked first-layer matmul.
    lane = lax.broadcasted_iota(jnp.int32, x.shape, 1)
    ge = jnp.where(lane < E, g[:, 0:1],
                   jnp.where(lane < 2 * E, g[:, 1:2], g[:, 2:3]))  # (TB, 3E)
    weighted = (x * ge).astype(bf16)                              # f32 mul, bf16 cast

    # Trunk: bf16 MXU operands, f32 accumulation, f32 bias adds (kept f32 on
    # the VPU so the same kernel is v5e-safe).
    h = jnp.dot(weighted, w0_ref[...], preferred_element_type=f32) + b0_ref[...]
    h = jnp.dot(h.astype(bf16), w1_ref[...], preferred_element_type=f32) + b1_ref[...]
    h = jnp.dot(h.astype(bf16), w2_ref[...], preferred_element_type=f32) + b2_ref[...]

    # Last layer in natural orientation: (TB, Hp) @ (Hp, 8) -> (TB, 8).
    # Column 0 of wl_ref is Wl; columns 1..7 are zero padding.  No transpose.
    r = jnp.dot(h.astype(bf16), wl_ref[...], preferred_element_type=f32)
    out_ref[...] = r[:, 0:1] + bl_ref[...]                       # (TB, 1) f32


# ---------------------------------------------------------------------------
# Parameters
# ---------------------------------------------------------------------------
def init_params(key, emsize, hidden_size):
    """Deterministic f32 init mimicking WeightedMLP.init_weights().
    Weights are stored already transposed: (in, out)."""
    initrange = 0.1
    ks = jax.random.split(key, 5)
    uni = lambda k, shape: jax.random.uniform(
        k, shape, jnp.float32, minval=-initrange, maxval=initrange)
    return {
        "wg": uni(ks[0], (3 * emsize, 3)),
        "bg": jnp.zeros((1, 3), jnp.float32),
        "w0": uni(ks[1], (emsize, hidden_size)),
        "b0": jnp.zeros((1, hidden_size), jnp.float32),
        "w1": uni(ks[2], (hidden_size, hidden_size)),
        "b1": jnp.zeros((1, hidden_size), jnp.float32),
        "w2": uni(ks[3], (hidden_size, hidden_size)),
        "b2": jnp.zeros((1, hidden_size), jnp.float32),
        "wl": uni(ks[4], (hidden_size, 1)),
        "bl": jnp.zeros((1, 1), jnp.float32),
    }


def prepare_kernel_params(params):
    """One-time prep: zero-pad hidden to a multiple of 128, stack W0 three
    times (folds the gate-weighted sum into the first matmul), store the last
    layer as (Hp, 8) with only column 0 live, cast matmul weights to bf16
    (biases stay f32).  All padding is exactly zero, which the kernel relies
    on for bit-for-bit equivalence with the unpadded math."""
    E = params["w0"].shape[0]
    H = params["w0"].shape[1]
    Hp = ((H + 127) // 128) * 128

    pad_cols = lambda w: jnp.pad(w, ((0, 0), (0, Hp - w.shape[1])))
    pad_rows = lambda w: jnp.pad(w, ((0, Hp - w.shape[0]), (0, 0)))

    w0_stacked = jnp.concatenate([params["w0"]] * 3, axis=0)      # (3E, H)
    wl_pad = jnp.pad(params["wl"], ((0, Hp - H), (0, 7)))          # (Hp, 8)

    return {
        "E": E,
        "Hp": Hp,
        "wg": params["wg"].astype(jnp.bfloat16),                   # (3E, 3)
        "bg": params["bg"],                                        # (1, 3) f32
        "w0": pad_cols(w0_stacked).astype(jnp.bfloat16),           # (3E, Hp)
        "b0": pad_cols(params["b0"]),                              # (1, Hp) f32
        "w1": pad_rows(pad_cols(params["w1"])).astype(jnp.bfloat16),
        "b1": pad_cols(params["b1"]),
        "w2": pad_rows(pad_cols(params["w2"])).astype(jnp.bfloat16),
        "b2": pad_cols(params["b2"]),
        "wl": wl_pad.astype(jnp.bfloat16),                         # (Hp, 8)
        "bl": params["bl"],                                        # (1, 1) f32
    }


# ---------------------------------------------------------------------------
# Wrapper
# ---------------------------------------------------------------------------
def _choose_batch_tile(B, block_b):
    """Batch tile: divides B, <= block_b, multiple of 128 (or 8) if possible,
    preferring an even grid >= 2 so the "parallel" batch axis can be split
    across both TensorCores on v7x."""
    limit = min(block_b, B)
    for step in (128, 8):
        cands = [t for t in range(step, limit + 1, step) if B % t == 0]
        if not cands:
            continue
        even = [t for t in cands if (B // t) % 2 == 0]
        if even:
            return max(even)
        multi = [t for t in cands if B // t >= 2]
        if multi:
            return max(multi)
        return max(cands)
    return B  # tiny / odd batch: single full-array block (always legal)


def weighted_mlp_forward(user, item, aspect, kparams, block_b=2048):
    B, E = user.shape
    assert E == kparams["E"]
    Hp = kparams["Hp"]

    tb = _choose_batch_tile(B, block_b)
    assert B % tb == 0
    grid = (B // tb,)

    # Pack once in f32 (single fused XLA concat, negligible vs ~1 MFLOP/row);
    # the kernel casts matmul operands to bf16 internally.
    x = jnp.concatenate([user, item, aspect], axis=1)              # (B, 3E) f32

    x_spec = pl.BlockSpec((tb, 3 * E), lambda b: (b, 0))
    # Full-array block + constant index map -> stays resident in VMEM.
    resident = lambda shape: pl.BlockSpec(shape, lambda b: (0, 0))

    in_specs = [
        x_spec,
        resident((3 * E, 3)), resident((1, 3)),
        resident((3 * E, Hp)), resident((1, Hp)),
        resident((Hp, Hp)), resident((1, Hp)),
        resident((Hp, Hp)), resident((1, Hp)),
        resident((Hp, 8)), resident((1, 1)),
    ]
    out_spec = pl.BlockSpec((tb, 1), lambda b: (b, 0))

    # VMEM budget: resident params (x2 for default double-buffering) +
    # double-buffered IO tiles + generous headroom for (tb, Hp) intermediates.
    param_keys = ("wg", "bg", "w0", "b0", "w1", "b1", "w2", "b2", "wl", "bl")
    param_bytes = sum(int(kparams[k].size) * kparams[k].dtype.itemsize
                      for k in param_keys)
    vmem_limit = int(2 * param_bytes
                     + 2 * (tb * 3 * E * 4 + tb * 4)
                     + 16 * tb * Hp
                     + (4 << 20))
    vmem_limit = max(vmem_limit, 16 << 20)

    out = pl.pallas_call(
        weighted_mlp_kernel,
        out_shape=jax.ShapeDtypeStruct((B, 1), jnp.float32),
        grid_spec=pltpu.PrefetchScalarGridSpec(
            num_scalar_prefetch=0,
            grid=grid,
            in_specs=in_specs,
            out_specs=out_spec,
        ),
        compiler_params=pltpu.CompilerParams(
            dimension_semantics=("parallel",),        # megacore split on v7x
            vmem_limit_bytes=vmem_limit,
        ),
    )(x,
      kparams["wg"], kparams["bg"],
      kparams["w0"], kparams["b0"],
      kparams["w1"], kparams["b1"],
      kparams["w2"], kparams["b2"],
      kparams["wl"], kparams["bl"])

    # torch.squeeze on (B, 1) -> (B,)
    return out[:, 0]


# ---------------------------------------------------------------------------
# Pure-JAX f32 reference (unpadded logical params)
# ---------------------------------------------------------------------------
def reference_forward(user, item, aspect, params):
    cat = jnp.concatenate([user, item, aspect], axis=1)
    z = cat @ params["wg"] + params["bg"]
    w = jnp.where(z >= 0, z, 0.01 * z)
    weighted = w[:, 0:1] * user + w[:, 1:2] * item + w[:, 2:3] * aspect
    h = weighted @ params["w0"] + params["b0"]
    h = h @ params["w1"] + params["b1"]
    h = h @ params["w2"] + params["b2"]
    rating = h @ params["wl"] + params["bl"]
    return jnp.squeeze(rating, axis=-1)


if __name__ == "__main__":
    # hidden=400 is the module default and exercises the pad-to-512 path;
    # B=512 gives an even grid of 2 (tb=256) so both v7x cores get work.
    B, EMSIZE, HIDDEN = 512, 32, 400

    key = jax.random.PRNGKey(0)
    k_u, k_i, k_a, k_p = jax.random.split(key, 4)
    user = jax.random.normal(k_u, (B, EMSIZE), jnp.float32)
    item = jax.random.normal(k_i, (B, EMSIZE), jnp.float32)
    aspect = jax.random.normal(k_a, (B, EMSIZE), jnp.float32)

    params = init_params(k_p, EMSIZE, HIDDEN)
    kparams = prepare_kernel_params(params)

    rating = weighted_mlp_forward(user, item, aspect, kparams)
    jax.block_until_ready(rating)

    ref = reference_forward(user, item, aspect, params)
    assert rating.shape == (B,)
    # bf16 matmul weights with f32 accumulation -> loosened tolerance vs f32 ref
    max_err = float(jnp.max(jnp.abs(rating - ref)))
    assert jnp.allclose(rating, ref, atol=3e-2, rtol=3e-2), max_err

    print("KERNEL_OK")
</pallas_src>

<mosaic_0001>
module attributes {stable_mosaic.version = 11 : i64} {
  func.func @weighted_mlp_kernel(%arg0: i32, %arg1: memref<256x96xf32, #tpu.memory_space<vmem>>, %arg2: memref<96x3xbf16, #tpu.memory_space<vmem>>, %arg3: memref<1x3xf32, #tpu.memory_space<vmem>>, %arg4: memref<96x512xbf16, #tpu.memory_space<vmem>>, %arg5: memref<1x512xf32, #tpu.memory_space<vmem>>, %arg6: memref<512x512xbf16, #tpu.memory_space<vmem>>, %arg7: memref<1x512xf32, #tpu.memory_space<vmem>>, %arg8: memref<512x512xbf16, #tpu.memory_space<vmem>>, %arg9: memref<1x512xf32, #tpu.memory_space<vmem>>, %arg10: memref<512x8xbf16, #tpu.memory_space<vmem>>, %arg11: memref<1x1xf32, #tpu.memory_space<vmem>>, %arg12: memref<256x1xf32, #tpu.memory_space<vmem>>) attributes {dimension_semantics = [#tpu.dimension_semantics<parallel>], iteration_bounds = array<i64: 2>, scalar_prefetch = 0 : i64, scratch_operands = 0 : i64, tpu.core_type = #tpu.core_type<tc>, window_params = [{transform_indices = @transform_0, window_bounds = array<i64: 256, 96>}, {pipeline_mode = #tpu.pipeline_mode<synchronous>, transform_indices = @transform_1, window_bounds = array<i64: 96, 3>}, {pipeline_mode = #tpu.pipeline_mode<synchronous>, transform_indices = @transform_2, window_bounds = array<i64: 1, 3>}, {pipeline_mode = #tpu.pipeline_mode<synchronous>, transform_indices = @transform_3, window_bounds = array<i64: 96, 512>}, {pipeline_mode = #tpu.pipeline_mode<synchronous>, transform_indices = @transform_4, window_bounds = array<i64: 1, 512>}, {pipeline_mode = #tpu.pipeline_mode<synchronous>, transform_indices = @transform_5, window_bounds = array<i64: 512, 512>}, {pipeline_mode = #tpu.pipeline_mode<synchronous>, transform_indices = @transform_6, window_bounds = array<i64: 1, 512>}, {pipeline_mode = #tpu.pipeline_mode<synchronous>, transform_indices = @transform_7, window_bounds = array<i64: 512, 512>}, {pipeline_mode = #tpu.pipeline_mode<synchronous>, transform_indices = @transform_8, window_bounds = array<i64: 1, 512>}, {pipeline_mode = #tpu.pipeline_mode<synchronous>, transform_indices = @transform_9, window_bounds = array<i64: 512, 8>}, {pipeline_mode = #tpu.pipeline_mode<synchronous>, transform_indices = @transform_10, window_bounds = array<i64: 1, 1>}, {transform_indices = @transform_11, window_bounds = array<i64: 256, 1>}]} {
    %c0 = arith.constant 0 : index
    %c0_0 = arith.constant 0 : index
    %0 = vector.load %arg1[%c0, %c0_0] : memref<256x96xf32, #tpu.memory_space<vmem>>, vector<256x96xf32>
    %1 = arith.truncf %0 : vector<256x96xf32> to vector<256x96xbf16>
    %c0_1 = arith.constant 0 : index
    %c0_2 = arith.constant 0 : index
    %2 = vector.load %arg2[%c0_1, %c0_2] : memref<96x3xbf16, #tpu.memory_space<vmem>>, vector<96x3xbf16>
    %cst = arith.constant dense<0.000000e+00> : vector<256x3xf32>
    %3 = tpu.matmul %1, %2, %cst {dimension_numbers = #tpu.dot_dimension_numbers<[1], [0], [0], [1], [0, 0, 1, 1], [], []>} : vector<256x96xbf16>, vector<96x3xbf16>, vector<256x3xf32> -> vector<256x3xf32>
    %c0_3 = arith.constant 0 : index
    %c0_4 = arith.constant 0 : index
    %4 = vector.load %arg3[%c0_3, %c0_4] : memref<1x3xf32, #tpu.memory_space<vmem>>, vector<1x3xf32>
    %5 = vector.broadcast %4 : vector<1x3xf32> to vector<256x3xf32>
    %6 = arith.addf %3, %5 : vector<256x3xf32>
    %cst_5 = arith.constant 0.000000e+00 : f32
    %7 = vector.broadcast %cst_5 : f32 to vector<256x3xf32>
    %8 = arith.cmpf oge, %6, %7 : vector<256x3xf32>
    %cst_6 = arith.constant 0.00999999977 : f32
    %9 = vector.broadcast %cst_6 : f32 to vector<256x3xf32>
    %10 = arith.mulf %9, %6 : vector<256x3xf32>
    %11 = arith.select %8, %6, %10 : vector<256x3xi1>, vector<256x3xf32>
    %12 = tpu.iota {dimensions = array<i32: 1>} : vector<256x96xi32>
    %c32_i32 = arith.constant 32 : i32
    %13 = vector.broadcast %c32_i32 : i32 to vector<256x96xi32>
    %14 = arith.cmpi slt, %12, %13 : vector<256x96xi32>
    %15 = vector.extract_strided_slice %11 {offsets = [0, 0], sizes = [256, 1], strides = [1, 1]} : vector<256x3xf32> to vector<256x1xf32>
    %c64_i32 = arith.constant 64 : i32
    %16 = vector.broadcast %c64_i32 : i32 to vector<256x96xi32>
    %17 = arith.cmpi slt, %12, %16 : vector<256x96xi32>
    %18 = vector.extract_strided_slice %11 {offsets = [0, 1], sizes = [256, 1], strides = [1, 1]} : vector<256x3xf32> to vector<256x1xf32>
    %19 = vector.extract_strided_slice %11 {offsets = [0, 2], sizes = [256, 1], strides = [1, 1]} : vector<256x3xf32> to vector<256x1xf32>
    %20 = vector.shape_cast %18 : vector<256x1xf32> to vector<256x1xf32>
    %21 = vector.broadcast %20 : vector<256x1xf32> to vector<256x96xf32>
    %22 = vector.shape_cast %19 : vector<256x1xf32> to vector<256x1xf32>
    %23 = vector.broadcast %22 : vector<256x1xf32> to vector<256x96xf32>
    %24 = arith.select %17, %21, %23 : vector<256x96xi1>, vector<256x96xf32>
    %25 = vector.shape_cast %15 : vector<256x1xf32> to vector<256x1xf32>
    %26 = vector.broadcast %25 : vector<256x1xf32> to vector<256x96xf32>
    %27 = arith.select %14, %26, %24 : vector<256x96xi1>, vector<256x96xf32>
    %28 = arith.mulf %0, %27 : vector<256x96xf32>
    %29 = arith.truncf %28 : vector<256x96xf32> to vector<256x96xbf16>
    %c0_7 = arith.constant 0 : index
    %c0_8 = arith.constant 0 : index
    %30 = vector.load %arg4[%c0_7, %c0_8] : memref<96x512xbf16, #tpu.memory_space<vmem>>, vector<96x512xbf16>
    %cst_9 = arith.constant dense<0.000000e+00> : vector<256x512xf32>
    %31 = tpu.matmul %29, %30, %cst_9 {dimension_numbers = #tpu.dot_dimension_numbers<[1], [0], [0], [1], [0, 0, 1, 1], [], []>} : vector<256x96xbf16>, vector<96x512xbf16>, vector<256x512xf32> -> vector<256x512xf32>
    %c0_10 = arith.constant 0 : index
    %c0_11 = arith.constant 0 : index
    %32 = vector.load %arg5[%c0_10, %c0_11] : memref<1x512xf32, #tpu.memory_space<vmem>>, vector<1x512xf32>
    %33 = vector.broadcast %32 : vector<1x512xf32> to vector<256x512xf32>
    %34 = arith.addf %31, %33 : vector<256x512xf32>
    %35 = arith.truncf %34 : vector<256x512xf32> to vector<256x512xbf16>
    %c0_12 = arith.constant 0 : index
    %c0_13 = arith.constant 0 : index
    %36 = vector.load %arg6[%c0_12, %c0_13] : memref<512x512xbf16, #tpu.memory_space<vmem>>, vector<512x512xbf16>
    %cst_14 = arith.constant dense<0.000000e+00> : vector<256x512xf32>
    %37 = tpu.matmul %35, %36, %cst_14 {dimension_numbers = #tpu.dot_dimension_numbers<[1], [0], [0], [1], [0, 0, 1, 1], [], []>} : vector<256x512xbf16>, vector<512x512xbf16>, vector<256x512xf32> -> vector<256x512xf32>
    %c0_15 = arith.constant 0 : index
    %c0_16 = arith.constant 0 : index
    %38 = vector.load %arg7[%c0_15, %c0_16] : memref<1x512xf32, #tpu.memory_space<vmem>>, vector<1x512xf32>
    %39 = vector.broadcast %38 : vector<1x512xf32> to vector<256x512xf32>
    %40 = arith.addf %37, %39 : vector<256x512xf32>
    %41 = arith.truncf %40 : vector<256x512xf32> to vector<256x512xbf16>
    %c0_17 = arith.constant 0 : index
    %c0_18 = arith.constant 0 : index
    %42 = vector.load %arg8[%c0_17, %c0_18] : memref<512x512xbf16, #tpu.memory_space<vmem>>, vector<512x512xbf16>
    %cst_19 = arith.constant dense<0.000000e+00> : vector<256x512xf32>
    %43 = tpu.matmul %41, %42, %cst_19 {dimension_numbers = #tpu.dot_dimension_numbers<[1], [0], [0], [1], [0, 0, 1, 1], [], []>} : vector<256x512xbf16>, vector<512x512xbf16>, vector<256x512xf32> -> vector<256x512xf32>
    %c0_20 = arith.constant 0 : index
    %c0_21 = arith.constant 0 : index
    %44 = vector.load %arg9[%c0_20, %c0_21] : memref<1x512xf32, #tpu.memory_space<vmem>>, vector<1x512xf32>
    %45 = vector.broadcast %44 : vector<1x512xf32> to vector<256x512xf32>
    %46 = arith.addf %43, %45 : vector<256x512xf32>
    %47 = arith.truncf %46 : vector<256x512xf32> to vector<256x512xbf16>
    %c0_22 = arith.constant 0 : index
    %c0_23 = arith.constant 0 : index
    %48 = vector.load %arg10[%c0_22, %c0_23] : memref<512x8xbf16, #tpu.memory_space<vmem>>, vector<512x8xbf16>
    %cst_24 = arith.constant dense<0.000000e+00> : vector<256x8xf32>
    %49 = tpu.matmul %47, %48, %cst_24 {dimension_numbers = #tpu.dot_dimension_numbers<[1], [0], [0], [1], [0, 0, 1, 1], [], []>} : vector<256x512xbf16>, vector<512x8xbf16>, vector<256x8xf32> -> vector<256x8xf32>
    %50 = vector.extract_strided_slice %49 {offsets = [0, 0], sizes = [256, 1], strides = [1, 1]} : vector<256x8xf32> to vector<256x1xf32>
    %c0_25 = arith.constant 0 : index
    %c0_26 = arith.constant 0 : index
    %51 = vector.load %arg11[%c0_25, %c0_26] : memref<1x1xf32, #tpu.memory_space<vmem>>, vector<1x1xf32>
    %52 = vector.broadcast %51 : vector<1x1xf32> to vector<256x1xf32>
    %53 = arith.addf %50, %52 : vector<256x1xf32>
    %c0_27 = arith.constant 0 : index
    %c0_28 = arith.constant 0 : index
    %54 = vector.load %arg12[%c0_27, %c0_28] : memref<256x1xf32, #tpu.memory_space<vmem>>, vector<256x1xf32>
    tpu.vector_store %arg12[%c0_27, %c0_28], %53 {strides = array<i32>} : memref<256x1xf32, #tpu.memory_space<vmem>>, vector<256x1xf32>,
    return
  }
  func.func @transform_0(%arg0: i32) -> (i32, i32) {
    %c0_i32 = arith.constant 0 : i32
    %c0_i32_0 = arith.constant 0 : i32
    return %arg0, %c0_i32 : i32, i32
  }
  func.func @transform_1(%arg0: i32) -> (i32, i32) {
    %c0_i32 = arith.constant 0 : i32
    %c0_i32_0 = arith.constant 0 : i32
    %c0_i32_1 = arith.constant 0 : i32
    return %c0_i32, %c0_i32_0 : i32, i32
  }
  func.func @transform_2(%arg0: i32) -> (i32, i32) {
    %c0_i32 = arith.constant 0 : i32
    %c0_i32_0 = arith.constant 0 : i32
    %c0_i32_1 = arith.constant 0 : i32
    return %c0_i32, %c0_i32_0 : i32, i32
  }
  func.func @transform_3(%arg0: i32) -> (i32, i32) {
    %c0_i32 = arith.constant 0 : i32
    %c0_i32_0 = arith.constant 0 : i32
    %c0_i32_1 = arith.constant 0 : i32
    return %c0_i32, %c0_i32_0 : i32, i32
  }
  func.func @transform_4(%arg0: i32) -> (i32, i32) {
    %c0_i32 = arith.constant 0 : i32
    %c0_i32_0 = arith.constant 0 : i32
    %c0_i32_1 = arith.constant 0 : i32
    return %c0_i32, %c0_i32_0 : i32, i32
  }
  func.func @transform_5(%arg0: i32) -> (i32, i32) {
    %c0_i32 = arith.constant 0 : i32
    %c0_i32_0 = arith.constant 0 : i32
    %c0_i32_1 = arith.constant 0 : i32
    return %c0_i32, %c0_i32_0 : i32, i32
  }
  func.func @transform_6(%arg0: i32) -> (i32, i32) {
    %c0_i32 = arith.constant 0 : i32
    %c0_i32_0 = arith.constant 0 : i32
    %c0_i32_1 = arith.constant 0 : i32
    return %c0_i32, %c0_i32_0 : i32, i32
  }
  func.func @transform_7(%arg0: i32) -> (i32, i32) {
    %c0_i32 = arith.constant 0 : i32
    %c0_i32_0 = arith.constant 0 : i32
    %c0_i32_1 = arith.constant 0 : i32
    return %c0_i32, %c0_i32_0 : i32, i32
  }
  func.func @transform_8(%arg0: i32) -> (i32, i32) {
    %c0_i32 = arith.constant 0 : i32
    %c0_i32_0 = arith.constant 0 : i32
    %c0_i32_1 = arith.constant 0 : i32
    return %c0_i32, %c0_i32_0 : i32, i32
  }
  func.func @transform_9(%arg0: i32) -> (i32, i32) {
    %c0_i32 = arith.constant 0 : i32
    %c0_i32_0 = arith.constant 0 : i32
    %c0_i32_1 = arith.constant 0 : i32
    return %c0_i32, %c0_i32_0 : i32, i32
  }
  func.func @transform_10(%arg0: i32) -> (i32, i32) {
    %c0_i32 = arith.constant 0 : i32
    %c0_i32_0 = arith.constant 0 : i32
    %c0_i32_1 = arith.constant 0 : i32
    return %c0_i32, %c0_i32_0 : i32, i32
  }
  func.func @transform_11(%arg0: i32) -> (i32, i32) {
    %c0_i32 = arith.constant 0 : i32
    %c0_i32_0 = arith.constant 0 : i32
    return %arg0, %c0_i32 : i32, i32
  }
}

</mosaic_0001>

<bundles_post_ra>
// kernel: tpu_custom_call.1
= control target key start
LH: loop header
LB: loop body
LE: loop exit
PB: predicated region body
PF: predicated region fallthrough
CT: control target
= control target key end

     0   :  { %s10874_s0 = inlined_call_operand.vmem [shape: f32[512,96], index: 0, kind: input, shape index: {}]   ;;  %s10875_s1 = inlined_call_operand.vmem [shape: bf16[96,3], index: 1, kind: input, shape index: {}]   ;;  %s10876_s2 = inlined_call_operand.hbm [shape: f32[1,3], index: 2, kind: input, shape index: {}]   ;;  %s10877_s3 = inlined_call_operand.vmem [shape: bf16[96,512], index: 3, kind: input, shape index: {}]   ;;  %s10878_s4 = inlined_call_operand.hbm [shape: f32[1,512], index: 4, kind: input, shape index: {}]   ;;  %s10879_s5 = inlined_call_operand.vmem [shape: bf16[512,512], index: 5, kind: input, shape index: {}]   ;;  %s10880_s6 = inlined_call_operand.hbm [shape: f32[1,512], index: 6, kind: input, shape index: {}]   ;;  %s10881_s7 = inlined_call_operand.hbm [shape: bf16[512,512], index: 7, kind: input, shape index: {}]   ;;  %s10882_s8 = inlined_call_operand.hbm [shape: f32[1,512], index: 8, kind: input, shape index: {}]   ;;  %s10883_s9 = inlined_call_operand.vmem [shape: bf16[512,8], index: 9, kind: input, shape index: {}]   ;;  %s10884_s10 = inlined_call_operand.<no memory space> [shape: f32[1,1], index: 10, kind: input, shape index: {}]   ;;  %s10885_s11 = inlined_call_operand.vmem [shape: f32[512,1], index: 11, kind: output, shape index: {}]  }
   0x1   :  { %v16_v0 = vstv %s10884_s10 }
   0x2   :  { %17 = vst [vmem:[#allocation2] sm:$0x1] %v16_v0 }
   0x3   :  { %18 = vsyncpa [#allocation4], 0 }
   0x4   :  { %19 = vsyncpa [#allocation6], 0 }
   0x5   :  { %20 = vsyncpa [#allocation9], 0  ;;  %s7609_s19 = smov 0  }
   0x6 LB: > { %s7536_s20 = smov [#allocation5]   ;;  %s6071_s22 = sadd.s32 4294967295, %s7534_s19   ;;  %s7534_s19 = sphi %s7609_s19, %s26_s19  }
   0x7   : > { %s323_s21 = sshll.u32 %s7536_s20, 4  ;;  %p6073_p0 = scmp.ge.s32.totalorder %s7534_s19, 1  ;;  %s324_s21 = int_to_ptr.vmem [resolvable:$true] %s323_s21 }
   0x8   : > { %p293_p1 = scmp.lt.s32.totalorder %s7534_s19, 3  ;;  %p7619_p2 = scmp.eq.s32.totalorder %s6071_s22, 0 }
   0x9   : > { %s7537_s24 = smov [#allocation8]   ;;  %s7538_s27 = smov [#allocation3]  }
   0xa   : > { %p7623_p3 = pnand %p6073_p0, %p293_p1  ;;  %s347_s25 = sshll.u32 %s7537_s24, 4  ;;  %s7629_s25 = int_to_ptr.vmem [resolvable:$true] %s347_s25 }
   0xb   : > { %s309_s28 = sshll.u32 %s7538_s27, 4  ;;  %s7539_s29 = smov [#allocation7]   ;;  %s7637_s28 = int_to_ptr.vmem [resolvable:$true] %s309_s28 }
   0xc   : > { %p6782_p4 = pneg %p7623_p3  ;;  %s7639_s30 = sshll.u32 %s7539_s29, 4  ;;  %s338_s30 = int_to_ptr.vmem [resolvable:$true] %s7639_s30 }
   0xd   : > { %s7397_s13 = scalar_lea.vmem %s324_s21, 64  ;;  %p7405_p10 = scmp.lt.s32.totalorder %s324_s21, %s324_s21 }
   0xe   : > { %p7633_p5 = pnand %p7619_p2, %p6782_p4  ;;  %p7398_p7 = scmp.ne.s32.totalorder %s324_s21, %s7397_s13 }
   0xf   : > { %p7406_p11 = scmp.lt.s32.totalorder %s7397_s13, %s7397_s13 }
  0x10   : > { %p7643_p6 = pneg %p7633_p5 }
  0x11   : > { %p7407_p12 = por %p7406_p11, %p7405_p10 }
  0x12   : > { %p7400_p8 = pnand %p7398_p7, %p7643_p6 }
  0x14   : > { %p7401_p9 = pneg %p7400_p8 }
  0x16   : > { %p7408_p13 = pnand %p7407_p12, %p7401_p9 }
  0x18   : > { %7411 = shalt.err (!%p7408_p13)
}
  0x19   : > { %6788 = dma.hbm_to_vmem [thread:$0]  (!%p7633_p5), %s10878_s4, 64, %s324_s21, [#allocation6]  }
  0x1a   : > { %s7423_s16 = scalar_lea.vmem %s7629_s25, 16384  ;;  %p7431_p7 = scmp.lt.s32.totalorder %s7629_s25, %s7629_s25 }
  0x1b   : > { %p7424_p0 = scmp.ne.s32.totalorder %s7629_s25, %s7423_s16  ;;  %p7432_p8 = scmp.lt.s32.totalorder %s7423_s16, %s7423_s16 }
  0x1d   : > { %p7426_p1 = pnand %p7424_p0, %p7643_p6  ;;  %p7433_p9 = por %p7432_p8, %p7431_p7 }
  0x1f   : > { %p7427_p4 = pneg %p7426_p1 }
  0x21   : > { %p7434_p10 = pnand %p7433_p9, %p7427_p4 }
  0x23   : > { %7437 = shalt.err (!%p7434_p10)
}
  0x24   : > { %s7540_s17 = smov 256   ;;  %s7541_s18 = smov 16  }
  0x25   : > { %6794 = dma.hbm_to_vmem [thread:$0]  (!%p7633_p5), %s10881_s7, 16384, %s7629_s25, [#allocation9], %s7540_s17, %s7540_s17, %s7541_s18  }
  0x26   : > { %s7449_s24 = scalar_lea.vmem %s7637_s28, 16  ;;  %s7456_s27 = scalar_lea.vmem %s7637_s28, 32 }
  0x27   : > { %p7450_p11 = scmp.ne.s32.totalorder %s7637_s28, %s7449_s24  ;;  %p7457_p0 = scmp.lt.s32.totalorder %s7637_s28, %s7637_s28 }
  0x28   : > { %p7458_p1 = scmp.lt.s32.totalorder %s7456_s27, %s7449_s24 }
  0x29   : > { %p7452_p12 = pnand %p7450_p11, %p7643_p6 }
  0x2a   : > { %p7459_p4 = por %p7458_p1, %p7457_p0 }
  0x2b   : > { %p7453_p13 = pneg %p7452_p12 }
  0x2d   : > { %p7460_p7 = pnand %p7459_p4, %p7453_p13 }
  0x2f   : > { %7463 = shalt.err (!%p7460_p7)
}
  0x30   : > { %6785 = dma.hbm_to_vmem [thread:$0]  (!%p7633_p5), %s10876_s2, 16, %s7637_s28, [#allocation4]  }
  0x31   : > { %s7475_s25 = scalar_lea.vmem %s338_s30, 64  ;;  %p7483_p11 = scmp.lt.s32.totalorder %s338_s30, %s338_s30 }
  0x32   : > { %p7476_p8 = scmp.ne.s32.totalorder %s338_s30, %s7475_s25  ;;  %p7484_p12 = scmp.lt.s32.totalorder %s7475_s25, %s7475_s25 }
  0x34   : > { %p7478_p9 = pnand %p7476_p8, %p7643_p6  ;;  %p7485_p0 = por %p7484_p12, %p7483_p11 }
  0x36   : > { %p7479_p10 = pneg %p7478_p9 }
  0x38   : > { %p7486_p13 = pnand %p7485_p0, %p7479_p10 }
  0x3a   : > { %7489 = shalt.err (!%p7486_p13)
}
  0x3b   : > { %6791 = dma.hbm_to_vmem [thread:$0]  (!%p7633_p5), %s10880_s6, 64, %s338_s30, [#allocation6]  }
  0x3c   : > { %s7542_s16 = smov [#allocation10]  }
  0x3d   : > { %s361_s28 = sshll.u32 %s7542_s16, 4  ;;  %s362_s28 = int_to_ptr.vmem [resolvable:$true] %s361_s28 }
  0x3e   : > { %s7501_s17 = scalar_lea.vmem %s362_s28, 64  ;;  %p7509_p8 = scmp.lt.s32.totalorder %s362_s28, %s362_s28 }
  0x3f   : > { %p7502_p1 = scmp.ne.s32.totalorder %s362_s28, %s7501_s17  ;;  %p7510_p9 = scmp.lt.s32.totalorder %s7501_s17, %s7501_s17 }
  0x41   : > { %p7504_p4 = pnand %p7502_p1, %p7643_p6  ;;  %p7511_p11 = por %p7510_p9, %p7509_p8 }
  0x43   : > { %p7505_p7 = pneg %p7504_p4 }
  0x45   : > { %p7512_p10 = pnand %p7511_p11, %p7505_p7 }
  0x47   : > { %7515 = shalt.err (!%p7512_p10)
}
  0x48   : > { %6797 = dma.hbm_to_vmem [thread:$0]  (!%p7633_p5), %s10882_s8, 64, %s362_s28, [#allocation9]  }
  0x49   : > { %389 = sbr.rel (%p7623_p3) target bundleno = 1811 (0x713), region = 64 }
  0x4e   : > { %7521 = dma.done.wait (%p7619_p2), [#allocation4], 16  }
  0x4f   : > { %7523 = vsyncadd (%p7619_p2), [#allocation4], 4294967280 }
  0x50   : > { %7525 = dma.done.wait (%p7619_p2), [#allocation6], 128  }
  0x51   : > { %7527 = vsyncadd (%p7619_p2), [#allocation6], 4294967168 }
  0x52   : > { %7529 = dma.done.wait (%p7619_p2), [#allocation9], 16448  }
  0x53   : > { %7531 = vsyncadd (%p7619_p2), [#allocation9], 4294950848  ;;  %s6086_s23 = sshll.u32 %s6071_s22, 5  ;;  %v6894_v1 = vld [vmem:[%s10875_s1 + $0x28] sm:$0xff]   ;;  %v6895_v2 = vld [vmem:[%s10875_s1 + $0x20] sm:$0xff]   ;;  %vm561_vm0 = vcmask 785408  }
  0x54   : > { %p446_p3 = scmp.lt.s32.totalorder %s6086_s23, 63  ;;  %6706 = vmatprep.subr.bf16.mxu0 %v6894_v1  ;;  %6750 = vmatprep.subr.bf16.mxu1 %v6894_v1  ;;  %v6896_v3 = vld [vmem:[%s10875_s1 + $0x18] sm:$0xff]   ;;  %v6897_v9 = vld [vmem:[%s10875_s1 + $0x10] sm:$0xff]   ;;  %v6898_v11 = vld [vmem:[%s10875_s1 + $0x8] sm:$0xff]   ;;  %v7543_v49 = vmov 0   ;;  %v7544_v50 = vmov 1  }
  0x55   : > { %6707 = vmatpush3.bf16.msra.mxu0 %v6894_v1  ;;  %6756 = vmatpush3.bf16.msra.mxu1 %v6894_v1  ;;  %v6899_v12 = vld [vmem:[%s10875_s1] sm:$0xff]  }
  0x56   : > { %s11102_s23 = smov (!%p446_p3, %s6086_s23), 63  ;;  %6708 = vmatprep.subr.bf16.mxu0 %v6895_v2  ;;  %6751 = vmatprep.subr.bf16.mxu1 %v6895_v2  ;;  %v7790_v57 = vld [vmem:[#allocation3] ss:$0 sm:$0xff] }
  0x57   : > { %s6087_s12 = sshll.u32 %s11102_s23, 3  ;;  %6828 = vset.pattern.permute.xlu0 %v7543_v49  ;;  %6826 = vset.pattern.permute.xlu1 %v7544_v50 }
  0x58   : > { %s7724_s27 = scalar_lea.vmem %s10874_s0, %s6087_s12  ;;  %s10696_s22 = scalar_lea.vmem %s10885_s11, %s6087_s12 }
  0x59   : > { %v458_v4 = vld [vmem:[%s7724_s27] sm:$0xff]  ;;  %v459_v5 = vld [vmem:[%s7724_s27 + $0x8] sm:$0xff]  ;;  %6709 = vmatpush3.bf16.msra.mxu0 %v6895_v2  ;;  %6757 = vmatpush3.bf16.msra.mxu1 %v6895_v2  ;;  %v460_v13 = vld [vmem:[%s7724_s27 + $0x10] sm:$0xff] }
  0x5a   : > { %v490_v6 = vpack.c.bf16 %v459_v5, %v458_v4  ;;  %v474_v7 = vld [vmem:[%s7724_s27 + $0x80] sm:$0xff]  ;;  %v475_v8 = vld [vmem:[%s7724_s27 + $0x88] sm:$0xff]  ;;  %6710 = vmatprep.subr.bf16.mxu0 %v6896_v3  ;;  %6752 = vmatprep.subr.bf16.mxu1 %v6896_v3  ;;  %v461_v14 = vld [vmem:[%s7724_s27 + $0x18] sm:$0xff]  ;;  %v7545_v5 = vmov 2  }
  0x5b   : > { %v498_v10 = vpack.c.bf16 %v475_v8, %v474_v7  ;;  %v476_v15 = vld [vmem:[%s7724_s27 + $0x90] sm:$0xff]  ;;  %v477_v16 = vld [vmem:[%s7724_s27 + $0x98] sm:$0xff]  ;;  %v462_v17 = vld [vmem:[%s7724_s27 + $0x20] sm:$0xff]  ;;  %v491_v21 = vpack.c.bf16 %v461_v14, %v460_v13 }
  0x5c   : > { %6718 = vmatprep.mubr.msk.bf16.mxu0 %vm561_vm0, %v490_v6  ;;  %v463_v18 = vld [vmem:[%s7724_s27 + $0x28] sm:$0xff]  ;;  %v478_v19 = vld [vmem:[%s7724_s27 + $0xa0] sm:$0xff]  ;;  %v499_v22 = vpack.c.bf16 %v477_v16, %v476_v15  ;;  %v464_v25 = vld [vmem:[%s7724_s27 + $0x30] sm:$0xff] }
  0x5d   : > { %6734 = vmatprep.mubr.msk.bf16.mxu1 %vm561_vm0, %v498_v10  ;;  %6711 = vmatpush3.bf16.msra.mxu0 %v6896_v3  ;;  %v479_v20 = vld [vmem:[%s7724_s27 + $0xa8] sm:$0xff]  ;;  %v492_v23 = vpack.c.bf16 %v463_v18, %v462_v17  ;;  %v465_v26 = vld [vmem:[%s7724_s27 + $0x38] sm:$0xff]  ;;  %v480_v27 = vld [vmem:[%s7724_s27 + $0xb0] sm:$0xff] }
  0x5e   : > { %6758 = vmatpush3.bf16.msra.mxu1 %v6896_v3  ;;  %6712 = vmatprep.subr.bf16.mxu0 %v6897_v9  ;;  %v500_v24 = vpack.c.bf16 %v479_v20, %v478_v19  ;;  %v481_v28 = vld [vmem:[%s7724_s27 + $0xb8] sm:$0xff]  ;;  %v466_v29 = vld [vmem:[%s7724_s27 + $0x40] sm:$0xff]  ;;  %v467_v30 = vld [vmem:[%s7724_s27 + $0x48] sm:$0xff]  ;;  %v493_v33 = vpack.c.bf16 %v465_v26, %v464_v25 }
  0x5f   : > { %6753 = vmatprep.subr.bf16.mxu1 %v6897_v9  ;;  %v482_v31 = vld [vmem:[%s7724_s27 + $0xc0] sm:$0xff]  ;;  %v483_v32 = vld [vmem:[%s7724_s27 + $0xc8] sm:$0xff]  ;;  %v501_v34 = vpack.c.bf16 %v481_v28, %v480_v27  ;;  %v494_v35 = vpack.c.bf16 %v467_v30, %v466_v29  ;;  %v468_v37 = vld [vmem:[%s7724_s27 + $0x50] sm:$0xff] }
  0x60   : > { %v502_v36 = vpack.c.bf16 %v483_v32, %v482_v31  ;;  %v469_v38 = vld [vmem:[%s7724_s27 + $0x58] sm:$0xff]  ;;  %v484_v39 = vld [vmem:[%s7724_s27 + $0xd0] sm:$0xff]  ;;  %v470_v41 = vld [vmem:[%s7724_s27 + $0x60] sm:$0xff] }
  0x61   : > { %6713 = vmatpush3.bf16.msra.mxu0 %v6897_v9  ;;  %v485_v40 = vld [vmem:[%s7724_s27 + $0xd8] sm:$0xff]  ;;  %v471_v42 = vld [vmem:[%s7724_s27 + $0x68] sm:$0xff]  ;;  %v495_v43 = vpack.c.bf16 %v469_v38, %v468_v37  ;;  %v472_v46 = vld [vmem:[%s7724_s27 + $0x70] sm:$0xff] }
  0x62   : > { %6759 = vmatpush3.bf16.msra.mxu1 %v6897_v9  ;;  %6714 = vmatprep.subr.bf16.mxu0 %v6898_v11  ;;  %v503_v44 = vpack.c.bf16 %v485_v40, %v484_v39  ;;  %v496_v45 = vpack.c.bf16 %v471_v42, %v470_v41  ;;  %v473_v47 = vld [vmem:[%s7724_s27 + $0x78] sm:$0xff]  ;;  %v486_v51 = vld [vmem:[%s7724_s27 + $0xe0] sm:$0xff]  ;;  %v487_v52 = vld [vmem:[%s7724_s27 + $0xe8] sm:$0xff] }
  0x63   : > { %6754 = vmatprep.subr.bf16.mxu1 %v6898_v11  ;;  %v497_v48 = vpack.c.bf16 %v473_v47, %v472_v46  ;;  %v504_v53 = vpack.c.bf16 %v487_v52, %v486_v51  ;;  %v488_v54 = vld [vmem:[%s7724_s27 + $0xf0] sm:$0xff]  ;;  %v489_v55 = vld [vmem:[%s7724_s27 + $0xf8] sm:$0xff] }
  0x64   : > { %v505_v56 = vpack.c.bf16 %v489_v55, %v488_v54  ;;  %v6902_v32 = vld [vmem:[%s10877_s3 + $0xa4] ss:$16 sps:$4 sm:$0xff]   ;;  %v6903_v37 = vld [vmem:[%s10877_s3 + $0xa8] ss:$16 sps:$4 sm:$0xff]   ;;  %v6911_v41 = vld [vmem:[%s10877_s3 + $0x8c] ss:$16 sps:$4 sm:$0xff]  }
  0x65   : > { %6715 = vmatpush3.bf16.msra.mxu0 %v6898_v11  ;;  %v6908_v40 = vld [vmem:[%s10877_s3 + $0x84] ss:$16 sps:$4 sm:$0xff]   ;;  %v6917_v51 = vld [vmem:[%s10877_s3 + $0x6c] ss:$16 sps:$4 sm:$0xff]   ;;  %v6912_v54 = vld [vmem:[%s10877_s3 + $0x60] ss:$16 sps:$4 sm:$0xff]  }
  0x66   : > { %6760 = vmatpush3.bf16.msra.mxu1 %v6898_v11  ;;  %6716 = vmatprep.subr.bf16.mxu0 %v6899_v12  ;;  %v6915_v55 = vld [vmem:[%s10877_s3 + $0x68] ss:$16 sps:$4 sm:$0xff]  }
  0x67   : > { %6755 = vmatprep.subr.bf16.mxu1 %v6899_v12 }
  0x69   : > { %6717 = vmatpush3.bf16.msra.mxu0 %v6899_v12 }
  0x6a   : > { %6761 = vmatpush3.bf16.msra.mxu1 %v6899_v12 }
  0x6b   : > { %1617 = vmatprep.subr.bf16.mxu1 %v6902_v32 }
  0x6c   : > { %6719 = vmatmul.mubr.msk.bf16.vlgmr.msra.gmra.mxu0 %vm561_vm0, %v491_v21 }
  0x6d   : > { %6735 = vmatmul.mubr.msk.bf16.vlgmr.msra.gmra.mxu1 %vm561_vm0, %v499_v22  ;;  %6722 = vmatprep.mubr.msk.bf16.mxu0 %vm561_vm0, %v492_v23 }
  0x6e   : > { %6738 = vmatprep.mubr.msk.bf16.mxu1 %vm561_vm0, %v500_v24 }
  0x74   : > { %6723 = vmatmul.mubr.msk.bf16.gmra.mxu0 %vm561_vm0, %v493_v33  ;;  %v6905_v33 = vld [vmem:[%s10877_s3 + $0xac] ss:$16 sps:$4 sm:$0xff]  }
  0x75   : > { %6739 = vmatmul.mubr.msk.bf16.gmra.mxu1 %vm561_vm0, %v501_v34  ;;  %6726 = vmatprep.mubr.msk.bf16.mxu0 %vm561_vm0, %v494_v35 }
  0x76   : > { %6742 = vmatprep.mubr.msk.bf16.mxu1 %vm561_vm0, %v502_v36  ;;  %v6900_v36 = vld [vmem:[%s10877_s3 + $0xa0] ss:$16 sps:$4 sm:$0xff]   ;;  %1810 = vmatprep.subr.bf16.mxu0 %v6905_v33 }
  0x77   : > { %1618 = vmatpush1.bf16.msra.mxu1 %v6900_v36  ;;  %1811 = vmatpush1.bf16.msra.mxu0 %v6903_v37  ;;  %v3817_v37 = vld [vmem:[#allocation10] sm:$0xf] }
  0x78   : > { %1619 = vmatprep.subr.bf16.mxu1 %v6908_v40  ;;  %1812 = vmatprep.subr.bf16.mxu0 %v6911_v41 }
  0x7c   : > { %6727 = vmatmul.mubr.msk.bf16.gmra.mxu0 %vm561_vm0, %v495_v43 }
  0x7d   : > { %6743 = vmatmul.mubr.msk.bf16.gmra.mxu1 %vm561_vm0, %v503_v44  ;;  %6730 = vmatprep.mubr.msk.bf16.mxu0 %vm561_vm0, %v496_v45  ;;  %v6906_v44 = vld [vmem:[%s10877_s3 + $0x80] ss:$16 sps:$4 sm:$0xff]   ;;  %v6909_v45 = vld [vmem:[%s10877_s3 + $0x88] ss:$16 sps:$4 sm:$0xff]  }
  0x7e   : > { %6746 = vmatprep.mubr.msk.bf16.mxu1 %vm561_vm0, %v504_v53  ;;  %1620 = vmatpush1.bf16.msra.mxu1 %v6906_v44 }
  0x7f   : > { %1813 = vmatpush1.bf16.msra.mxu0 %v6909_v45 }
  0x80   : > { %1814 = vmatprep.subr.bf16.mxu0 %v6917_v51 }
  0x83   : > { %1815 = vmatpush1.bf16.msra.mxu0 %v6915_v55 }
  0x84   : > { %6731 = vmatmul.mubr.msk.bf16.gmra.mxu0 %vm561_vm0, %v497_v48  ;;  %v6914_v48 = vld [vmem:[%s10877_s3 + $0x64] ss:$16 sps:$4 sm:$0xff]  }
  0x85   : > { %1838 = vmatprep.mubr.bf16.mxu0 %v7543_v49  ;;  %6747 = vmatmul.mubr.msk.bf16.gmra.mxu1 %vm561_vm0, %v505_v56 }
  0x86   : > { %1645 = vmatprep.mubr.bf16.mxu1 %v7543_v49  ;;  %1621 = vmatprep.subr.bf16.mxu1 %v6914_v48 }
  0x87   : > { %1622 = vmatpush1.bf16.msra.mxu1 %v6912_v54 }
 0x12c   : > { %v6720_v58 = vpop.f32.mrf.mxu0 }
 0x12d   : > { %v6736_v59 = vpop.f32.mrf.mxu1  ;;  %v653_v60 = vadd.f32 %v6720_v58, %v7790_v57 }
 0x12e   : > { %v717_v61 = vadd.f32 %v6736_v59, %v7790_v57  ;;  %v644_v63 = vpop.f32.mrf.mxu0  ;;  %v6920_v59 = vld [vmem:[%s10877_s3 + $0x44] ss:$16 sps:$4 sm:$0xff]  }
 0x12f   : > { %v805_v62 = vmul.f32 0.01, %v653_v60  ;;  %vm773_vm1 = vcmp.ge.f32.partialorder %v653_v60, 0.0  ;;  %v645_v2 = vadd.f32 %v7790_v57, %v644_v63  ;;  %v708_v6 = vpop.f32.mrf.mxu1  ;;  %v6921_v63 = vld [vmem:[%s10877_s3 + $0x48] ss:$16 sps:$4 sm:$0xff]   ;;  %1623 = vmatprep.subr.bf16.mxu1 %v6920_v59 }
 0x130   : > { %v821_v0 = vmul.f32 0.01, %v717_v61  ;;  %vm789_vm2 = vcmp.ge.f32.partialorder %v717_v61, 0.0  ;;  %v709_v8 = vadd.f32 %v7790_v57, %v708_v6  ;;  %v6721_v9 = vpop.f32.mrf.mxu0  ;;  %v6926_v6 = vld [vmem:[%s10877_s3 + $0x24] ss:$16 sps:$4 sm:$0xff]  }
 0x131   : > { %v837_v1 = vsel %vm773_vm1, %v653_v60, %v805_v62  ;;  %v803_v4 = vmul.f32 0.01, %v645_v2  ;;  %vm771_vm3 = vcmp.ge.f32.partialorder %v645_v2, 0.0  ;;  %v656_v11 = vadd.f32 %v6721_v9, %v7790_v57  ;;  %v6737_v29 = vpop.f32.mrf.mxu1  ;;  %v6918_v60 = vld [vmem:[%s10877_s3 + $0x40] ss:$16 sps:$4 sm:$0xff]  }
 0x132   : > { %1200 = vperm.xlu0 %6828, %v837_v1   ;;  %883 = vperm.xlu1 %6826, %v837_v1   ;;  %v853_v3 = vsel %vm789_vm2, %v717_v61, %v821_v0  ;;  %v819_v10 = vmul.f32 0.01, %v709_v8  ;;  %vm787_vm4 = vcmp.ge.f32.partialorder %v709_v8, 0.0  ;;  %v647_v12 = vpop.f32.mrf.mxu0  ;;  %v720_v30 = vadd.f32 %v6737_v29, %v7790_v57  ;;  %v6923_v61 = vld [vmem:[%s10877_s3 + $0x4c] ss:$16 sps:$4 sm:$0xff]  }
 0x133   : > { %v835_v7 = vsel %vm771_vm3, %v645_v2, %v803_v4  ;;  %v806_v14 = vmul.f32 0.01, %v656_v11  ;;  %v648_v15 = vadd.f32 %v7790_v57, %v647_v12  ;;  %vm774_vm5 = vcmp.ge.f32.partialorder %v656_v11, 0.0  ;;  %1816 = vmatprep.subr.bf16.mxu0 %v6923_v61  ;;  %1624 = vmatpush1.bf16.msra.mxu1 %v6918_v60  ;;  %v6924_v4 = vld [vmem:[%s10877_s3 + $0x20] ss:$16 sps:$4 sm:$0xff]   ;;  %v711_v9 = vpop.f32.mrf.mxu1 }
 0x134   : > { %v851_v13 = vsel %vm787_vm4, %v709_v8, %v819_v10  ;;  %v6724_v16 = vpop.f32.mrf.mxu0  ;;  %v822_v39 = vmul.f32 0.01, %v720_v30  ;;  %vm790_vm10 = vcmp.ge.f32.partialorder %v720_v30, 0.0  ;;  %1817 = vmatpush1.bf16.msra.mxu0 %v6921_v63  ;;  %v6929_v8 = vld [vmem:[%s10877_s3 + $0x2c] ss:$16 sps:$4 sm:$0xff]   ;;  %1625 = vmatprep.subr.bf16.mxu1 %v6926_v6 }
 0x135   : > { %v669_v17 = vadd.f32 %v6724_v16, %v7790_v57  ;;  %v838_v18 = vsel %vm774_vm5, %v656_v11, %v806_v14  ;;  %v804_v19 = vmul.f32 0.01, %v648_v15  ;;  %vm772_vm6 = vcmp.ge.f32.partialorder %v648_v15, 0.0  ;;  %1818 = vmatprep.subr.bf16.mxu0 %v6929_v8  ;;  %v6935_v14 = vld [vmem:[%s10877_s3 + $0xc] ss:$16 sps:$4 sm:$0xff]  }
 0x136   : > { %1264 = vperm.xlu0 %6828, %v853_v3   ;;  %6827 = vset.pattern.permute.xlu1 %v7545_v5  ;;  %v660_v20 = vpop.f32.mrf.mxu0  ;;  %v7858_v52 = vsel %vm790_vm10, %v720_v30, %v822_v39 }
 0x137   : > { %1040 = vperm.xlu1 %6827, %v837_v1   ;;  %v809_v21 = vmul.f32 0.01, %v669_v17  ;;  %v661_v22 = vadd.f32 %v7790_v57, %v660_v20  ;;  %v7807_v23 = vsel %vm772_vm6, %v648_v15, %v804_v19  ;;  %vm777_vm7 = vcmp.ge.f32.partialorder %v669_v17, 0.0  ;;  %1626 = vmatpush1.bf16.msra.mxu1 %v6924_v4 }
 0x138   : > { %v6725_v24 = vpop.f32.mrf.mxu0  ;;  %v712_v15 = vadd.f32 %v7790_v57, %v711_v9 }
 0x139   : > { %v807_v25 = vmul.f32 0.01, %v661_v22  ;;  %v7811_v26 = vsel %vm777_vm7, %v669_v17, %v809_v21  ;;  %v672_v27 = vadd.f32 %v6725_v24, %v7790_v57  ;;  %vm775_vm8 = vcmp.ge.f32.partialorder %v661_v22, 0.0  ;;  %v6930_v17 = vld [vmem:[%s10877_s3] ss:$16 sps:$4 sm:$0xff]  }
 0x13a   : > { %6831 = vset.pattern.permute.xlu0 %v7544_v50  ;;  %v663_v28 = vpop.f32.mrf.mxu0  ;;  %v867_v21 = vlaneseq  ;;  %v820_v24 = vmul.f32 0.01, %v712_v15  ;;  %vm788_vm1 = vcmp.ge.f32.partialorder %v712_v15, 0.0 }
 0x13b   : > { %6829 = vset.pattern.permute.xlu1 %v7544_v50  ;;  %873 = vperm.xlu0 %6831, %v835_v7   ;;  %v7817_v31 = vsel %vm775_vm8, %v661_v22, %v807_v25  ;;  %v810_v34 = vmul.f32 0.01, %v672_v27  ;;  %v664_v35 = vadd.f32 %v7790_v57, %v663_v28  ;;  %vm778_vm9 = vcmp.ge.f32.partialorder %v672_v27, 0.0 }
 0x13c   : > { %963 = vperm.xlu1 %6829, %v853_v3   ;;  %v6728_v38 = vpop.f32.mrf.mxu0 }
 0x13d   : > { %v7840_v42 = vsel %vm778_vm9, %v672_v27, %v810_v34  ;;  %v808_v43 = vmul.f32 0.01, %v664_v35  ;;  %v685_v46 = vadd.f32 %v6728_v38, %v7790_v57  ;;  %vm776_vm11 = vcmp.ge.f32.partialorder %v664_v35, 0.0  ;;  %v2191_v34 = vld [vmem:[#allocation7] sm:$0xf] }
 0x13e   : > { %v676_v47 = vpop.f32.mrf.mxu0  ;;  %v7928_v27 = vshrl.u32 %v867_v21, 7 }
 0x13f   : > { %6832 = vset.pattern.permute.xlu0 %v7543_v49  ;;  %v7860_v53 = vsel %vm776_vm11, %v664_v35, %v808_v43  ;;  %v813_v56 = vmul.f32 0.01, %v685_v46  ;;  %v677_v58 = vadd.f32 %v7790_v57, %v676_v47  ;;  %vm781_vm12 = vcmp.ge.f32.partialorder %v685_v46, 0.0 }
 0x140   : > { %6830 = vset.pattern.permute.xlu1 %v7545_v5  ;;  %1192 = vperm.xlu0 %6832, %v835_v7   ;;  %v6729_v62 = vpop.f32.mrf.mxu0  ;;  %v7935_v32 = vsub.s32 2, %v7928_v27  ;;  %v7939_v33 = vsub.s32 3, %v7928_v27 }
 0x141   : > { %1104 = vperm.xlu1 %6830, %v853_v3   ;;  %v811_v0 = vmul.f32 0.01, %v677_v58  ;;  %v7884_v1 = vsel %vm781_vm12, %v685_v46, %v813_v56  ;;  %v688_v2 = vadd.f32 %v6729_v62, %v7790_v57  ;;  %vm779_vm13 = vcmp.ge.f32.partialorder %v677_v58, 0.0  ;;  %v6740_v46 = vpop.f32.mrf.mxu1 }
 0x142   : > { %v679_v3 = vpop.f32.mrf.mxu0  ;;  %v7943_v36 = vrot.slane %v2191_v34, %v7935_v32  ;;  %v7946_v38 = vrot.slane %v2191_v34, %v7939_v33  ;;  %v7949_v39 = vrot.slane %v3817_v37, %v7935_v32  ;;  %v7954_v43 = vrot.slane %v3817_v37, %v7939_v33 }
 0x143   : > { %v7902_v10 = vsel %vm779_vm13, %v677_v58, %v811_v0  ;;  %v814_v11 = vmul.f32 0.01, %v688_v2  ;;  %v680_v12 = vadd.f32 %v7790_v57, %v679_v3  ;;  %vm782_vm14 = vcmp.ge.f32.partialorder %v688_v2, 0.0  ;;  %v724_v54 = vpop.f32.mrf.mxu1 }
 0x144   : > { %1256 = vperm.xlu0 %6832, %v851_v13   ;;  %v6732_v16 = vpop.f32.mrf.mxu0  ;;  %10937 = vst [vmem:[#allocation14_spill] sm:$0xff] %v7943_v36  ;;  %10938 = vst [vmem:[#allocation15_spill] sm:$0xff] %v7946_v38  ;;  %v725_v58 = vadd.f32 %v7790_v57, %v724_v54 }
 0x145   : > { %1032 = vperm.xlu1 %6830, %v835_v7   ;;  %v6927_v7 = vld [vmem:[%s10877_s3 + $0x28] ss:$16 sps:$4 sm:$0xff]   ;;  %v7921_v19 = vsel %vm782_vm14, %v688_v2, %v814_v11  ;;  %v812_v20 = vmul.f32 0.01, %v680_v12  ;;  %v701_v22 = vadd.f32 %v6732_v16, %v7790_v57  ;;  %vm780_vm15 = vcmp.ge.f32.partialorder %v680_v12, 0.0  ;;  %10939 = vst [vmem:[#allocation16_spill] sm:$0xff] %v7949_v39  ;;  %v6741_v59 = vpop.f32.mrf.mxu1 }
 0x146   : > { %1819 = vmatpush1.bf16.msra.mxu0 %v6927_v7  ;;  %v692_v25 = vpop.f32.mrf.mxu0  ;;  %10940 = vst [vmem:[#allocation17_spill] sm:$0xff] %v7954_v43  ;;  %v823_v61 = vmul.f32 0.01, %v725_v58  ;;  %vm791_vm6 = vcmp.ge.f32.partialorder %v725_v58, 0.0  ;;  %v736_v6 = vadd.f32 %v6741_v59, %v7790_v57 }
 0x147   : > { %1820 = vmatprep.subr.bf16.mxu0 %v6935_v14  ;;  %v7931_v28 = vsel %vm780_vm15, %v680_v12, %v812_v20  ;;  %v817_v29 = vmul.f32 0.01, %v701_v22  ;;  %v693_v30 = vadd.f32 %v7790_v57, %v692_v25  ;;  %vm785_vm2 = vcmp.ge.f32.partialorder %v701_v22, 0.0  ;;  %v727_v62 = vpop.f32.mrf.mxu1 }
 0x148   : > { %6835 = vset.pattern.permute.xlu0 %v7544_v50  ;;  %v6733_v35 = vpop.f32.mrf.mxu0  ;;  %v855_v0 = vsel %vm791_vm6, %v725_v58, %v823_v61  ;;  %v728_v3 = vadd.f32 %v7790_v57, %v727_v62  ;;  %vm794_vm8 = vcmp.ge.f32.partialorder %v736_v6, 0.0 }
 0x149   : > { %6833 = vset.pattern.permute.xlu1 %v7544_v50  ;;  %888 = vperm.xlu0 %6835, %v838_v18   ;;  %v815_v40 = vmul.f32 0.01, %v693_v30  ;;  %v7951_v41 = vsel %vm785_vm2, %v701_v22, %v817_v29  ;;  %v704_v44 = vadd.f32 %v6733_v35, %v7790_v57  ;;  %vm783_vm3 = vcmp.ge.f32.partialorder %v693_v30, 0.0  ;;  %v6744_v63 = vpop.f32.mrf.mxu1 }
 0x14a   : > { %953 = vperm.xlu1 %6833, %v851_v13   ;;  %v695_v45 = vpop.f32.mrf.mxu0  ;;  %v824_v7 = vmul.f32 0.01, %v728_v3  ;;  %vm792_vm7 = vcmp.ge.f32.partialorder %v728_v3, 0.0  ;;  %v749_v22 = vadd.f32 %v6744_v63, %v7790_v57 }
 0x14b   : > { %v7960_v47 = vsel %vm783_vm3, %v693_v30, %v815_v40  ;;  %v818_v48 = vmul.f32 0.01, %v704_v44  ;;  %v696_v51 = vadd.f32 %v7790_v57, %v695_v45  ;;  %vm786_vm4 = vcmp.ge.f32.partialorder %v704_v44, 0.0  ;;  %v740_v2 = vpop.f32.mrf.mxu1 }
 0x14c   : > { %v7988_v9 = vsel %vm792_vm7, %v728_v3, %v824_v7  ;;  %v829_v30 = vmul.f32 0.01, %v749_v22  ;;  %vm797_vm13 = vcmp.ge.f32.partialorder %v749_v22, 0.0 }
 0x14d   : > { %878 = vperm.xlu0 %6835, %v7807_v23   ;;  %v7966_v55 = vsel %vm786_vm4, %v704_v44, %v818_v48  ;;  %v816_v56 = vmul.f32 0.01, %v696_v51  ;;  %vm784_vm5 = vcmp.ge.f32.partialorder %v696_v51, 0.0 }
 0x14e   : > { %6834 = vset.pattern.permute.xlu1 %v7545_v5  ;;  %v8020_v37 = vsel %vm797_vm13, %v749_v22, %v829_v30 }
 0x14f   : > { %1096 = vperm.xlu1 %6834, %v851_v13   ;;  %v6932_v13 = vld [vmem:[%s10877_s3 + $0x4] ss:$16 sps:$4 sm:$0xff]   ;;  %v7973_v60 = vsel %vm784_vm5, %v696_v51, %v816_v56 }
 0x150   : > { %1627 = vmatprep.subr.bf16.mxu1 %v6932_v13 }
 0x151   : > { %6845 = vset.pattern.permute.xlu0 %v7543_v49  ;;  %1628 = vmatpush1.bf16.msra.mxu1 %v6930_v17  ;;  %v741_v17 = vadd.f32 %v7790_v57, %v740_v2 }
 0x152   : > { %1216 = vperm.xlu0 %6845, %v7811_v26  }
 0x153   : > { %1044 = vperm.xlu1 %6834, %v838_v18   ;;  %vm795_vm12 = vcmp.ge.f32.partialorder %v741_v17, 0.0 }
 0x156   : > { %1208 = vperm.xlu0 %6845, %v7817_v31  }
 0x157   : > { %6836 = vset.pattern.permute.xlu1 %v7543_v49 }
 0x158   : > { %1204 = vperm.xlu1 %6836, %v838_v18   ;;  %v6933_v18 = vld [vmem:[%s10877_s3 + $0x8] ss:$16 sps:$4 sm:$0xff]  }
 0x159   : > { %1821 = vmatpush1.bf16.msra.mxu0 %v6933_v18 }
 0x15a   : > { %6850 = vset.pattern.permute.xlu0 %v7544_v50 }
 0x15b   : > { %908 = vperm.xlu0 %6850, %v7840_v42  }
 0x15c   : > { %6837 = vset.pattern.permute.xlu1 %v7545_v5 }
 0x15d   : > { %1108 = vperm.xlu1 %6837, %v7858_v52  }
 0x15f   : > { %898 = vperm.xlu0 %6850, %v7860_v53  }
 0x161   : > { %6838 = vset.pattern.permute.xlu1 %v7543_v49 }
 0x162   : > { %1268 = vperm.xlu1 %6838, %v7858_v52  }
 0x163   : > { %6857 = vset.pattern.permute.xlu0 %v7543_v49 }
 0x164   : > { %1232 = vperm.xlu0 %6857, %v7884_v1  }
 0x166   : > { %6839 = vset.pattern.permute.xlu1 %v7545_v5 }
 0x167   : > { %1036 = vperm.xlu1 %6839, %v7807_v23  }
 0x168   : > { %1224 = vperm.xlu0 %6857, %v7902_v10  }
 0x16b   : > { %6840 = vset.pattern.permute.xlu1 %v7543_v49 }
 0x16c   : > { %1196 = vperm.xlu1 %6840, %v7807_v23   ;;  %6860 = vset.pattern.permute.xlu0 %v7544_v50  ;;  %v852_v23 = vsel %vm788_vm1, %v712_v15, %v820_v24  ;;  %v733_v15 = vadd.f32 %v6740_v46, %v7790_v57  ;;  %v827_v24 = vmul.f32 0.01, %v741_v17 }
 0x16d   : > { %928 = vperm.xlu0 %6860, %v7921_v19  }
 0x16e   : > { %v825_v18 = vmul.f32 0.01, %v733_v15  ;;  %vm793_vm11 = vcmp.ge.f32.partialorder %v733_v15, 0.0 }
 0x170   : > { %6841 = vset.pattern.permute.xlu1 %v7545_v5  ;;  %v8010_v25 = vsel %vm793_vm11, %v733_v15, %v825_v18 }
 0x171   : > { %1100 = vperm.xlu1 %6841, %v852_v23   ;;  %918 = vperm.xlu0 %6860, %v7931_v28  }
 0x175   : > { %6842 = vset.pattern.permute.xlu1 %v7543_v49  ;;  %6866 = vset.pattern.permute.xlu0 %v7543_v49 }
 0x176   : > { %1260 = vperm.xlu1 %6842, %v852_v23   ;;  %1248 = vperm.xlu0 %6866, %v7951_v41  }
 0x17a   : > { %6843 = vset.pattern.permute.xlu1 %v7544_v50  ;;  %1240 = vperm.xlu0 %6866, %v7960_v47  }
 0x17b   : > { %903 = vperm.xlu1 %6843, %v7811_v26  }
 0x17e   : > { %6869 = vset.pattern.permute.xlu0 %v7544_v50 }
 0x17f   : > { %6844 = vset.pattern.permute.xlu1 %v7545_v5  ;;  %948 = vperm.xlu0 %6869, %v7966_v55  }
 0x180   : > { %1056 = vperm.xlu1 %6844, %v7811_v26   ;;  %v6745_v26 = vpop.f32.mrf.mxu1 }
 0x181   : > { %v752_v11 = vadd.f32 %v6745_v26, %v7790_v57 }
 0x182   : > { %v743_v4 = vpop.f32.mrf.mxu1 }
 0x183   : > { %938 = vperm.xlu0 %6869, %v7973_v60   ;;  %v744_v8 = vadd.f32 %v7790_v57, %v743_v4  ;;  %vm798_vm10 = vcmp.ge.f32.partialorder %v752_v11, 0.0 }
 0x184   : > { %6846 = vset.pattern.permute.xlu1 %v7544_v50  ;;  %v6748_v20 = vpop.f32.mrf.mxu1 }
 0x185   : > { %893 = vperm.xlu1 %6846, %v7817_v31   ;;  %v828_v12 = vmul.f32 0.01, %v744_v8  ;;  %vm796_vm9 = vcmp.ge.f32.partialorder %v744_v8, 0.0  ;;  %v765_v61 = vadd.f32 %v6748_v20, %v7790_v57  ;;  %v8091_v20 = vand.u32 127, %v867_v21 }
 0x187   : > { %6871 = vset.pattern.permute.xlu0 %v7543_v49  ;;  %v7996_v14 = vsel %vm796_vm9, %v744_v8, %v828_v12  ;;  %v833_v2 = vmul.f32 0.01, %v765_v61  ;;  %vm801_vm2 = vcmp.ge.f32.partialorder %v765_v61, 0.0  ;;  %vm870_vm3 = vcmp.lt.s32.totalorder %v8091_v20, 64 }
 0x188   : > { %1272 = vperm.xlu0 %6871, %v855_v0   ;;  %vm869_vm4 = vcmp.lt.s32.totalorder %v8091_v20, 32 }
 0x189   : > { %6847 = vset.pattern.permute.xlu1 %v7545_v5 }
 0x18a   : > { %1048 = vperm.xlu1 %6847, %v7817_v31   ;;  %v826_v31 = vmul.f32 0.01, %v736_v6 }
 0x18c   : > { %6872 = vset.pattern.permute.xlu0 %v7544_v50  ;;  %v7993_v13 = vsel %vm794_vm8, %v736_v6, %v826_v31 }
 0x18d   : > { %958 = vperm.xlu0 %6872, %v852_v23   ;;  %v8015_v23 = vsel %vm795_vm12, %v741_v17, %v827_v24 }
 0x18e   : > { %6848 = vset.pattern.permute.xlu1 %v7544_v50 }
 0x18f   : > { %973 = vperm.xlu1 %6848, %v855_v0  }
 0x191   : > { %968 = vperm.xlu0 %6872, %v7858_v52   ;;  %v830_v52 = vmul.f32 0.01, %v752_v11 }
 0x193   : > { %6849 = vset.pattern.permute.xlu1 %v7545_v5  ;;  %v8002_v16 = vsel %vm798_vm10, %v752_v11, %v830_v52 }
 0x194   : > { %1112 = vperm.xlu1 %6849, %v855_v0  }
 0x195   : > { %978 = vperm.xlu0 %6872, %v7988_v9  }
 0x198   : > { %1060 = vperm.xlu1 %6849, %v7840_v42  }
 0x199   : > { %988 = vperm.xlu0 %6872, %v7993_v13  }
 0x19c   : > { %6851 = vset.pattern.permute.xlu1 %v7543_v49 }
 0x19d   : > { %1220 = vperm.xlu1 %6851, %v7840_v42   ;;  %998 = vperm.xlu0 %6872, %v7996_v14   ;;  %v756_v42 = vpop.f32.mrf.mxu1 }
 0x19e   : > { %v757_v34 = vadd.f32 %v7790_v57, %v756_v42 }
 0x19f   : > { %v6749_v29 = vpop.f32.mrf.mxu1 }
 0x1a0   : > { %v831_v40 = vmul.f32 0.01, %v757_v34  ;;  %vm799_vm14 = vcmp.ge.f32.partialorder %v757_v34, 0.0  ;;  %v768_v48 = vadd.f32 %v6749_v29, %v7790_v57 }
 0x1a1   : > { %6852 = vset.pattern.permute.xlu1 %v7545_v5  ;;  %1008 = vperm.xlu0 %6872, %v8002_v16   ;;  %v759_v35 = vpop.f32.mrf.mxu1 }
 0x1a2   : > { %1052 = vperm.xlu1 %6852, %v7860_v53   ;;  %v760_v44 = vadd.f32 %v7790_v57, %v759_v35  ;;  %v8029_v46 = vsel %vm799_vm14, %v757_v34, %v831_v40  ;;  %v834_v58 = vmul.f32 0.01, %v768_v48  ;;  %vm802_vm1 = vcmp.ge.f32.partialorder %v768_v48, 0.0  ;;  %v7352_v35 = vld [vmem:[%s7724_s27] sm:$0xff] }
 0x1a4   : > { %v832_v51 = vmul.f32 0.01, %v760_v44  ;;  %vm800_vm15 = vcmp.ge.f32.partialorder %v760_v44, 0.0  ;;  %v8048_v0 = vsel %vm802_vm1, %v768_v48, %v834_v58 }
 0x1a5   : > { %6882 = vset.pattern.permute.xlu0 %v7543_v49 }
 0x1a6   : > { %6853 = vset.pattern.permute.xlu1 %v7543_v49  ;;  %1280 = vperm.xlu0 %6882, %v8010_v25   ;;  %v8039_v59 = vsel %vm800_vm15, %v760_v44, %v832_v51  ;;  %v7353_v44 = vld [vmem:[%s7724_s27 + $0x8] sm:$0xff] }
 0x1a7   : > { %1212 = vperm.xlu1 %6853, %v7860_v53  }
 0x1aa   : > { %1288 = vperm.xlu0 %6882, %v8015_v23  }
 0x1ab   : > { %6854 = vset.pattern.permute.xlu1 %v7545_v5 }
 0x1ac   : > { %1116 = vperm.xlu1 %6854, %v7988_v9  }
 0x1ad   : > { %v8024_v45 = vpop.permute.xlu0 %1200  ;;  %v8026_v53 = vpop.permute.xlu1 %883 }
 0x1ae   : > { %1296 = vperm.xlu0 %6882, %v8020_v37  }
 0x1b0   : > { %6855 = vset.pattern.permute.xlu1 %v7544_v50 }
 0x1b1   : > { %923 = vperm.xlu1 %6855, %v7884_v1   ;;  %v8034_v54 = vpop.permute.xlu0 %1264 }
 0x1b2   : > { %v8036_v56 = vpop.permute.xlu1 %1040  ;;  %1304 = vperm.xlu0 %6882, %v8029_v46  }
 0x1b3   : > { %v1161_v51 = vsel %vm870_vm3, %v8026_v53, %v8036_v56  ;;  %v7354_v56 = vld [vmem:[%s7724_s27 + $0x18] sm:$0xff] }
 0x1b4   : > { %v1321_v53 = vsel %vm869_vm4, %v8024_v45, %v1161_v51  ;;  %v7356_v51 = vld [vmem:[%s7724_s27 + $0x80] sm:$0xff] }
 0x1b5   : > { %6856 = vset.pattern.permute.xlu1 %v7545_v5 }
 0x1b6   : > { %1072 = vperm.xlu1 %6856, %v7884_v1   ;;  %v874_v62 = vpop.permute.xlu0 %873  ;;  %6888 = vset.pattern.permute.xlu0 %v7544_v50  ;;  %v8055_v1 = vsel %vm801_vm2, %v765_v61, %v833_v2 }
 0x1b7   : > { %v8045_v63 = vpop.permute.xlu1 %963  ;;  %1018 = vperm.xlu0 %6888, %v8039_v59  }
 0x1ba   : > { %6858 = vset.pattern.permute.xlu1 %v7544_v50 }
 0x1bb   : > { %913 = vperm.xlu1 %6858, %v7902_v10   ;;  %v1193_v26 = vpop.permute.xlu0 %1192  ;;  %1028 = vperm.xlu0 %6888, %v8048_v0  }
 0x1bc   : > { %v8053_v57 = vpop.permute.xlu1 %1104 }
 0x1bf   : > { %6859 = vset.pattern.permute.xlu1 %v7545_v5  ;;  %v8058_v3 = vpop.permute.xlu0 %1256  ;;  %6892 = vset.pattern.permute.xlu0 %v7543_v49 }
 0x1c0   : > { %1064 = vperm.xlu1 %6859, %v7902_v10   ;;  %v1033_v4 = vpop.permute.xlu1 %1032  ;;  %1312 = vperm.xlu0 %6892, %v8055_v1  }
 0x1c1   : > { %v1159_v24 = vsel %vm870_vm3, %v874_v62, %v1033_v4  ;;  %v7355_v4 = vld [vmem:[%s7724_s27 + $0x10] sm:$0xff] }
 0x1c2   : > { %v1319_v21 = vsel %vm869_vm4, %v1193_v26, %v1159_v24 }
 0x1c3   : > { %v1351_v40 = vmul.f32 %v7352_v35, %v1319_v21 }
 0x1c4   : > { %1076 = vperm.xlu1 %6859, %v7921_v19   ;;  %v889_v6 = vpop.permute.xlu0 %888 }
 0x1c5   : > { %v8064_v7 = vpop.permute.xlu1 %953 }
 0x1c8   : > { %6861 = vset.pattern.permute.xlu1 %v7543_v49  ;;  %v879_v8 = vpop.permute.xlu0 %878 }
 0x1c9   : > { %1236 = vperm.xlu1 %6861, %v7921_v19  }
 0x1ca   : > { %v8068_v31 = vpop.permute.xlu1 %1096 }
 0x1cd   : > { %6862 = vset.pattern.permute.xlu1 %v7545_v5  ;;  %v8071_v11 = vpop.permute.xlu0 %1216 }
 0x1ce   : > { %1068 = vperm.xlu1 %6862, %v7931_v28   ;;  %v1045_v10 = vpop.permute.xlu1 %1044 }
 0x1d1   : > { %v8074_v12 = vpop.permute.xlu0 %1208 }
 0x1d2   : > { %6863 = vset.pattern.permute.xlu1 %v7543_v49 }
 0x1d3   : > { %1228 = vperm.xlu1 %6863, %v7931_v28   ;;  %v1205_v52 = vpop.permute.xlu1 %1204 }
 0x1d6   : > { %v8078_v15 = vpop.permute.xlu0 %908 }
 0x1d7   : > { %6864 = vset.pattern.permute.xlu1 %v7544_v50 }
 0x1d8   : > { %943 = vperm.xlu1 %6864, %v7951_v41   ;;  %v8082_v19 = vpop.permute.xlu1 %1108 }
 0x1da   : > { %v8084_v17 = vpop.permute.xlu0 %898 }
 0x1dc   : > { %6865 = vset.pattern.permute.xlu1 %v7545_v5 }
 0x1dd   : > { %1088 = vperm.xlu1 %6865, %v7951_v41   ;;  %v8088_v18 = vpop.permute.xlu1 %1268 }
 0x1df   : > { %v8093_v28 = vpop.permute.xlu0 %1232 }
 0x1e1   : > { %6867 = vset.pattern.permute.xlu1 %v7544_v50 }
 0x1e2   : > { %933 = vperm.xlu1 %6867, %v7960_v47   ;;  %v1037_v22 = vpop.permute.xlu1 %1036 }
 0x1e3   : > { %v8100_v41 = vpop.permute.xlu0 %1224  ;;  %v1160_v42 = vsel %vm870_vm3, %v879_v8, %v1037_v22 }
 0x1e6   : > { %6868 = vset.pattern.permute.xlu1 %v7545_v5 }
 0x1e7   : > { %1080 = vperm.xlu1 %6868, %v7960_v47   ;;  %v1197_v29 = vpop.permute.xlu1 %1196  ;;  %v1162_v47 = vsel %vm870_vm3, %v889_v6, %v1045_v10  ;;  %v1353_v6 = vmul.f32 %v7355_v4, %v1321_v53 }
 0x1e8   : > { %v1320_v30 = vsel %vm869_vm4, %v1197_v29, %v1160_v42  ;;  %v8111_v34 = vpop.permute.xlu0 %928  ;;  %v1322_v61 = vsel %vm869_vm4, %v1205_v52, %v1162_v47  ;;  %v1175_v29 = vsel %vm870_vm3, %v8064_v7, %v8068_v31  ;;  %v7357_v7 = vld [vmem:[%s7724_s27 + $0x88] sm:$0xff] }
 0x1e9   : > { %v1352_v48 = vmul.f32 %v7353_v44, %v1320_v30  ;;  %v1354_v26 = vmul.f32 %v7354_v56, %v1322_v61 }
 0x1eb   : > { %v1383_v58 = vpack.c.bf16 %v1352_v48, %v1351_v40  ;;  %1092 = vperm.xlu1 %6868, %v7966_v55   ;;  %v1384_v52 = vpack.c.bf16 %v1354_v26, %v1353_v6 }
 0x1ec   : > { %v1101_v62 = vpop.permute.xlu1 %1100  ;;  %v8124_v2 = vpop.permute.xlu0 %918 }
 0x1ed   : > { %6137 = vmatmul.mubr.msk.bf16.vlgmr.msra.gmra.mxu1 %vm561_vm0, %v1383_v58  ;;  %6153 = vmatmul.mubr.msk.bf16.vlgmr.msra.gmra.mxu0 %vm561_vm0, %v1383_v58 }
 0x1ee   : > { %1655 = vmatprep.mubr.bf16.mxu1 %v7543_v49  ;;  %1848 = vmatprep.mubr.bf16.mxu0 %v7543_v49 }
 0x1ef   : > { %6870 = vset.pattern.permute.xlu1 %v7543_v49 }
 0x1f0   : > { %1252 = vperm.xlu1 %6870, %v7966_v55  }
 0x1f1   : > { %v1261_v8 = vpop.permute.xlu1 %1260  ;;  %v8137_v10 = vpop.permute.xlu0 %1248 }
 0x1f4   : > { %1276 = vperm.xlu1 %6870, %v7988_v9  }
 0x1f5   : > { %6138 = vmatmul.mubr.msk.bf16.gmra.mxu1 %vm561_vm0, %v1384_v52  ;;  %6154 = vmatmul.mubr.msk.bf16.gmra.mxu0 %vm561_vm0, %v1384_v52  ;;  %v8142_v45 = vpop.permute.xlu0 %1240  ;;  %v7359_v52 = vld [vmem:[%s7724_s27 + $0x28] sm:$0xff] }
 0x1f6   : > { %v904_v22 = vpop.permute.xlu1 %903  ;;  %1665 = vmatprep.mubr.bf16.mxu1 %v7543_v49  ;;  %1858 = vmatprep.mubr.bf16.mxu0 %v7543_v49 }
 0x1f8   : > { %6873 = vset.pattern.permute.xlu1 %v7544_v50 }
 0x1f9   : > { %983 = vperm.xlu1 %6873, %v8010_v25  }
 0x1fa   : > { %v8148_v55 = vpop.permute.xlu0 %948 }
 0x1fb   : > { %v1057_v24 = vpop.permute.xlu1 %1056 }
 0x1fd   : > { %6874 = vset.pattern.permute.xlu1 %v7545_v5 }
 0x1fe   : > { %1120 = vperm.xlu1 %6874, %v8010_v25   ;;  %v8152_v9 = vpop.permute.xlu0 %938  ;;  %v1335_v25 = vsel %vm869_vm4, %v8058_v3, %v1175_v29  ;;  %v6941_v29 = vld [vmem:[%s10879_s5 + $0x2e4] ss:$16 sps:$4 sm:$0xff]  }
 0x1ff   : > { %v1367_v47 = vmul.f32 %v7356_v51, %v1335_v25  ;;  %3046 = vmatprep.subr.bf16.mxu0 %v6941_v29  ;;  %v6947_v51 = vld [vmem:[%s10879_s5 + $0x2c4] ss:$16 sps:$4 sm:$0xff]  }
 0x200   : > { %v894_v21 = vpop.permute.xlu1 %893  ;;  %v6968_v29 = vld [vmem:[%s10879_s5 + $0x44] ss:$16 sps:$4 sm:$0xff]  }
 0x202   : > { %1084 = vperm.xlu1 %6874, %v7973_v60  }
 0x203   : > { %v8155_v42 = vpop.permute.xlu0 %1272 }
 0x205   : > { %v1049_v30 = vpop.permute.xlu1 %1048 }
 0x206   : > { %6875 = vset.pattern.permute.xlu1 %v7543_v49  ;;  %v1163_v56 = vsel %vm870_vm3, %v894_v21, %v1049_v30  ;;  %v1165_v30 = vsel %vm870_vm3, %v904_v22, %v1057_v24  ;;  %v7360_v22 = vld [vmem:[%s7724_s27 + $0x38] sm:$0xff] }
 0x207   : > { %1244 = vperm.xlu1 %6875, %v7973_v60  }
 0x208   : > { %v959_v35 = vpop.permute.xlu0 %958 }
 0x209   : > { %v1176_v40 = vsel %vm870_vm3, %v959_v35, %v1101_v62 }
 0x20a   : > { %v1336_v44 = vsel %vm869_vm4, %v1261_v8, %v1176_v40  ;;  %v974_v48 = vpop.permute.xlu1 %973 }
 0x20b   : > { %v1368_v31 = vmul.f32 %v7357_v7, %v1336_v44  ;;  %6876 = vset.pattern.permute.xlu1 %v7545_v5  ;;  %v6939_v44 = vld [vmem:[%s10879_s5 + $0x2e0] ss:$16 sps:$4 sm:$0xff]  }
 0x20c   : > { %1124 = vperm.xlu1 %6876, %v7993_v13   ;;  %3047 = vmatpush1.bf16.msra.mxu0 %v6939_v44  ;;  %v7361_v7 = vld [vmem:[%s7724_s27 + $0x30] sm:$0xff] }
 0x20d   : > { %v8174_v60 = vpack.c.bf16 %v1368_v31, %v1367_v47  ;;  %v6945_v47 = vld [vmem:[%s10879_s5 + $0x2c0] ss:$16 sps:$4 sm:$0xff]   ;;  %3048 = vmatprep.subr.bf16.mxu0 %v6947_v51  ;;  %v6977_v44 = vld [vmem:[%s10879_s5 + $0x224] ss:$16 sps:$4 sm:$0xff]  }
 0x20e   : > { %v6983_v51 = vld [vmem:[%s10879_s5 + $0x204] ss:$16 sps:$4 sm:$0xff]  }
 0x20f   : > { %v1113_v58 = vpop.permute.xlu1 %1112 }
 0x210   : > { %v8178_v3 = vsel %vm870_vm3, %v974_v48, %v1113_v58  ;;  %6877 = vset.pattern.permute.xlu1 %v7543_v49  ;;  %v6944_v48 = vld [vmem:[%s10879_s5 + $0xc4] ss:$16 sps:$4 sm:$0xff]   ;;  %3049 = vmatpush1.bf16.msra.mxu0 %v6945_v47 }
 0x211   : > { %1284 = vperm.xlu1 %6877, %v7993_v13   ;;  %v1323_v13 = vsel %vm869_vm4, %v8074_v12, %v1163_v56  ;;  %v6936_v12 = vld [vmem:[%s10879_s5 + $0xe0] ss:$16 sps:$4 sm:$0xff]   ;;  %v6953_v56 = vld [vmem:[%s10879_s5 + $0x2a4] ss:$16 sps:$4 sm:$0xff]  }
 0x212   : > { %3050 = vmatprep.subr.bf16.mxu0 %v6953_v56  ;;  %v6992_v56 = vld [vmem:[%s10879_s5 + $0x1c4] ss:$16 sps:$4 sm:$0xff]  }
 0x213   : > { %v1061_v61 = vpop.permute.xlu1 %1060 }
 0x215   : > { %6878 = vset.pattern.permute.xlu1 %v7544_v50 }
 0x216   : > { %993 = vperm.xlu1 %6878, %v8015_v23  }
 0x218   : > { %v1221_v62 = vpop.permute.xlu1 %1220 }
 0x21a   : > { %6879 = vset.pattern.permute.xlu1 %v7545_v5 }
 0x21b   : > { %1128 = vperm.xlu1 %6879, %v8015_v23   ;;  %v7358_v23 = vld [vmem:[%s7724_s27 + $0x20] sm:$0xff] }
 0x21c   : > { %v1355_v8 = vmul.f32 %v7358_v23, %v1323_v13  ;;  %v6957_v23 = vld [vmem:[%s10879_s5 + $0x280] ss:$16 sps:$4 sm:$0xff]  }
 0x21d   : > { %v1053_v53 = vpop.permute.xlu1 %1052 }
 0x21e   : > { %v1164_v26 = vsel %vm870_vm3, %v8084_v17, %v1053_v53  ;;  %v6938_v17 = vld [vmem:[%s10879_s5 + $0xe4] ss:$16 sps:$4 sm:$0xff]   ;;  %v6948_v53 = vld [vmem:[%s10879_s5 + $0xa0] ss:$16 sps:$4 sm:$0xff]  }
 0x21f   : > { %1132 = vperm.xlu1 %6879, %v7996_v14   ;;  %2853 = vmatprep.subr.bf16.mxu1 %v6938_v17  ;;  %v6963_v17 = vld [vmem:[%s10879_s5 + $0x260] ss:$16 sps:$4 sm:$0xff]  }
 0x220   : > { %2854 = vmatpush1.bf16.msra.mxu1 %v6936_v12  ;;  %v6960_v12 = vld [vmem:[%s10879_s5 + $0x60] ss:$16 sps:$4 sm:$0xff]  }
 0x221   : > { %2855 = vmatprep.subr.bf16.mxu1 %v6944_v48  ;;  %v6980_v48 = vld [vmem:[%s10879_s5 + $0x4] ss:$16 sps:$4 sm:$0xff]  }
 0x222   : > { %v1213_v4 = vpop.permute.xlu1 %1212 }
 0x223   : > { %v1324_v6 = vsel %vm869_vm4, %v1213_v4, %v1164_v26  ;;  %6880 = vset.pattern.permute.xlu1 %v7543_v49  ;;  %v6956_v26 = vld [vmem:[%s10879_s5 + $0x84] ss:$16 sps:$4 sm:$0xff]  }
 0x224   : > { %v1356_v21 = vmul.f32 %v7359_v52, %v1324_v6  ;;  %1292 = vperm.xlu1 %6880, %v7996_v14   ;;  %v1166_v14 = vsel %vm870_vm3, %v8078_v15, %v1061_v61  ;;  %v1325_v15 = vsel %vm869_vm4, %v8071_v11, %v1165_v30  ;;  %v6942_v11 = vld [vmem:[%s10879_s5 + $0xc0] ss:$16 sps:$4 sm:$0xff]   ;;  %v6959_v4 = vld [vmem:[%s10879_s5 + $0x284] ss:$16 sps:$4 sm:$0xff]  }
 0x225   : > { %v1326_v35 = vsel %vm869_vm4, %v1221_v62, %v1166_v14  ;;  %v1357_v31 = vmul.f32 %v7361_v7, %v1325_v15  ;;  %2856 = vmatpush1.bf16.msra.mxu1 %v6942_v11  ;;  %v6950_v62 = vld [vmem:[%s10879_s5 + $0xa4] ss:$16 sps:$4 sm:$0xff]   ;;  %v6954_v6 = vld [vmem:[%s10879_s5 + $0x80] ss:$16 sps:$4 sm:$0xff]  }
 0x226   : > { %v1385_v25 = vpack.c.bf16 %v1356_v21, %v1355_v8  ;;  %v1358_v24 = vmul.f32 %v7360_v22, %v1326_v35  ;;  %2857 = vmatprep.subr.bf16.mxu1 %v6950_v62  ;;  %v6962_v52 = vld [vmem:[%s10879_s5 + $0x64] ss:$16 sps:$4 sm:$0xff]   ;;  %v6966_v14 = vld [vmem:[%s10879_s5 + $0x40] ss:$16 sps:$4 sm:$0xff]  }
 0x227   : > { %v8217_v40 = vpop.permute.xlu1 %1116  ;;  %v6965_v21 = vld [vmem:[%s10879_s5 + $0x264] ss:$16 sps:$4 sm:$0xff]   ;;  %v6972_v22 = vld [vmem:[%s10879_s5 + $0x20] ss:$16 sps:$4 sm:$0xff]  }
 0x228   : > { %6881 = vset.pattern.permute.xlu1 %v7544_v50  ;;  %6139 = vmatmul.mubr.msk.bf16.gmra.mxu1 %vm561_vm0, %v1385_v25  ;;  %v1386_v61 = vpack.c.bf16 %v1358_v24, %v1357_v31  ;;  %v6974_v35 = vld [vmem:[%s10879_s5 + $0x24] ss:$16 sps:$4 sm:$0xff]   ;;  %v6975_v24 = vld [vmem:[%s10879_s5 + $0x220] ss:$16 sps:$4 sm:$0xff]  }
 0x229   : > { %6155 = vmatmul.mubr.msk.bf16.gmra.mxu0 %vm561_vm0, %v1385_v25  ;;  %1003 = vperm.xlu1 %6881, %v8020_v37   ;;  %v6969_v25 = vld [vmem:[%s10879_s5 + $0x240] ss:$16 sps:$4 sm:$0xff]   ;;  %v6986_v7 = vld [vmem:[%s10879_s5 + $0x1e4] ss:$16 sps:$4 sm:$0xff]  }
 0x22a   : > { %1675 = vmatprep.mubr.bf16.mxu1 %v7543_v49  ;;  %1868 = vmatprep.mubr.bf16.mxu0 %v7543_v49  ;;  %v6978_v11 = vld [vmem:[%s10879_s5] ss:$16 sps:$4 sm:$0xff]   ;;  %v6989_v31 = vld [vmem:[%s10879_s5 + $0x3e4] ss:$16 sps:$4 sm:$0xff]  }
 0x22b   : > { %2858 = vmatpush1.bf16.msra.mxu1 %v6948_v53 }
 0x22c   : > { %v8245_v58 = vpop.permute.xlu1 %923  ;;  %2859 = vmatprep.subr.bf16.mxu1 %v6956_v26  ;;  %v6990_v26 = vld [vmem:[%s10879_s5 + $0x1c0] ss:$16 sps:$4 sm:$0xff]  }
 0x22d   : > { %6883 = vset.pattern.permute.xlu1 %v7545_v5 }
 0x22e   : > { %1136 = vperm.xlu1 %6883, %v8020_v37   ;;  %v6951_v37 = vld [vmem:[%s10879_s5 + $0x2a0] ss:$16 sps:$4 sm:$0xff]  }
 0x22f   : > { %3051 = vmatpush1.bf16.msra.mxu0 %v6951_v37  ;;  %2860 = vmatpush1.bf16.msra.mxu1 %v6954_v6  ;;  %v6995_v37 = vld [vmem:[%s10879_s5 + $0x3c4] ss:$16 sps:$4 sm:$0xff]  }
 0x230   : > { %6140 = vmatmul.mubr.msk.bf16.gmra.mxu1 %vm561_vm0, %v1386_v61  ;;  %3052 = vmatprep.subr.bf16.mxu0 %v6959_v4  ;;  %v6993_v4 = vld [vmem:[%s10879_s5 + $0x3c0] ss:$16 sps:$4 sm:$0xff]  }
 0x231   : > { %6156 = vmatmul.mubr.msk.bf16.gmra.mxu0 %vm561_vm0, %v1386_v61  ;;  %v8263_v13 = vpop.permute.xlu1 %1072  ;;  %1685 = vmatprep.mubr.bf16.mxu1 %v7543_v49  ;;  %v6984_v61 = vld [vmem:[%s10879_s5 + $0x1e0] ss:$16 sps:$4 sm:$0xff]  }
 0x232   : > { %1140 = vperm.xlu1 %6883, %v8002_v16   ;;  %1878 = vmatprep.mubr.bf16.mxu0 %v7543_v49 }
 0x233   : > { %3053 = vmatpush1.bf16.msra.mxu0 %v6957_v23  ;;  %2861 = vmatprep.subr.bf16.mxu1 %v6962_v52  ;;  %v7001_v52 = vld [vmem:[%s10879_s5 + $0x3a4] ss:$16 sps:$4 sm:$0xff]  }
 0x234   : > { %3054 = vmatprep.subr.bf16.mxu0 %v6965_v21  ;;  %2862 = vmatpush1.bf16.msra.mxu1 %v6960_v12 }
 0x235   : > { %2863 = vmatprep.subr.bf16.mxu1 %v6968_v29 }
 0x236   : > { %6884 = vset.pattern.permute.xlu1 %v7543_v49  ;;  %v914_v8 = vpop.permute.xlu1 %913 }
 0x237   : > { %1300 = vperm.xlu1 %6884, %v8002_v16   ;;  %v6971_v16 = vld [vmem:[%s10879_s5 + $0x244] ss:$16 sps:$4 sm:$0xff]   ;;  %3055 = vmatpush1.bf16.msra.mxu0 %v6963_v17  ;;  %v7363_v17 = vld [vmem:[%s7724_s27 + $0x48] sm:$0xff] }
 0x238   : > { %3056 = vmatprep.subr.bf16.mxu0 %v6971_v16  ;;  %2864 = vmatpush1.bf16.msra.mxu1 %v6966_v14  ;;  %v1169_v16 = vsel %vm870_vm3, %v8245_v58, %v8263_v13  ;;  %v7004_v58 = vld [vmem:[%s10879_s5 + $0x184] ss:$16 sps:$4 sm:$0xff]   ;;  %v7002_v13 = vld [vmem:[%s10879_s5 + $0x180] ss:$16 sps:$4 sm:$0xff]  }
 0x239   : > { %2865 = vmatprep.subr.bf16.mxu1 %v6974_v35 }
 0x23b   : > { %6885 = vset.pattern.permute.xlu1 %v7544_v50  ;;  %v1065_v30 = vpop.permute.xlu1 %1064  ;;  %3057 = vmatpush1.bf16.msra.mxu0 %v6969_v25  ;;  %v6999_v25 = vld [vmem:[%s10879_s5 + $0x3a0] ss:$16 sps:$4 sm:$0xff]  }
 0x23c   : > { %1013 = vperm.xlu1 %6885, %v8029_v46   ;;  %3058 = vmatprep.subr.bf16.mxu0 %v6977_v44  ;;  %v1167_v53 = vsel %vm870_vm3, %v914_v8, %v1065_v30  ;;  %v6998_v8 = vld [vmem:[%s10879_s5 + $0x1a4] ss:$16 sps:$4 sm:$0xff]  }
 0x23d   : > { %2866 = vmatpush1.bf16.msra.mxu1 %v6972_v22  ;;  %v1327_v6 = vsel %vm869_vm4, %v8100_v41, %v1167_v53  ;;  %v6996_v41 = vld [vmem:[%s10879_s5 + $0x1a0] ss:$16 sps:$4 sm:$0xff]   ;;  %v7010_v22 = vld [vmem:[%s10879_s5 + $0x164] ss:$16 sps:$4 sm:$0xff]  }
 0x23e   : > { %2867 = vmatprep.subr.bf16.mxu1 %v6980_v48  ;;  %v7005_v48 = vld [vmem:[%s10879_s5 + $0x380] ss:$16 sps:$4 sm:$0xff]  }
 0x23f   : > { %v1077_v15 = vpop.permute.xlu1 %1076  ;;  %3059 = vmatpush1.bf16.msra.mxu0 %v6975_v24  ;;  %v7364_v24 = vld [vmem:[%s7724_s27 + $0x58] sm:$0xff]  ;;  %v7017_v53 = vld [vmem:[%s10879_s5 + $0x340] ss:$16 sps:$4 sm:$0xff]  }
 0x240   : > { %6886 = vset.pattern.permute.xlu1 %v7545_v5  ;;  %3060 = vmatprep.subr.bf16.mxu0 %v6983_v51  ;;  %v1170_v30 = vsel %vm870_vm3, %v8111_v34, %v1077_v15  ;;  %v7007_v34 = vld [vmem:[%s10879_s5 + $0x384] ss:$16 sps:$4 sm:$0xff]   ;;  %v1329_v15 = vsel %vm869_vm4, %v8093_v28, %v1169_v16 }
 0x241   : > { %1144 = vperm.xlu1 %6886, %v8029_v46   ;;  %v6981_v46 = vld [vmem:[%s10879_s5 + $0x200] ss:$16 sps:$4 sm:$0xff]   ;;  %2868 = vmatpush1.bf16.msra.mxu1 %v6978_v11  ;;  %v7013_v28 = vld [vmem:[%s10879_s5 + $0x364] ss:$16 sps:$4 sm:$0xff]  }
 0x242   : > { %2869 = vmatprep.subr.bf16.mxu1 %v6986_v7  ;;  %v7365_v51 = vld [vmem:[%s7724_s27 + $0x50] sm:$0xff] }
 0x243   : > { %3061 = vmatpush1.bf16.msra.mxu0 %v6981_v46  ;;  %v1361_v11 = vmul.f32 %v7365_v51, %v1329_v15  ;;  %v7008_v7 = vld [vmem:[%s10879_s5 + $0x160] ss:$16 sps:$4 sm:$0xff]  }
 0x244   : > { %v1237_v47 = vpop.permute.xlu1 %1236  ;;  %3062 = vmatprep.subr.bf16.mxu0 %v6989_v31  ;;  %v7011_v31 = vld [vmem:[%s10879_s5 + $0x360] ss:$16 sps:$4 sm:$0xff]  }
 0x245   : > { %6887 = vset.pattern.permute.xlu1 %v7544_v50  ;;  %v6987_v50 = vld [vmem:[%s10879_s5 + $0x3e0] ss:$16 sps:$4 sm:$0xff]   ;;  %2870 = vmatpush2.bf16.msra.mxu1 %v6984_v61  ;;  %v1330_v35 = vsel %vm869_vm4, %v1237_v47, %v1170_v30 }
 0x246   : > { %1023 = vperm.xlu1 %6887, %v8055_v1   ;;  %2871 = vmatprep.subr.bf16.mxu1 %v6992_v56  ;;  %v7022_v56 = vld [vmem:[%s10879_s5 + $0x124] ss:$16 sps:$4 sm:$0xff]  }
 0x247   : > { %3063 = vmatpush2.bf16.msra.mxu0 %v6987_v50  ;;  %v7019_v50 = vld [vmem:[%s10879_s5 + $0x344] ss:$16 sps:$4 sm:$0xff]  }
 0x248   : > { %3064 = vmatprep.subr.bf16.mxu0 %v6995_v37  ;;  %v7366_v30 = vld [vmem:[%s7724_s27 + $0xa0] sm:$0xff] }
 0x249   : > { %v1069_v62 = vpop.permute.xlu1 %1068  ;;  %2872 = vmatpush2.bf16.msra.mxu1 %v6990_v26  ;;  %v7020_v26 = vld [vmem:[%s10879_s5 + $0x120] ss:$16 sps:$4 sm:$0xff]  }
 0x24a   : > { %6889 = vset.pattern.permute.xlu1 %v7545_v5  ;;  %2873 = vmatprep.subr.bf16.mxu1 %v6998_v8  ;;  %v7026_v8 = vld [vmem:[%s10879_s5 + $0x100] ss:$16 sps:$4 sm:$0xff]  }
 0x24b   : > { %1152 = vperm.xlu1 %6889, %v8055_v1   ;;  %v1168_v1 = vsel %vm870_vm3, %v8124_v2, %v1069_v62  ;;  %v7362_v2 = vld [vmem:[%s7724_s27 + $0x40] sm:$0xff]  ;;  %3065 = vmatpush2.bf16.msra.mxu0 %v6993_v4 }
 0x24c   : > { %v1359_v12 = vmul.f32 %v7362_v2, %v1327_v6  ;;  %3066 = vmatprep.subr.bf16.mxu0 %v7001_v52  ;;  %v7014_v62 = vld [vmem:[%s10879_s5 + $0x140] ss:$16 sps:$4 sm:$0xff]   ;;  %v7028_v6 = vld [vmem:[%s10879_s5 + $0x104] ss:$16 sps:$4 sm:$0xff]   ;;  %v969_v52 = vpop.permute.xlu0 %968  ;;  %v1339_v2 = vsel %vm869_vm4, %v8155_v42, %v8178_v3 }
 0x24d   : > { %2874 = vmatpush2.bf16.msra.mxu1 %v6996_v41  ;;  %v7023_v4 = vld [vmem:[%s10879_s5 + $0x320] ss:$16 sps:$4 sm:$0xff]  }
 0x24e   : > { %v1229_v23 = vpop.permute.xlu1 %1228  ;;  %2875 = vmatprep.subr.bf16.mxu1 %v7004_v58 }
 0x24f   : > { %v1328_v21 = vsel %vm869_vm4, %v1229_v23, %v1168_v1  ;;  %1148 = vperm.xlu1 %6889, %v8039_v59   ;;  %3067 = vmatpush2.bf16.msra.mxu0 %v6999_v25  ;;  %v7031_v1 = vld [vmem:[%s10879_s5 + $0x304] ss:$16 sps:$4 sm:$0xff]   ;;  %v7367_v25 = vld [vmem:[%s7724_s27 + $0xa8] sm:$0xff] }
 0x250   : > { %v1360_v29 = vmul.f32 %v7363_v17, %v1328_v21  ;;  %3068 = vmatprep.subr.bf16.mxu0 %v7007_v34  ;;  %v7029_v21 = vld [vmem:[%s10879_s5 + $0x300] ss:$16 sps:$4 sm:$0xff]  }
 0x251   : > { %2876 = vmatpush2.bf16.msra.mxu1 %v7002_v13 }
 0x252   : > { %v1387_v14 = vpack.c.bf16 %v1360_v29, %v1359_v12  ;;  %2877 = vmatprep.subr.bf16.mxu1 %v7010_v22  ;;  %v979_v12 = vpop.permute.xlu0 %978 }
 0x253   : > { %6890 = vset.pattern.permute.xlu1 %v7543_v49  ;;  %v8397_v44 = vpop.permute.xlu1 %943  ;;  %3069 = vmatpush2.bf16.msra.mxu0 %v7005_v48  ;;  %v1180_v17 = vsel %vm870_vm3, %v979_v12, %v8217_v40 }
 0x254   : > { %1308 = vperm.xlu1 %6890, %v8039_v59   ;;  %6141 = vmatmul.mubr.msk.bf16.gmra.mxu1 %vm561_vm0, %v1387_v14  ;;  %v1362_v59 = vmul.f32 %v7364_v24, %v1330_v35 }
 0x255   : > { %6157 = vmatmul.mubr.msk.bf16.gmra.mxu0 %vm561_vm0, %v1387_v14  ;;  %1695 = vmatprep.mubr.bf16.mxu1 %v7543_v49  ;;  %v1371_v14 = vmul.f32 %v7366_v30, %v1339_v2  ;;  %v7037_v30 = vld [vmem:[%s10879_s5 + $0x2ec] ss:$16 sps:$4 sm:$0xff]  }
 0x256   : > { %1888 = vmatprep.mubr.bf16.mxu0 %v7543_v49  ;;  %v1388_v46 = vpack.c.bf16 %v1362_v59, %v1361_v11  ;;  %3070 = vmatprep.subr.bf16.mxu0 %v7013_v28  ;;  %v7368_v59 = vld [vmem:[%s7724_s27 + $0x60] sm:$0xff]  ;;  %v7369_v28 = vld [vmem:[%s7724_s27 + $0x68] sm:$0xff] }
 0x257   : > { %2878 = vmatpush2.bf16.msra.mxu1 %v7008_v7  ;;  %3071 = vmatpush2.bf16.msra.mxu0 %v7011_v31 }
 0x258   : > { %6891 = vset.pattern.permute.xlu1 %v7545_v5  ;;  %v8428_v47 = vpop.permute.xlu1 %1088  ;;  %v7016_v5 = vld [vmem:[%s10879_s5 + $0x144] ss:$16 sps:$4 sm:$0xff]   ;;  %3072 = vmatprep.subr.bf16.mxu0 %v7019_v50 }
 0x259   : > { %1156 = vperm.xlu1 %6891, %v8048_v0   ;;  %2879 = vmatprep.subr.bf16.mxu1 %v7016_v5  ;;  %v1173_v11 = vsel %vm870_vm3, %v8397_v44, %v8428_v47  ;;  %v7370_v44 = vld [vmem:[%s7724_s27 + $0x78] sm:$0xff] }
 0x25a   : > { %v1333_v31 = vsel %vm869_vm4, %v8137_v10, %v1173_v11  ;;  %v1178_v10 = vsel %vm870_vm3, %v969_v52, %v8082_v19 }
 0x25b   : > { %2880 = vmatpush2.bf16.msra.mxu1 %v7014_v62  ;;  %3073 = vmatpush2.bf16.msra.mxu0 %v7017_v53  ;;  %v1177_v53 = vsel %vm870_vm3, %v8045_v63, %v8053_v57  ;;  %v7372_v63 = vld [vmem:[%s7724_s27 + $0x98] sm:$0xff] }
 0x25c   : > { %6142 = vmatmul.mubr.msk.bf16.gmra.mxu1 %vm561_vm0, %v1388_v46  ;;  %2881 = vmatprep.subr.bf16.mxu1 %v7022_v56  ;;  %v989_v56 = vpop.permute.xlu0 %988  ;;  %v1337_v19 = vsel %vm869_vm4, %v8034_v54, %v1177_v53 }
 0x25d   : > { %6158 = vmatmul.mubr.msk.bf16.gmra.mxu0 %vm561_vm0, %v1388_v46  ;;  %6893 = vset.pattern.permute.xlu1 %v7543_v49  ;;  %v934_v61 = vpop.permute.xlu1 %933 }
 0x25e   : > { %1316 = vperm.xlu1 %6893, %v8048_v0   ;;  %1705 = vmatprep.mubr.bf16.mxu1 %v7543_v49  ;;  %v7025_v0 = vld [vmem:[%s10879_s5 + $0x324] ss:$16 sps:$4 sm:$0xff]  }
 0x25f   : > { %1898 = vmatprep.mubr.bf16.mxu0 %v7543_v49  ;;  %3074 = vmatprep.subr.bf16.mxu0 %v7025_v0 }
 0x260   : > { %2882 = vmatpush2.bf16.msra.mxu1 %v7020_v26  ;;  %3075 = vmatpush2.bf16.msra.mxu0 %v7023_v4  ;;  %v7373_v4 = vld [vmem:[%s7724_s27 + $0x90] sm:$0xff] }
 0x261   : > { %2883 = vmatprep.subr.bf16.mxu1 %v7028_v6  ;;  %3076 = vmatprep.subr.bf16.mxu0 %v7031_v1  ;;  %v1369_v6 = vmul.f32 %v7373_v4, %v1337_v19 }
 0x262   : > { %v1081_v37 = vpop.permute.xlu1 %1080 }
 0x263   : > { %v1171_v3 = vsel %vm870_vm3, %v934_v61, %v1081_v37  ;;  %v1338_v37 = vsel %vm869_vm4, %v8088_v18, %v1178_v10  ;;  %v999_v18 = vpop.permute.xlu0 %998 }
 0x264   : > { %2884 = vmatpush2.bf16.msra.mxu1 %v7026_v8  ;;  %3077 = vmatpush2.bf16.msra.mxu0 %v7029_v21  ;;  %v1331_v40 = vsel %vm869_vm4, %v8142_v45, %v1171_v3  ;;  %v1370_v57 = vmul.f32 %v7372_v63, %v1338_v37 }
 0x265   : > { %v1363_v48 = vmul.f32 %v7368_v59, %v1331_v40  ;;  %3432 = vmatprep.subr.bf16.mxu0 %v7037_v30  ;;  %v7377_v59 = vld [vmem:[%s7724_s27 + $0xc0] sm:$0xff] }
 0x266   : > { %v1093_v23 = vpop.permute.xlu1 %1092  ;;  %v1392_v1 = vpack.c.bf16 %v1370_v57, %v1369_v6 }
 0x267   : > { %v1174_v45 = vsel %vm870_vm3, %v8148_v55, %v1093_v23  ;;  %v7371_v55 = vld [vmem:[%s7724_s27 + $0x70] sm:$0xff]  ;;  %v1009_v54 = vpop.permute.xlu0 %1008 }
 0x268   : > { %v1365_v5 = vmul.f32 %v7371_v55, %v1333_v31  ;;  %v7378_v31 = vld [vmem:[%s7724_s27 + $0xd8] sm:$0xff] }
 0x26b   : > { %v1253_v41 = vpop.permute.xlu1 %1252 }
 0x26c   : > { %v1334_v46 = vsel %vm869_vm4, %v1253_v41, %v1174_v45  ;;  %v1281_v41 = vpop.permute.xlu0 %1280 }
 0x26d   : > { %v1366_v47 = vmul.f32 %v7370_v44, %v1334_v46 }
 0x26f   : > { %v1277_v29 = vpop.permute.xlu1 %1276  ;;  %v1390_v50 = vpack.c.bf16 %v1366_v47, %v1365_v5  ;;  %v7379_v47 = vld [vmem:[%s7724_s27 + $0xd0] sm:$0xff] }
 0x270   : > { %v1340_v16 = vsel %vm869_vm4, %v1277_v29, %v1180_v17  ;;  %v7034_v17 = vld [vmem:[%s10879_s5 + $0xec] ss:$16 sps:$4 sm:$0xff]   ;;  %v1289_v3 = vpop.permute.xlu0 %1288 }
 0x271   : > { %v1372_v35 = vmul.f32 %v7367_v25, %v1340_v16  ;;  %v7374_v29 = vld [vmem:[%s7724_s27 + $0xb8] sm:$0xff]  ;;  %3239 = vmatprep.subr.bf16.mxu1 %v7034_v17 }
 0x273   : > { %v8490_v58 = vpack.c.bf16 %v1372_v35, %v1371_v14  ;;  %v7375_v14 = vld [vmem:[%s7724_s27 + $0xb0] sm:$0xff] }
 0x274   : > { %v984_v34 = vpop.permute.xlu1 %983  ;;  %v1297_v46 = vpop.permute.xlu0 %1296 }
 0x278   : > { %v1305_v10 = vpop.permute.xlu0 %1304 }
 0x279   : > { %v1121_v13 = vpop.permute.xlu1 %1120 }
 0x27a   : > { %v1181_v8 = vsel %vm870_vm3, %v984_v34, %v1121_v13 }
 0x27b   : > { %v1341_v2 = vsel %vm869_vm4, %v1281_v41, %v1181_v8  ;;  %v7381_v41 = vld [vmem:[%s7724_s27 + $0xe8] sm:$0xff] }
 0x27c   : > { %v1373_v25 = vmul.f32 %v7375_v14, %v1341_v2  ;;  %v1019_v19 = vpop.permute.xlu0 %1018 }
 0x27d   : > { %v1085_v42 = vpop.permute.xlu1 %1084 }
 0x27e   : > { %v1172_v15 = vsel %vm870_vm3, %v8152_v9, %v1085_v42 }
 0x282   : > { %v1245_v22 = vpop.permute.xlu1 %1244 }
 0x283   : > { %v1332_v24 = vsel %vm869_vm4, %v1245_v22, %v1172_v15  ;;  %v7376_v15 = vld [vmem:[%s7724_s27 + $0xc8] sm:$0xff] }
 0x284   : > { %v1364_v51 = vmul.f32 %v7369_v28, %v1332_v24 }
 0x286   : > { %v1389_v9 = vpack.c.bf16 %v1364_v51, %v1363_v48 }
 0x287   : > { %v1125_v7 = vpop.permute.xlu1 %1124 }
 0x288   : > { %6143 = vmatmul.mubr.msk.bf16.gmra.mxu1 %vm561_vm0, %v1389_v9  ;;  %6159 = vmatmul.mubr.msk.bf16.gmra.mxu0 %vm561_vm0, %v1389_v9  ;;  %v1182_v52 = vsel %vm870_vm3, %v989_v56, %v1125_v7 }
 0x289   : > { %1715 = vmatprep.mubr.bf16.mxu1 %v7543_v49  ;;  %1908 = vmatprep.mubr.bf16.mxu0 %v7543_v49 }
 0x28c   : > { %v1285_v61 = vpop.permute.xlu1 %1284 }
 0x28d   : > { %v1342_v21 = vsel %vm869_vm4, %v1285_v61, %v1182_v52  ;;  %v7380_v52 = vld [vmem:[%s7724_s27 + $0xe0] sm:$0xff] }
 0x28e   : > { %v1374_v16 = vmul.f32 %v7374_v29, %v1342_v21 }
 0x290   : > { %6144 = vmatmul.mubr.msk.bf16.gmra.mxu1 %vm561_vm0, %v1390_v50  ;;  %6160 = vmatmul.mubr.msk.bf16.gmra.mxu0 %vm561_vm0, %v1390_v50 }
 0x291   : > { %v994_v62 = vpop.permute.xlu1 %993  ;;  %1725 = vmatprep.mubr.bf16.mxu1 %v7543_v49  ;;  %1918 = vmatprep.mubr.bf16.mxu0 %v7543_v49 }
 0x296   : > { %v1129_v0 = vpop.permute.xlu1 %1128 }
 0x297   : > { %v1183_v34 = vsel %vm870_vm3, %v994_v62, %v1129_v0 }
 0x298   : > { %6145 = vmatmul.mubr.msk.bf16.gmra.mxu1 %vm561_vm0, %v8174_v60  ;;  %6161 = vmatmul.mubr.msk.bf16.gmra.mxu0 %vm561_vm0, %v8174_v60  ;;  %v1343_v40 = vsel %vm869_vm4, %v1289_v3, %v1183_v34 }
 0x299   : > { %1735 = vmatprep.mubr.bf16.mxu1 %v7543_v49  ;;  %1928 = vmatprep.mubr.bf16.mxu0 %v7543_v49  ;;  %v1375_v48 = vmul.f32 %v7377_v59, %v1343_v40  ;;  %v8647_v59 = vsub.s32 0, %v7928_v27 }
 0x29a   : > { %v1133_v26 = vpop.permute.xlu1 %1132 }
 0x29b   : > { %v1184_v13 = vsel %vm870_vm3, %v999_v18, %v1133_v26  ;;  %10942 = vst [vmem:[#allocation19_spill] sm:$0xff] %v8647_v59 }
 0x29f   : > { %v1293_v23 = vpop.permute.xlu1 %1292 }
 0x2a0   : > { %6146 = vmatmul.mubr.msk.bf16.gmra.mxu1 %vm561_vm0, %v1392_v1  ;;  %6162 = vmatmul.mubr.msk.bf16.gmra.mxu0 %vm561_vm0, %v1392_v1  ;;  %v1344_v42 = vsel %vm869_vm4, %v1293_v23, %v1184_v13 }
 0x2a1   : > { %1745 = vmatprep.mubr.bf16.mxu1 %v7543_v49  ;;  %1938 = vmatprep.mubr.bf16.mxu0 %v7543_v49  ;;  %v1376_v22 = vmul.f32 %v7376_v15, %v1344_v42 }
 0x2a3   : > { %v1395_v28 = vpack.c.bf16 %v1376_v22, %v1375_v48 }
 0x2a4   : > { %v1004_v60 = vpop.permute.xlu1 %1003 }
 0x2a8   : > { %6147 = vmatmul.mubr.msk.bf16.gmra.mxu1 %vm561_vm0, %v8490_v58  ;;  %6163 = vmatmul.mubr.msk.bf16.gmra.mxu0 %vm561_vm0, %v8490_v58  ;;  %v1394_v58 = vpack.c.bf16 %v1374_v16, %v1373_v25  ;;  %v8624_v16 = vsub.s32 1, %v7928_v27 }
 0x2a9   : > { %v1137_v12 = vpop.permute.xlu1 %1136  ;;  %1755 = vmatprep.mubr.bf16.mxu1 %v7543_v49  ;;  %1948 = vmatprep.mubr.bf16.mxu0 %v7543_v49 }
 0x2aa   : > { %v1185_v51 = vsel %vm870_vm3, %v1004_v60, %v1137_v12  ;;  %v1029_v60 = vpop.permute.xlu0 %1028  ;;  %10941 = vst [vmem:[#allocation18_spill] sm:$0xff] %v8624_v16 }
 0x2ab   : > { %v1345_v7 = vsel %vm869_vm4, %v1297_v46, %v1185_v51 }
 0x2ac   : > { %v1377_v55 = vmul.f32 %v7379_v47, %v1345_v7 }
 0x2ad   : > { %v1141_v35 = vpop.permute.xlu1 %1140  ;;  %v8605_v62 = vpop.f32.mrf.mxu1 }
 0x2ae   : > { %v1186_v11 = vsel %vm870_vm3, %v1009_v54, %v1141_v35  ;;  %v8607_v53 = vpop.f32.mrf.mxu0  ;;  %v1313_v25 = vpop.permute.xlu0 %1312  ;;  %v1423_v35 = vld [vmem:[#allocation5] sm:$0xf] }
 0x2af   : > { %v1649_v56 = vpop.f32.mrf.mxu1  ;;  %v8633_v13 = vrot.slane %v1423_v35, %v8624_v16  ;;  %v8636_v42 = vrot.slane %v1423_v35, %v7939_v33  ;;  %v8658_v20 = vrot.slane %v1423_v35, %v8647_v59  ;;  %v8661_v27 = vrot.slane %v1423_v35, %v7935_v32 }
 0x2b0   : > { %6148 = vmatmul.mubr.msk.bf16.gmra.mxu1 %vm561_vm0, %v1394_v58  ;;  %6164 = vmatmul.mubr.msk.bf16.gmra.mxu0 %vm561_vm0, %v1394_v58  ;;  %v1842_v37 = vpop.f32.mrf.mxu0 }
 0x2b1   : > { %1765 = vmatprep.mubr.bf16.mxu1 %v7543_v49  ;;  %1958 = vmatprep.mubr.bf16.mxu0 %v7543_v49  ;;  %v1651_v63 = vpop.f32.mrf.mxu1  ;;  %v1843_v46 = vadd.f32 %v1842_v37, %v8636_v42  ;;  %v1648_v32 = vadd.f32 %v8605_v62, %v8658_v20 }
 0x2b2   : > { %v1301_v24 = vpop.permute.xlu1 %1300  ;;  %v1844_v26 = vpop.f32.mrf.mxu0 }
 0x2b3   : > { %v1346_v45 = vsel %vm869_vm4, %v1301_v24, %v1186_v11  ;;  %v1653_v6 = vpop.f32.mrf.mxu1  ;;  %v7383_v11 = vld [vmem:[%s7724_s27 + $0xf8] sm:$0xff] }
 0x2b4   : > { %v1378_v44 = vmul.f32 %v7378_v31, %v1346_v45  ;;  %v1846_v1 = vpop.f32.mrf.mxu0  ;;  %v1654_v22 = vadd.f32 %v1653_v6, %v8633_v13  ;;  %v7043_v6 = vld [vmem:[%s10879_s5 + $0x2cc] ss:$16 sps:$4 sm:$0xff]  }
 0x2b5   : > { %v8619_v12 = vpop.f32.mrf.mxu1 }
 0x2b6   : > { %v1396_v61 = vpack.c.bf16 %v1378_v44, %v1377_v55  ;;  %v8621_v17 = vpop.f32.mrf.mxu0 }
 0x2b7   : > { %v1014_v9 = vpop.permute.xlu1 %1013  ;;  %v1659_v58 = vpop.f32.mrf.mxu1 }
 0x2b8   : > { %6149 = vmatmul.mubr.msk.bf16.gmra.mxu1 %vm561_vm0, %v1395_v28  ;;  %6165 = vmatmul.mubr.msk.bf16.gmra.mxu0 %vm561_vm0, %v1395_v28  ;;  %v1852_v34 = vpop.f32.mrf.mxu0  ;;  %v7382_v28 = vld [vmem:[%s7724_s27 + $0xf0] sm:$0xff] }
 0x2b9   : > { %1775 = vmatprep.mubr.bf16.mxu1 %v7543_v49  ;;  %1968 = vmatprep.mubr.bf16.mxu0 %v7543_v49  ;;  %v1661_v48 = vpop.f32.mrf.mxu1  ;;  %v1853_v37 = vadd.f32 %v1852_v34, %v8636_v42  ;;  %v7044_v34 = vld [vmem:[%s10879_s5 + $0xa8] ss:$16 sps:$4 sm:$0xff]  }
 0x2ba   : > { %v1854_v33 = vpop.f32.mrf.mxu0 }
 0x2bb   : > { %v1663_v47 = vpop.f32.mrf.mxu1 }
 0x2bc   : > { %v1145_v5 = vpop.permute.xlu1 %1144  ;;  %v1856_v55 = vpop.f32.mrf.mxu0 }
 0x2bd   : > { %v1187_v4 = vsel %vm870_vm3, %v1014_v9, %v1145_v5  ;;  %v1650_v9 = vadd.f32 %v1649_v56, %v8633_v13  ;;  %v1652_v5 = vadd.f32 %v1651_v63, %v8658_v20  ;;  %v1841_v56 = vadd.f32 %v8607_v53, %v8661_v27  ;;  %v7032_v63 = vld [vmem:[%s10879_s5 + $0xe8] ss:$16 sps:$4 sm:$0xff]   ;;  %v7040_v53 = vld [vmem:[%s10879_s5 + $0xcc] ss:$16 sps:$4 sm:$0xff]  }
 0x2be   : > { %v1347_v18 = vsel %vm869_vm4, %v1305_v10, %v1187_v4  ;;  %v1857_v10 = vadd.f32 %v1856_v55, %v8636_v42  ;;  %v7058_v55 = vld [vmem:[%s10879_s5 + $0x6c] ss:$16 sps:$4 sm:$0xff]  }
 0x2bf   : > { %v1379_v21 = vmul.f32 %v7380_v52, %v1347_v18  ;;  %v8653_v31 = vpack.c.bf16 %v1654_v22, %v1650_v9  ;;  %v7050_v9 = vld [vmem:[%s10879_s5 + $0x88] ss:$16 sps:$4 sm:$0xff]  }
 0x2c0   : > { %6150 = vmatmul.mubr.msk.bf16.gmra.mxu1 %vm561_vm0, %v1396_v61  ;;  %6166 = vmatmul.mubr.msk.bf16.gmra.mxu0 %vm561_vm0, %v1396_v61  ;;  %v1845_v61 = vadd.f32 %v1844_v26, %v8661_v27  ;;  %v7035_v26 = vld [vmem:[%s10879_s5 + $0x2e8] ss:$16 sps:$4 sm:$0xff]   ;;  %v8689_v4 = vpack.c.bf16 %v1857_v10, %v1853_v37 }
 0x2c1   : > { %v1024_v50 = vpop.permute.xlu1 %1023  ;;  %1785 = vmatprep.mubr.bf16.mxu1 %v7543_v49  ;;  %1978 = vmatprep.mubr.bf16.mxu0 %v7543_v49 }
 0x2c6   : > { %v1153_v0 = vpop.permute.xlu1 %1152 }
 0x2c7   : > { %v1189_v14 = vsel %vm870_vm3, %v1024_v50, %v1153_v0  ;;  %v1664_v50 = vadd.f32 %v1663_v47, %v8633_v13  ;;  %v1660_v0 = vadd.f32 %v1659_v58, %v8633_v13 }
 0x2c8   : > { %v1349_v3 = vsel %vm869_vm4, %v1313_v25, %v1189_v14 }
 0x2c9   : > { %v1381_v51 = vmul.f32 %v7382_v28, %v1349_v3  ;;  %v8687_v62 = vpack.c.bf16 %v1664_v50, %v1660_v0 }
 0x2ca   : > { %v1149_v57 = vpop.permute.xlu1 %1148 }
 0x2cb   : > { %v1188_v23 = vsel %vm870_vm3, %v1019_v19, %v1149_v57  ;;  %v8677_v19 = vpack.c.bf16 %v1652_v5, %v1648_v32  ;;  %v8679_v57 = vpack.c.bf16 %v1845_v61, %v1841_v56  ;;  %v7061_v5 = vld [vmem:[%s10879_s5 + $0x26c] ss:$16 sps:$4 sm:$0xff]  }
 0x2cf   : > { %v1309_v54 = vpop.permute.xlu1 %1308 }
 0x2d0   : > { %v1348_v8 = vsel %vm869_vm4, %v1309_v54, %v1188_v23  ;;  %v1855_v23 = vadd.f32 %v1854_v33, %v8661_v27 }
 0x2d1   : > { %v1380_v2 = vmul.f32 %v7381_v41, %v1348_v8  ;;  %v7041_v8 = vld [vmem:[%s10879_s5 + $0x2c8] ss:$16 sps:$4 sm:$0xff]   ;;  %v7049_v41 = vld [vmem:[%s10879_s5 + $0x2ac] ss:$16 sps:$4 sm:$0xff]  }
 0x2d3   : > { %v1397_v29 = vpack.c.bf16 %v1380_v2, %v1379_v21  ;;  %v7046_v21 = vld [vmem:[%s10879_s5 + $0xac] ss:$16 sps:$4 sm:$0xff]   ;;  %v1658_v2 = vadd.f32 %v8619_v12, %v8658_v20  ;;  %v7047_v12 = vld [vmem:[%s10879_s5 + $0x2a8] ss:$16 sps:$4 sm:$0xff]  }
 0x2d4   : > { %v1157_v30 = vpop.permute.xlu1 %1156 }
 0x2d5   : > { %6151 = vmatmul.mubr.msk.bf16.gmra.mxu1 %vm561_vm0, %v1397_v29  ;;  %6167 = vmatmul.mubr.msk.bf16.gmra.mxu0 %vm561_vm0, %v1397_v29  ;;  %v1190_v40 = vsel %vm870_vm3, %v1029_v60, %v1157_v30  ;;  %v7038_v60 = vld [vmem:[%s10879_s5 + $0xc8] ss:$16 sps:$4 sm:$0xff]   ;;  %v1851_v29 = vadd.f32 %v8621_v17, %v8661_v27  ;;  %v7052_v17 = vld [vmem:[%s10879_s5 + $0x8c] ss:$16 sps:$4 sm:$0xff]  }
 0x2d6   : > { %1795 = vmatprep.mubr.bf16.mxu1 %v7543_v49  ;;  %1988 = vmatprep.mubr.bf16.mxu0 %v7543_v49  ;;  %v1847_v49 = vadd.f32 %v1846_v1, %v8636_v42  ;;  %v1662_v1 = vadd.f32 %v1661_v48, %v8658_v20 }
 0x2d7   : > { %v8721_v35 = vpack.c.bf16 %v1855_v23, %v1851_v29  ;;  %v7065_v29 = vld [vmem:[%s10879_s5 + $0x248] ss:$16 sps:$4 sm:$0xff]  }
 0x2d8   : > { %v8655_v44 = vpack.c.bf16 %v1847_v49, %v1843_v46  ;;  %v8719_v25 = vpack.c.bf16 %v1662_v1, %v1658_v2  ;;  %v7053_v46 = vld [vmem:[%s10879_s5 + $0x288] ss:$16 sps:$4 sm:$0xff]  }
 0x2d9   : > { %v1317_v15 = vpop.permute.xlu1 %1316  ;;  %v7062_v2 = vld [vmem:[%s10879_s5 + $0x48] ss:$16 sps:$4 sm:$0xff]  }
 0x2da   : > { %v1350_v24 = vsel %vm869_vm4, %v1317_v15, %v1190_v40  ;;  %v7055_v40 = vld [vmem:[%s10879_s5 + $0x28c] ss:$16 sps:$4 sm:$0xff]  }
 0x2db   : > { %v1382_v45 = vmul.f32 %v7383_v11, %v1350_v24 }
 0x2dd   : > { %v1398_v7 = vpack.c.bf16 %v1382_v45, %v1381_v51 }
 0x2df   : > { %6152 = vmatmul.mubr.msk.bf16.gmra.mxu1 %vm561_vm0, %v1398_v7  ;;  %6168 = vmatmul.mubr.msk.bf16.gmra.mxu0 %vm561_vm0, %v1398_v7  ;;  %vm5932_vm0 = vcmask 7168  }
 0x2e0   : > { %2885 = vmatprep.mubr.bf16.mxu1 %v8653_v31  ;;  %3078 = vmatprep.mubr.bf16.mxu0 %v8655_v44 }
 0x2e7   : > { %2886 = vmatmul.mubr.bf16.vlgmr.msra.gmra.mxu1 %v8677_v19  ;;  %3079 = vmatmul.mubr.bf16.vlgmr.msra.gmra.mxu0 %v8679_v57 }
 0x2e8   : > { %v1667_v18 = vpop.f32.mrf.mxu1  ;;  %2895 = vmatprep.mubr.bf16.mxu1 %v8687_v62  ;;  %3088 = vmatprep.mubr.bf16.mxu0 %v8689_v4 }
 0x2e9   : > { %v1860_v54 = vpop.f32.mrf.mxu0  ;;  %3240 = vmatpush1.bf16.msra.mxu1 %v7032_v63  ;;  %3433 = vmatpush1.bf16.msra.mxu0 %v7035_v26  ;;  %v1668_v61 = vadd.f32 %v1667_v18, %v8658_v20  ;;  %v7056_v63 = vld [vmem:[%s10879_s5 + $0x68] ss:$16 sps:$4 sm:$0xff]   ;;  %v7067_v18 = vld [vmem:[%s10879_s5 + $0x24c] ss:$16 sps:$4 sm:$0xff]  }
 0x2ea   : > { %v1669_v52 = vpop.f32.mrf.mxu1  ;;  %3241 = vmatprep.subr.bf16.mxu1 %v7040_v53  ;;  %3434 = vmatprep.subr.bf16.mxu0 %v7043_v6  ;;  %v1861_v50 = vadd.f32 %v1860_v54, %v8661_v27  ;;  %v7059_v26 = vld [vmem:[%s10879_s5 + $0x268] ss:$16 sps:$4 sm:$0xff]   ;;  %v7064_v6 = vld [vmem:[%s10879_s5 + $0x4c] ss:$16 sps:$4 sm:$0xff]  }
 0x2eb   : > { %v1862_v30 = vpop.f32.mrf.mxu0  ;;  %v1670_v15 = vadd.f32 %v1669_v52, %v8633_v13 }
 0x2ec   : > { %v1671_v14 = vpop.f32.mrf.mxu1  ;;  %v1863_v24 = vadd.f32 %v1862_v30, %v8636_v42 }
 0x2ed   : > { %v1864_v58 = vpop.f32.mrf.mxu0  ;;  %3242 = vmatpush1.bf16.msra.mxu1 %v7038_v60  ;;  %3435 = vmatpush1.bf16.msra.mxu0 %v7041_v8  ;;  %v1672_v28 = vadd.f32 %v1671_v14, %v8658_v20  ;;  %v7070_v14 = vld [vmem:[%s10879_s5 + $0x2c] ss:$16 sps:$4 sm:$0xff]  }
 0x2ee   : > { %v1673_v3 = vpop.f32.mrf.mxu1  ;;  %3243 = vmatprep.subr.bf16.mxu1 %v7046_v21  ;;  %3436 = vmatprep.subr.bf16.mxu0 %v7049_v41  ;;  %v1865_v51 = vadd.f32 %v1864_v58, %v8661_v27  ;;  %v7073_v58 = vld [vmem:[%s10879_s5 + $0x22c] ss:$16 sps:$4 sm:$0xff]  }
 0x2ef   : > { %v1674_v22 = vadd.f32 %v1673_v3, %v8633_v13  ;;  %v1866_v49 = vpop.f32.mrf.mxu0  ;;  %2896 = vmatmul.mubr.bf16.gmra.mxu1 %v8719_v25  ;;  %3089 = vmatmul.mubr.bf16.gmra.mxu0 %v8721_v35  ;;  %v8763_v56 = vpack.c.bf16 %v1672_v28, %v1668_v61  ;;  %v7085_v28 = vld [vmem:[%s10879_s5 + $0x3ec] ss:$16 sps:$4 sm:$0xff]  }
 0x2f0   : > { %v1867_v48 = vadd.f32 %v1866_v49, %v8636_v42  ;;  %v1677_v33 = vpop.f32.mrf.mxu1  ;;  %v8765_v0 = vpack.c.bf16 %v1865_v51, %v1861_v50  ;;  %v7079_v49 = vld [vmem:[%s10879_s5 + $0x20c] ss:$16 sps:$4 sm:$0xff]   ;;  %v7080_v51 = vld [vmem:[%s10879_s5 + $0x1e8] ss:$16 sps:$4 sm:$0xff]  }
 0x2f1   : > { %v8743_v11 = vpack.c.bf16 %v1674_v22, %v1670_v15  ;;  %v1870_v45 = vpop.f32.mrf.mxu0  ;;  %3244 = vmatpush1.bf16.msra.mxu1 %v7044_v34  ;;  %3437 = vmatpush1.bf16.msra.mxu0 %v7047_v12  ;;  %v1678_v34 = vadd.f32 %v1677_v33, %v8658_v20  ;;  %v7071_v15 = vld [vmem:[%s10879_s5 + $0x228] ss:$16 sps:$4 sm:$0xff]   ;;  %v7076_v22 = vld [vmem:[%s10879_s5 + $0xc] ss:$16 sps:$4 sm:$0xff]  }
 0x2f2   : > { %v8751_v7 = vpack.c.bf16 %v1867_v48, %v1863_v24  ;;  %v1679_v47 = vpop.f32.mrf.mxu1  ;;  %3245 = vmatprep.subr.bf16.mxu1 %v7052_v17  ;;  %3438 = vmatprep.subr.bf16.mxu0 %v7055_v40  ;;  %v1871_v12 = vadd.f32 %v1870_v45, %v8661_v27  ;;  %v7068_v40 = vld [vmem:[%s10879_s5 + $0x28] ss:$16 sps:$4 sm:$0xff]   ;;  %v7082_v33 = vld [vmem:[%s10879_s5 + $0x1ec] ss:$16 sps:$4 sm:$0xff]  }
 0x2f3   : > { %v1872_v10 = vpop.f32.mrf.mxu0  ;;  %2905 = vmatprep.mubr.bf16.mxu1 %v8743_v11  ;;  %v1680_v1 = vadd.f32 %v1679_v47, %v8633_v13  ;;  %v7074_v24 = vld [vmem:[%s10879_s5 + $0x8] ss:$16 sps:$4 sm:$0xff]   ;;  %v7097_v61 = vld [vmem:[%s10879_s5 + $0x3ac] ss:$16 sps:$4 sm:$0xff]  }
 0x2f4   : > { %3098 = vmatprep.mubr.bf16.mxu0 %v8751_v7  ;;  %v1681_v32 = vpop.f32.mrf.mxu1  ;;  %v1873_v60 = vadd.f32 %v1872_v10, %v8636_v42  ;;  %v7077_v48 = vld [vmem:[%s10879_s5 + $0x208] ss:$16 sps:$4 sm:$0xff]  }
 0x2f5   : > { %v1874_v37 = vpop.f32.mrf.mxu0  ;;  %3246 = vmatpush1.bf16.msra.mxu1 %v7050_v9  ;;  %3439 = vmatpush1.bf16.msra.mxu0 %v7053_v46  ;;  %v1682_v52 = vadd.f32 %v1681_v32, %v8658_v20  ;;  %v7083_v45 = vld [vmem:[%s10879_s5 + $0x3e8] ss:$16 sps:$4 sm:$0xff]   ;;  %v7088_v9 = vld [vmem:[%s10879_s5 + $0x1cc] ss:$16 sps:$4 sm:$0xff]  }
 0x2f6   : > { %v1683_v53 = vpop.f32.mrf.mxu1  ;;  %3247 = vmatprep.subr.bf16.mxu1 %v7058_v55  ;;  %3440 = vmatprep.subr.bf16.mxu0 %v7061_v5  ;;  %v1875_v21 = vadd.f32 %v1874_v37, %v8661_v27  ;;  %v7091_v46 = vld [vmem:[%s10879_s5 + $0x3cc] ss:$16 sps:$4 sm:$0xff]   ;;  %v7086_v47 = vld [vmem:[%s10879_s5 + $0x1c8] ss:$16 sps:$4 sm:$0xff]  }
 0x2f7   : > { %v1684_v23 = vadd.f32 %v1683_v53, %v8633_v13  ;;  %v1876_v54 = vpop.f32.mrf.mxu0  ;;  %2906 = vmatmul.mubr.bf16.gmra.mxu1 %v8763_v56  ;;  %3099 = vmatmul.mubr.bf16.gmra.mxu0 %v8765_v0  ;;  %v8807_v3 = vpack.c.bf16 %v1682_v52, %v1678_v34  ;;  %v7089_v55 = vld [vmem:[%s10879_s5 + $0x3c8] ss:$16 sps:$4 sm:$0xff]   ;;  %v7094_v5 = vld [vmem:[%s10879_s5 + $0x1ac] ss:$16 sps:$4 sm:$0xff]  }
 0x2f8   : > { %v1877_v8 = vadd.f32 %v1876_v54, %v8636_v42  ;;  %v8809_v17 = vpack.c.bf16 %v1875_v21, %v1871_v12  ;;  %v7092_v50 = vld [vmem:[%s10879_s5 + $0x1a8] ss:$16 sps:$4 sm:$0xff]   ;;  %v7100_v32 = vld [vmem:[%s10879_s5 + $0x18c] ss:$16 sps:$4 sm:$0xff]  }
 0x2f9   : > { %v8787_v41 = vpack.c.bf16 %v1684_v23, %v1680_v1  ;;  %3248 = vmatpush1.bf16.msra.mxu1 %v7056_v63  ;;  %3441 = vmatpush1.bf16.msra.mxu0 %v7059_v26  ;;  %v7095_v10 = vld [vmem:[%s10879_s5 + $0x3a8] ss:$16 sps:$4 sm:$0xff]   ;;  %v7103_v37 = vld [vmem:[%s10879_s5 + $0x38c] ss:$16 sps:$4 sm:$0xff]  }
 0x2fa   : > { %v8795_v30 = vpack.c.bf16 %v1877_v8, %v1873_v60  ;;  %3249 = vmatprep.subr.bf16.mxu1 %v7064_v6  ;;  %3442 = vmatprep.subr.bf16.mxu0 %v7067_v18  ;;  %v7098_v63 = vld [vmem:[%s10879_s5 + $0x188] ss:$16 sps:$4 sm:$0xff]   ;;  %v7106_v53 = vld [vmem:[%s10879_s5 + $0x16c] ss:$16 sps:$4 sm:$0xff]  }
 0x2fb   : > { %2915 = vmatprep.mubr.bf16.mxu1 %v8787_v41  ;;  %v7101_v26 = vld [vmem:[%s10879_s5 + $0x388] ss:$16 sps:$4 sm:$0xff]   ;;  %v7109_v6 = vld [vmem:[%s10879_s5 + $0x36c] ss:$16 sps:$4 sm:$0xff]  }
 0x2fc   : > { %3108 = vmatprep.mubr.bf16.mxu0 %v8795_v30  ;;  %v7104_v23 = vld [vmem:[%s10879_s5 + $0x168] ss:$16 sps:$4 sm:$0xff]  }
 0x2fd   : > { %3250 = vmatpush1.bf16.msra.mxu1 %v7062_v2  ;;  %3443 = vmatpush1.bf16.msra.mxu0 %v7065_v29  ;;  %v7107_v54 = vld [vmem:[%s10879_s5 + $0x368] ss:$16 sps:$4 sm:$0xff]  }
 0x2fe   : > { %3251 = vmatprep.subr.bf16.mxu1 %v7070_v14  ;;  %3444 = vmatprep.subr.bf16.mxu0 %v7073_v58 }
 0x2ff   : > { %2916 = vmatmul.mubr.bf16.gmra.mxu1 %v8807_v3  ;;  %3109 = vmatmul.mubr.bf16.gmra.mxu0 %v8809_v17 }
 0x301   : > { %3252 = vmatpush1.bf16.msra.mxu1 %v7068_v40  ;;  %3445 = vmatpush1.bf16.msra.mxu0 %v7071_v15 }
 0x302   : > { %3253 = vmatprep.subr.bf16.mxu1 %v7076_v22  ;;  %3446 = vmatprep.subr.bf16.mxu0 %v7079_v49 }
 0x305   : > { %3254 = vmatpush1.bf16.msra.mxu1 %v7074_v24  ;;  %3447 = vmatpush1.bf16.msra.mxu0 %v7077_v48  ;;  %v7110_v24 = vld [vmem:[%s10879_s5 + $0x148] ss:$16 sps:$4 sm:$0xff]   ;;  %v7112_v48 = vld [vmem:[%s10879_s5 + $0x14c] ss:$16 sps:$4 sm:$0xff]  }
 0x306   : > { %3255 = vmatprep.subr.bf16.mxu1 %v7082_v33  ;;  %3448 = vmatprep.subr.bf16.mxu0 %v7085_v28 }
 0x309   : > { %3256 = vmatpush2.bf16.msra.mxu1 %v7080_v51  ;;  %3449 = vmatpush2.bf16.msra.mxu0 %v7083_v45 }
 0x30a   : > { %3257 = vmatprep.subr.bf16.mxu1 %v7088_v9  ;;  %3450 = vmatprep.subr.bf16.mxu0 %v7091_v46 }
 0x30d   : > { %3258 = vmatpush2.bf16.msra.mxu1 %v7086_v47  ;;  %3451 = vmatpush2.bf16.msra.mxu0 %v7089_v55  ;;  %v7113_v47 = vld [vmem:[%s10879_s5 + $0x348] ss:$16 sps:$4 sm:$0xff]   ;;  %v7115_v55 = vld [vmem:[%s10879_s5 + $0x34c] ss:$16 sps:$4 sm:$0xff]  }
 0x30e   : > { %3259 = vmatprep.subr.bf16.mxu1 %v7094_v5  ;;  %3452 = vmatprep.subr.bf16.mxu0 %v7097_v61 }
 0x311   : > { %3260 = vmatpush2.bf16.msra.mxu1 %v7092_v50  ;;  %3453 = vmatpush2.bf16.msra.mxu0 %v7095_v10 }
 0x312   : > { %3261 = vmatprep.subr.bf16.mxu1 %v7100_v32  ;;  %3454 = vmatprep.subr.bf16.mxu0 %v7103_v37 }
 0x314   : > { %v1687_v18 = vpop.f32.mrf.mxu1 }
 0x315   : > { %v1880_v1 = vpop.f32.mrf.mxu0  ;;  %3262 = vmatpush2.bf16.msra.mxu1 %v7098_v63  ;;  %3455 = vmatpush2.bf16.msra.mxu0 %v7101_v26  ;;  %v1688_v40 = vadd.f32 %v1687_v18, %v8658_v20  ;;  %v7116_v63 = vld [vmem:[%s10879_s5 + $0x128] ss:$16 sps:$4 sm:$0xff]   ;;  %v7118_v26 = vld [vmem:[%s10879_s5 + $0x12c] ss:$16 sps:$4 sm:$0xff]  }
 0x316   : > { %v1689_v60 = vpop.f32.mrf.mxu1  ;;  %3263 = vmatprep.subr.bf16.mxu1 %v7106_v53  ;;  %3456 = vmatprep.subr.bf16.mxu0 %v7109_v6  ;;  %v1881_v33 = vadd.f32 %v1880_v1, %v8661_v27 }
 0x317   : > { %v1882_v8 = vpop.f32.mrf.mxu0  ;;  %v1690_v14 = vadd.f32 %v1689_v60, %v8633_v13 }
 0x318   : > { %v1691_v52 = vpop.f32.mrf.mxu1  ;;  %v1883_v15 = vadd.f32 %v1882_v8, %v8636_v42 }
 0x319   : > { %v1884_v21 = vpop.f32.mrf.mxu0  ;;  %3264 = vmatpush2.bf16.msra.mxu1 %v7104_v23  ;;  %3457 = vmatpush2.bf16.msra.mxu0 %v7107_v54  ;;  %v1692_v2 = vadd.f32 %v1691_v52, %v8658_v20 }
 0x31a   : > { %v1693_v29 = vpop.f32.mrf.mxu1  ;;  %v1885_v58 = vadd.f32 %v1884_v21, %v8661_v27  ;;  %3265 = vmatprep.subr.bf16.mxu1 %v7112_v48  ;;  %3458 = vmatprep.subr.bf16.mxu0 %v7115_v55 }
 0x31b   : > { %v1694_v34 = vadd.f32 %v1693_v29, %v8633_v13  ;;  %v1886_v12 = vpop.f32.mrf.mxu0  ;;  %v8907_v45 = vpack.c.bf16 %v1692_v2, %v1688_v40  ;;  %v7119_v29 = vld [vmem:[%s10879_s5 + $0x328] ss:$16 sps:$4 sm:$0xff]   ;;  %v7127_v40 = vld [vmem:[%s10879_s5 + $0x30c] ss:$16 sps:$4 sm:$0xff]  }
 0x31c   : > { %v1887_v22 = vadd.f32 %v1886_v12, %v8636_v42  ;;  %v1697_v49 = vpop.f32.mrf.mxu1  ;;  %v8917_v5 = vpack.c.bf16 %v1885_v58, %v1881_v33  ;;  %v7124_v12 = vld [vmem:[%s10879_s5 + $0x10c] ss:$16 sps:$4 sm:$0xff]  }
 0x31d   : > { %v8905_v28 = vpack.c.bf16 %v1694_v34, %v1690_v14  ;;  %v1890_v51 = vpop.f32.mrf.mxu0  ;;  %3266 = vmatpush2.bf16.msra.mxu1 %v7110_v24  ;;  %3459 = vmatpush2.bf16.msra.mxu0 %v7113_v47  ;;  %v1698_v23 = vadd.f32 %v1697_v49, %v8658_v20  ;;  %v7121_v14 = vld [vmem:[%s10879_s5 + $0x32c] ss:$16 sps:$4 sm:$0xff]   ;;  %v7122_v34 = vld [vmem:[%s10879_s5 + $0x108] ss:$16 sps:$4 sm:$0xff]  }
 0x31e   : > { %v8909_v9 = vpack.c.bf16 %v1887_v22, %v1883_v15  ;;  %v1699_v46 = vpop.f32.mrf.mxu1  ;;  %3267 = vmatprep.subr.bf16.mxu1 %v7118_v26  ;;  %v1891_v8 = vadd.f32 %v1890_v51, %v8661_v27  ;;  %3460 = vmatprep.subr.bf16.mxu0 %v7121_v14  ;;  %v7125_v15 = vld [vmem:[%s10879_s5 + $0x308] ss:$16 sps:$4 sm:$0xff]  }
 0x31f   : > { %v1892_v61 = vpop.f32.mrf.mxu0  ;;  %2925 = vmatprep.mubr.bf16.mxu1 %v8905_v28  ;;  %v1700_v53 = vadd.f32 %v1699_v46, %v8633_v13 }
 0x320   : > { %3118 = vmatprep.mubr.bf16.mxu0 %v8909_v9  ;;  %v1701_v50 = vpop.f32.mrf.mxu1  ;;  %2926 = vmatmul.mubr.bf16.gmra.mxu1 %v8907_v45  ;;  %v1893_v54 = vadd.f32 %v1892_v61, %v8636_v42 }
 0x321   : > { %v1894_v10 = vpop.f32.mrf.mxu0  ;;  %3119 = vmatmul.mubr.bf16.gmra.mxu0 %v8917_v5  ;;  %v1702_v32 = vadd.f32 %v1701_v50, %v8658_v20  ;;  %3268 = vmatpush2.bf16.msra.mxu1 %v7116_v63 }
 0x322   : > { %v1703_v37 = vpop.f32.mrf.mxu1  ;;  %v1895_v6 = vadd.f32 %v1894_v10, %v8661_v27  ;;  %3461 = vmatpush2.bf16.msra.mxu0 %v7119_v29  ;;  %3269 = vmatprep.subr.bf16.mxu1 %v7124_v12 }
 0x323   : > { %v1704_v18 = vadd.f32 %v1703_v37, %v8633_v13  ;;  %v1896_v1 = vpop.f32.mrf.mxu0  ;;  %v8939_v21 = vpack.c.bf16 %v1702_v32, %v1698_v23  ;;  %3462 = vmatprep.subr.bf16.mxu0 %v7127_v40 }
 0x324   : > { %v1897_v60 = vadd.f32 %v1896_v1, %v8636_v42  ;;  %v8949_v58 = vpack.c.bf16 %v1895_v6, %v1891_v8 }
 0x325   : > { %v8937_v52 = vpack.c.bf16 %v1704_v18, %v1700_v53  ;;  %3270 = vmatpush2.bf16.msra.mxu1 %v7122_v34 }
 0x326   : > { %v8941_v2 = vpack.c.bf16 %v1897_v60, %v1893_v54  ;;  %3463 = vmatpush2.bf16.msra.mxu0 %v7125_v15 }
 0x327   : > { %2935 = vmatprep.mubr.bf16.mxu1 %v8937_v52 }
 0x328   : > { %3128 = vmatprep.mubr.bf16.mxu0 %v8941_v2  ;;  %2936 = vmatmul.mubr.bf16.gmra.mxu1 %v8939_v21 }
 0x329   : > { %3129 = vmatmul.mubr.bf16.gmra.mxu0 %v8949_v58 }
 0x348   : > { %v1707_v22 = vpop.f32.mrf.mxu1  ;;  %v1900_v49 = vpop.f32.mrf.mxu0 }
 0x349   : > { %v1708_v63 = vadd.f32 %v1707_v22, %v8658_v20  ;;  %v1901_v26 = vadd.f32 %v1900_v49, %v8661_v27 }
 0x34a   : > { %v1709_v24 = vpop.f32.mrf.mxu1  ;;  %v1902_v48 = vpop.f32.mrf.mxu0 }
 0x34b   : > { %v1710_v50 = vadd.f32 %v1709_v24, %v8633_v13  ;;  %v1903_v10 = vadd.f32 %v1902_v48, %v8636_v42 }
 0x34c   : > { %v1711_v33 = vpop.f32.mrf.mxu1  ;;  %v1904_v51 = vpop.f32.mrf.mxu0 }
 0x34d   : > { %v1712_v46 = vadd.f32 %v1711_v33, %v8658_v20  ;;  %v1905_v47 = vadd.f32 %v1904_v51, %v8661_v27 }
 0x34e   : > { %v1713_v55 = vpop.f32.mrf.mxu1  ;;  %v1906_v61 = vpop.f32.mrf.mxu0 }
 0x34f   : > { %v1714_v32 = vadd.f32 %v1713_v55, %v8633_v13  ;;  %v1907_v37 = vadd.f32 %v1906_v61, %v8636_v42  ;;  %v8979_v23 = vpack.c.bf16 %v1712_v46, %v1708_v63  ;;  %v8981_v54 = vpack.c.bf16 %v1905_v47, %v1901_v26 }
 0x350   : > { %v1717_v53 = vpop.f32.mrf.mxu1  ;;  %v1910_v6 = vpop.f32.mrf.mxu0 }
 0x351   : > { %v8975_v18 = vpack.c.bf16 %v1714_v32, %v1710_v50  ;;  %v8977_v1 = vpack.c.bf16 %v1907_v37, %v1903_v10  ;;  %v1718_v33 = vadd.f32 %v1717_v53, %v8658_v20  ;;  %v1911_v51 = vadd.f32 %v1910_v6, %v8661_v27 }
 0x352   : > { %v1719_v60 = vpop.f32.mrf.mxu1  ;;  %v1912_v8 = vpop.f32.mrf.mxu0 }
 0x353   : > { %2945 = vmatprep.mubr.bf16.mxu1 %v8975_v18  ;;  %3138 = vmatprep.mubr.bf16.mxu0 %v8977_v1  ;;  %v1720_v22 = vadd.f32 %v1719_v60, %v8633_v13  ;;  %v1913_v49 = vadd.f32 %v1912_v8, %v8636_v42 }
 0x354   : > { %v1721_v29 = vpop.f32.mrf.mxu1  ;;  %v1914_v14 = vpop.f32.mrf.mxu0  ;;  %2946 = vmatmul.mubr.bf16.gmra.mxu1 %v8979_v23  ;;  %3139 = vmatmul.mubr.bf16.gmra.mxu0 %v8981_v54 }
 0x355   : > { %v1722_v34 = vadd.f32 %v1721_v29, %v8658_v20  ;;  %v1915_v12 = vadd.f32 %v1914_v14, %v8661_v27 }
 0x356   : > { %v1723_v40 = vpop.f32.mrf.mxu1  ;;  %v1916_v15 = vpop.f32.mrf.mxu0 }
 0x357   : > { %v1724_v24 = vadd.f32 %v1723_v40, %v8633_v13  ;;  %v1917_v48 = vadd.f32 %v1916_v15, %v8636_v42  ;;  %v8999_v50 = vpack.c.bf16 %v1722_v34, %v1718_v33  ;;  %v9001_v10 = vpack.c.bf16 %v1915_v12, %v1911_v51 }
 0x358   : > { %v1727_v46 = vpop.f32.mrf.mxu1  ;;  %v1920_v47 = vpop.f32.mrf.mxu0 }
 0x359   : > { %v8995_v55 = vpack.c.bf16 %v1724_v24, %v1720_v22  ;;  %v8997_v61 = vpack.c.bf16 %v1917_v48, %v1913_v49  ;;  %v1728_v40 = vadd.f32 %v1727_v46, %v8658_v20  ;;  %v1921_v15 = vadd.f32 %v1920_v47, %v8661_v27 }
 0x35a   : > { %v1729_v32 = vpop.f32.mrf.mxu1  ;;  %v1922_v37 = vpop.f32.mrf.mxu0 }
 0x35b   : > { %2955 = vmatprep.mubr.bf16.mxu1 %v8995_v55  ;;  %3148 = vmatprep.mubr.bf16.mxu0 %v8997_v61  ;;  %v1730_v29 = vadd.f32 %v1729_v32, %v8633_v13  ;;  %v1923_v14 = vadd.f32 %v1922_v37, %v8636_v42 }
 0x35c   : > { %v1731_v63 = vpop.f32.mrf.mxu1  ;;  %v1924_v26 = vpop.f32.mrf.mxu0  ;;  %2956 = vmatmul.mubr.bf16.gmra.mxu1 %v8999_v50  ;;  %3149 = vmatmul.mubr.bf16.gmra.mxu0 %v9001_v10 }
 0x35d   : > { %v1732_v53 = vadd.f32 %v1731_v63, %v8658_v20  ;;  %v1925_v6 = vadd.f32 %v1924_v26, %v8661_v27 }
 0x35e   : > { %v1733_v60 = vpop.f32.mrf.mxu1  ;;  %v1926_v8 = vpop.f32.mrf.mxu0 }
 0x35f   : > { %v1734_v34 = vadd.f32 %v1733_v60, %v8633_v13  ;;  %v1927_v12 = vadd.f32 %v1926_v8, %v8636_v42  ;;  %v9019_v33 = vpack.c.bf16 %v1732_v53, %v1728_v40  ;;  %v9021_v51 = vpack.c.bf16 %v1925_v6, %v1921_v15 }
 0x360   : > { %v1737_v22 = vpop.f32.mrf.mxu1  ;;  %v1930_v49 = vpop.f32.mrf.mxu0 }
 0x361   : > { %v9015_v24 = vpack.c.bf16 %v1734_v34, %v1730_v29  ;;  %v9017_v48 = vpack.c.bf16 %v1927_v12, %v1923_v14  ;;  %v1738_v34 = vadd.f32 %v1737_v22, %v8658_v20  ;;  %v1931_v12 = vadd.f32 %v1930_v49, %v8661_v27 }
 0x362   : > { %v1739_v32 = vpop.f32.mrf.mxu1  ;;  %v1932_v37 = vpop.f32.mrf.mxu0 }
 0x363   : > { %2965 = vmatprep.mubr.bf16.mxu1 %v9015_v24  ;;  %3158 = vmatprep.mubr.bf16.mxu0 %v9017_v48  ;;  %v1740_v6 = vadd.f32 %v1739_v32, %v8633_v13  ;;  %v1933_v8 = vadd.f32 %v1932_v37, %v8636_v42 }
 0x364   : > { %v1741_v63 = vpop.f32.mrf.mxu1  ;;  %v1934_v46 = vpop.f32.mrf.mxu0  ;;  %2966 = vmatmul.mubr.bf16.gmra.mxu1 %v9019_v33  ;;  %3159 = vmatmul.mubr.bf16.gmra.mxu0 %v9021_v51 }
 0x365   : > { %v1742_v47 = vadd.f32 %v1741_v63, %v8658_v20  ;;  %v1935_v26 = vadd.f32 %v1934_v46, %v8661_v27 }
 0x366   : > { %v1743_v53 = vpop.f32.mrf.mxu1  ;;  %v1936_v60 = vpop.f32.mrf.mxu0 }
 0x367   : > { %v1744_v29 = vadd.f32 %v1743_v53, %v8633_v13  ;;  %v1937_v14 = vadd.f32 %v1936_v60, %v8636_v42  ;;  %v9039_v46 = vpack.c.bf16 %v1742_v47, %v1738_v34  ;;  %v9041_v39 = vpack.c.bf16 %v1935_v26, %v1931_v12 }
 0x368   : > { %v1747_v40 = vpop.f32.mrf.mxu1  ;;  %v1940_v15 = vpop.f32.mrf.mxu0 }
 0x369   : > { %v9035_v43 = vpack.c.bf16 %v1744_v29, %v1740_v6  ;;  %v9037_v63 = vpack.c.bf16 %v1937_v14, %v1933_v8  ;;  %10943 = vst [vmem:[#allocation20_spill] sm:$0xff] %v9041_v39  ;;  %v1748_v34 = vadd.f32 %v1747_v40, %v8658_v20  ;;  %v1941_v12 = vadd.f32 %v1940_v15, %v8661_v27 }
 0x36a   : > { %v1749_v32 = vpop.f32.mrf.mxu1  ;;  %v1942_v37 = vpop.f32.mrf.mxu0 }
 0x36b   : > { %2975 = vmatprep.mubr.bf16.mxu1 %v9035_v43  ;;  %3168 = vmatprep.mubr.bf16.mxu0 %v9037_v63  ;;  %v1750_v26 = vadd.f32 %v1749_v32, %v8633_v13  ;;  %v1943_v8 = vadd.f32 %v1942_v37, %v8636_v42 }
 0x36c   : > { %v1751_v53 = vpop.f32.mrf.mxu1  ;;  %v1944_v22 = vpop.f32.mrf.mxu0  ;;  %2976 = vmatmul.mubr.bf16.gmra.mxu1 %v9039_v46  ;;  %3169 = vmatmul.mubr.bf16.gmra.mxu0 %v9041_v39  ;;  %v7130_v39 = vld [vmem:[#allocation8 + $0xe4] ss:$16 sps:$4 sm:$0xff]  }
 0x36d   : > { %v1752_v49 = vadd.f32 %v1751_v53, %v8658_v20  ;;  %v1945_v60 = vadd.f32 %v1944_v22, %v8661_v27  ;;  %4479 = vmatprep.subr.bf16.mxu1 %v7130_v39 }
 0x36e   : > { %v1753_v47 = vpop.f32.mrf.mxu1  ;;  %v1946_v6 = vpop.f32.mrf.mxu0 }
 0x36f   : > { %v1754_v29 = vadd.f32 %v1753_v47, %v8633_v13  ;;  %v1947_v14 = vadd.f32 %v1946_v6, %v8636_v42  ;;  %v9059_v22 = vpack.c.bf16 %v1752_v49, %v1748_v34  ;;  %v9061_v16 = vpack.c.bf16 %v1945_v60, %v1941_v12 }
 0x370   : > { %v1757_v36 = vpop.f32.mrf.mxu1  ;;  %v1950_v38 = vpop.f32.mrf.mxu0 }
 0x371   : > { %v9055_v59 = vpack.c.bf16 %v1754_v29, %v1750_v26  ;;  %v9057_v53 = vpack.c.bf16 %v1947_v14, %v1943_v8  ;;  %10946 = vst [vmem:[#allocation23_spill] sm:$0xff] %v9059_v22  ;;  %10947 = vst [vmem:[#allocation24_spill] sm:$0xff] %v9061_v16  ;;  %v1758_v34 = vadd.f32 %v1757_v36, %v8658_v20 }
 0x372   : > { %v1759_v32 = vpop.f32.mrf.mxu1  ;;  %v1952_v37 = vpop.f32.mrf.mxu0  ;;  %v1951_v12 = vadd.f32 %v1950_v38, %v8661_v27  ;;  %v7142_v38 = vld [vmem:[#allocation8 + $0x2e4] ss:$16 sps:$4 sm:$0xff]  }
 0x373   : > { %10944 = vst [vmem:[#allocation21_spill] sm:$0xff] %v9055_v59  ;;  %10945 = vst [vmem:[#allocation22_spill] sm:$0xff] %v9057_v53  ;;  %2985 = vmatprep.mubr.bf16.mxu1 %v9055_v59  ;;  %3178 = vmatprep.mubr.bf16.mxu0 %v9057_v53  ;;  %v1760_v26 = vadd.f32 %v1759_v32, %v8633_v13  ;;  %v1953_v8 = vadd.f32 %v1952_v37, %v8636_v42 }
 0x374   : > { %v1761_v40 = vpop.f32.mrf.mxu1  ;;  %v1954_v47 = vpop.f32.mrf.mxu0  ;;  %2986 = vmatmul.mubr.bf16.gmra.mxu1 %v9059_v22  ;;  %3179 = vmatmul.mubr.bf16.gmra.mxu0 %v9061_v16 }
 0x375   : > { %v1762_v15 = vadd.f32 %v1761_v40, %v8658_v20  ;;  %v1955_v49 = vadd.f32 %v1954_v47, %v8661_v27  ;;  %4672 = vmatprep.subr.bf16.mxu0 %v7142_v38 }
 0x376   : > { %v1763_v60 = vpop.f32.mrf.mxu1  ;;  %v1956_v6 = vpop.f32.mrf.mxu0 }
 0x377   : > { %v1764_v29 = vadd.f32 %v1763_v60, %v8633_v13  ;;  %v1957_v14 = vadd.f32 %v1956_v6, %v8636_v42  ;;  %v9079_v47 = vpack.c.bf16 %v1762_v15, %v1758_v34  ;;  %v9081_v53 = vpack.c.bf16 %v1955_v49, %v1951_v12 }
 0x378   : > { %v1767_v16 = vpop.f32.mrf.mxu1  ;;  %v1960_v39 = vpop.f32.mrf.mxu0 }
 0x379   : > { %v9075_v22 = vpack.c.bf16 %v1764_v29, %v1760_v26  ;;  %v9077_v40 = vpack.c.bf16 %v1957_v14, %v1953_v8  ;;  %10950 = vst [vmem:[#allocation27_spill] sm:$0xff] %v9079_v47  ;;  %10951 = vst [vmem:[#allocation28_spill] sm:$0xff] %v9081_v53  ;;  %v1768_v12 = vadd.f32 %v1767_v16, %v8658_v20 }
 0x37a   : > { %v1769_v32 = vpop.f32.mrf.mxu1  ;;  %v1962_v37 = vpop.f32.mrf.mxu0 }
 0x37b   : > { %10948 = vst [vmem:[#allocation25_spill] sm:$0xff] %v9075_v22  ;;  %10949 = vst [vmem:[#allocation26_spill] sm:$0xff] %v9077_v40  ;;  %2995 = vmatprep.mubr.bf16.mxu1 %v9075_v22  ;;  %3188 = vmatprep.mubr.bf16.mxu0 %v9077_v40  ;;  %v1770_v8 = vadd.f32 %v1769_v32, %v8633_v13  ;;  %v1963_v29 = vadd.f32 %v1962_v37, %v8636_v42 }
 0x37c   : > { %v1771_v60 = vpop.f32.mrf.mxu1  ;;  %v1964_v36 = vpop.f32.mrf.mxu0  ;;  %2996 = vmatmul.mubr.bf16.gmra.mxu1 %v9079_v47  ;;  %3189 = vmatmul.mubr.bf16.gmra.mxu0 %v9081_v53  ;;  %v1961_v53 = vadd.f32 %v1960_v39, %v8661_v27 }
 0x37d   : > { %v1772_v6 = vadd.f32 %v1771_v60, %v8658_v20  ;;  %v1965_v15 = vadd.f32 %v1964_v36, %v8661_v27 }
 0x37e   : > { %v1773_v26 = vpop.f32.mrf.mxu1  ;;  %v1966_v49 = vpop.f32.mrf.mxu0 }
 0x37f   : > { %v1774_v14 = vadd.f32 %v1773_v26, %v8633_v13  ;;  %v1967_v34 = vadd.f32 %v1966_v49, %v8636_v42  ;;  %v9099_v22 = vpack.c.bf16 %v1772_v6, %v1768_v12  ;;  %v9101_v32 = vpack.c.bf16 %v1965_v15, %v1961_v53 }
 0x380   : > { %v1777_v47 = vpop.f32.mrf.mxu1  ;;  %v1970_v40 = vpop.f32.mrf.mxu0 }
 0x381   : > { %v9095_v60 = vpack.c.bf16 %v1774_v14, %v1770_v8  ;;  %v9097_v36 = vpack.c.bf16 %v1967_v34, %v1963_v29  ;;  %10952 = vst [vmem:[#allocation29_spill] sm:$0xff] %v9099_v22  ;;  %10953 = vst [vmem:[#allocation30_spill] sm:$0xff] %v9101_v32  ;;  %v1778_v14 = vadd.f32 %v1777_v47, %v8658_v20 }
 0x382   : > { %v1779_v37 = vpop.f32.mrf.mxu1  ;;  %v1972_v59 = vpop.f32.mrf.mxu0  ;;  %v1971_v34 = vadd.f32 %v1970_v40, %v8661_v27 }
 0x383   : > { %3005 = vmatprep.mubr.bf16.mxu1 %v9095_v60  ;;  %3198 = vmatprep.mubr.bf16.mxu0 %v9097_v36  ;;  %v1780_v53 = vadd.f32 %v1779_v37, %v8633_v13  ;;  %v1973_v15 = vadd.f32 %v1972_v59, %v8636_v42 }
 0x384   : > { %v1781_v38 = vpop.f32.mrf.mxu1  ;;  %v1974_v16 = vpop.f32.mrf.mxu0  ;;  %3006 = vmatmul.mubr.bf16.gmra.mxu1 %v9099_v22  ;;  %3199 = vmatmul.mubr.bf16.gmra.mxu0 %v9101_v32 }
 0x385   : > { %v1782_v39 = vadd.f32 %v1781_v38, %v8658_v20  ;;  %v1975_v26 = vadd.f32 %v1974_v16, %v8661_v27 }
 0x386   : > { %v1783_v6 = vpop.f32.mrf.mxu1  ;;  %v1976_v49 = vpop.f32.mrf.mxu0 }
 0x387   : > { %v1784_v8 = vadd.f32 %v1783_v6, %v8633_v13  ;;  %v1977_v29 = vadd.f32 %v1976_v49, %v8636_v42  ;;  %v9119_v38 = vpack.c.bf16 %v1782_v39, %v1778_v14  ;;  %v9121_v16 = vpack.c.bf16 %v1975_v26, %v1971_v34 }
 0x389   : > { %v9115_v12 = vpack.c.bf16 %v1784_v8, %v1780_v53  ;;  %v9117_v32 = vpack.c.bf16 %v1977_v29, %v1973_v15  ;;  %10956 = vst [vmem:[#allocation33_spill] sm:$0xff] %v9119_v38  ;;  %10957 = vst [vmem:[#allocation34_spill] sm:$0xff] %v9121_v16 }
 0x38b   : > { %10954 = vst [vmem:[#allocation31_spill] sm:$0xff] %v9115_v12  ;;  %10955 = vst [vmem:[#allocation32_spill] sm:$0xff] %v9117_v32  ;;  %3015 = vmatprep.mubr.bf16.mxu1 %v9115_v12  ;;  %3208 = vmatprep.mubr.bf16.mxu0 %v9117_v32 }
 0x38c   : > { %3016 = vmatmul.mubr.bf16.gmra.mxu1 %v9119_v38  ;;  %3209 = vmatmul.mubr.bf16.gmra.mxu0 %v9121_v16 }
 0x395   : > { %v1787_v59 = vpop.f32.mrf.mxu1  ;;  %v1980_v47 = vpop.f32.mrf.mxu0 }
 0x396   : > { %v1788_v16 = vadd.f32 %v1787_v59, %v8658_v20  ;;  %v1981_v38 = vadd.f32 %v1980_v47, %v8661_v27 }
 0x397   : > { %v1789_v37 = vpop.f32.mrf.mxu1  ;;  %v1982_v40 = vpop.f32.mrf.mxu0 }
 0x398   : > { %v1790_v8 = vadd.f32 %v1789_v37, %v8633_v13  ;;  %v1983_v29 = vadd.f32 %v1982_v40, %v8636_v42 }
 0x399   : > { %v1791_v6 = vpop.f32.mrf.mxu1  ;;  %v1984_v49 = vpop.f32.mrf.mxu0 }
 0x39a   : > { %v1792_v53 = vadd.f32 %v1791_v6, %v8658_v20  ;;  %v1985_v39 = vadd.f32 %v1984_v49, %v8661_v27 }
 0x39b   : > { %v1793_v26 = vpop.f32.mrf.mxu1  ;;  %v1986_v15 = vpop.f32.mrf.mxu0 }
 0x39c   : > { %v1794_v14 = vadd.f32 %v1793_v26, %v8633_v13  ;;  %v1987_v34 = vadd.f32 %v1986_v15, %v8636_v42  ;;  %v9139_v6 = vpack.c.bf16 %v1792_v53, %v1788_v16  ;;  %v9141_v49 = vpack.c.bf16 %v1985_v39, %v1981_v38 }
 0x39e   : > { %v9135_v32 = vpack.c.bf16 %v1794_v14, %v1790_v8  ;;  %v9137_v12 = vpack.c.bf16 %v1987_v34, %v1983_v29  ;;  %10959 = vst [vmem:[#allocation36_spill] sm:$0xff] %v9139_v6  ;;  %10960 = vst [vmem:[#allocation37_spill] sm:$0xff] %v9141_v49 }
 0x39f   : > { %v1797_v22 = vpop.f32.mrf.mxu1  ;;  %v1990_v37 = vpop.f32.mrf.mxu0 }
 0x3a0   : > { %10958 = vst [vmem:[#allocation35_spill] sm:$0xff] %v9137_v12  ;;  %3025 = vmatprep.mubr.bf16.mxu1 %v9135_v32  ;;  %3218 = vmatprep.mubr.bf16.mxu0 %v9137_v12  ;;  %v1798_v34 = vadd.f32 %v1797_v22, %v8658_v20  ;;  %v7131_v22 = vld [vmem:[#allocation8 + $0xc0] ss:$16 sps:$4 sm:$0xff]  }
 0x3a1   : > { %v1799_v40 = vpop.f32.mrf.mxu1  ;;  %v1992_v26 = vpop.f32.mrf.mxu0  ;;  %3026 = vmatmul.mubr.bf16.gmra.mxu1 %v9139_v6  ;;  %3219 = vmatmul.mubr.bf16.gmra.mxu0 %v9141_v49  ;;  %v1991_v49 = vadd.f32 %v1990_v37, %v8661_v27 }
 0x3a2   : > { %v1800_v39 = vadd.f32 %v1799_v40, %v8633_v13  ;;  %v1993_v8 = vadd.f32 %v1992_v26, %v8636_v42 }
 0x3a3   : > { %v1801_v59 = vpop.f32.mrf.mxu1  ;;  %v1994_v47 = vpop.f32.mrf.mxu0 }
 0x3a4   : > { %v1802_v15 = vadd.f32 %v1801_v59, %v8658_v20  ;;  %v1995_v16 = vadd.f32 %v1994_v47, %v8661_v27  ;;  %v7133_v20 = vld [vmem:[#allocation8 + $0xc4] ss:$16 sps:$4 sm:$0xff]  }
 0x3a5   : > { %v1803_v38 = vpop.f32.mrf.mxu1  ;;  %v1996_v53 = vpop.f32.mrf.mxu0  ;;  %v7151_v27 = vld [vmem:[#allocation8 + $0x2c4] ss:$16 sps:$4 sm:$0xff]  }
 0x3a6   : > { %v1804_v29 = vadd.f32 %v1803_v38, %v8633_v13  ;;  %v1997_v14 = vadd.f32 %v1996_v53, %v8636_v42  ;;  %v9159_v59 = vpack.c.bf16 %v1802_v15, %v1798_v34  ;;  %v9161_v47 = vpack.c.bf16 %v1995_v16, %v1991_v49  ;;  %v7128_v13 = vld [vmem:[#allocation8 + $0xe0] ss:$16 sps:$4 sm:$0xff]   ;;  %v7145_v53 = vld [vmem:[#allocation8 + $0x64] ss:$16 sps:$4 sm:$0xff]  }
 0x3a7   : > { %v7140_v42 = vld [vmem:[#allocation8 + $0x2e0] ss:$16 sps:$4 sm:$0xff]   ;;  %v9173_v37 = vpop.f32.mrf.mxu1  ;;  %v9175_v40 = vpop.f32.mrf.mxu0 }
 0x3a8   : > { %v9155_v6 = vpack.c.bf16 %v1804_v29, %v1800_v39  ;;  %v9157_v12 = vpack.c.bf16 %v1997_v14, %v1993_v8  ;;  %v7149_v49 = vld [vmem:[#allocation8 + $0x2c0] ss:$16 sps:$4 sm:$0xff]   ;;  %v7178_v39 = vld [vmem:[#allocation8 + $0x264] ss:$16 sps:$4 sm:$0xff]  }
 0x3a9   : > { %v9179_v26 = vpop.f32.mrf.mxu1  ;;  %v9181_v15 = vpop.f32.mrf.mxu0  ;;  %v7137_v16 = vld [vmem:[#allocation8 + $0x80] ss:$16 sps:$4 sm:$0xff]  }
 0x3aa   : > { %3035 = vmatprep.mubr.bf16.mxu1 %v9155_v6  ;;  %3228 = vmatprep.mubr.bf16.mxu0 %v9157_v12  ;;  %v7167_v38 = vld [vmem:[#allocation8 + $0x280] ss:$16 sps:$4 sm:$0xff]  }
 0x3ab   : > { %3036 = vmatmul.mubr.bf16.gmra.mxu1 %v9159_v59  ;;  %3229 = vmatmul.mubr.bf16.gmra.mxu0 %v9161_v47  ;;  %v9185_v8 = vpop.f32.mrf.mxu1  ;;  %v7176_v29 = vld [vmem:[#allocation8 + $0x260] ss:$16 sps:$4 sm:$0xff]  }
 0x3ac   : > { %3271 = vmatprep.mubr.bf16.mxu1 %v8653_v31  ;;  %3464 = vmatprep.mubr.bf16.mxu0 %v8655_v44  ;;  %v7136_v31 = vld [vmem:[#allocation8 + $0xa4] ss:$16 sps:$4 sm:$0xff]  }
 0x3ad   : > { %v7160_v44 = vld [vmem:[#allocation8 + $0x2a4] ss:$16 sps:$4 sm:$0xff]   ;;  %v9191_v14 = vpop.f32.mrf.mxu1 }
 0x3b3   : > { %3272 = vmatmul.mubr.bf16.vlgmr.msra.gmra.mxu1 %v8677_v19  ;;  %3465 = vmatmul.mubr.bf16.vlgmr.msra.gmra.mxu0 %v8679_v57  ;;  %v7134_v19 = vld [vmem:[#allocation8 + $0xa0] ss:$16 sps:$4 sm:$0xff]  }
 0x3b4   : > { %3281 = vmatprep.mubr.bf16.mxu1 %v8687_v62  ;;  %3474 = vmatprep.mubr.bf16.mxu0 %v8689_v4  ;;  %v7158_v57 = vld [vmem:[#allocation8 + $0x2a0] ss:$16 sps:$4 sm:$0xff]   ;;  %v7139_v62 = vld [vmem:[#allocation8 + $0x84] ss:$16 sps:$4 sm:$0xff]  }
 0x3b5   : > { %4480 = vmatpush1.bf16.msra.mxu1 %v7128_v13  ;;  %4673 = vmatpush1.bf16.msra.mxu0 %v7140_v42  ;;  %v7169_v4 = vld [vmem:[#allocation8 + $0x284] ss:$16 sps:$4 sm:$0xff]   ;;  %v7146_v13 = vld [vmem:[#allocation8 + $0x40] ss:$16 sps:$4 sm:$0xff]  }
 0x3b6   : > { %4481 = vmatprep.subr.bf16.mxu1 %v7133_v20  ;;  %4674 = vmatprep.subr.bf16.mxu0 %v7151_v27  ;;  %v7185_v42 = vld [vmem:[#allocation8 + $0x240] ss:$16 sps:$4 sm:$0xff]   ;;  %v7154_v20 = vld [vmem:[#allocation8 + $0x24] ss:$16 sps:$4 sm:$0xff]  }
 0x3b7   : > { %v7196_v27 = vld [vmem:[#allocation8 + $0x224] ss:$16 sps:$4 sm:$0xff]  }
 0x3b9   : > { %4482 = vmatpush1.bf16.msra.mxu1 %v7131_v22  ;;  %4675 = vmatpush1.bf16.msra.mxu0 %v7149_v49  ;;  %v9197_v22 = vpop.f32.mrf.mxu1  ;;  %v7194_v49 = vld [vmem:[#allocation8 + $0x220] ss:$16 sps:$4 sm:$0xff]  }
 0x3ba   : > { %4483 = vmatprep.subr.bf16.mxu1 %v7136_v31  ;;  %4676 = vmatprep.subr.bf16.mxu0 %v7160_v44 }
 0x3bb   : > { %3282 = vmatmul.mubr.bf16.gmra.mxu1 %v8719_v25  ;;  %3475 = vmatmul.mubr.bf16.gmra.mxu0 %v8721_v35  ;;  %v9187_v25 = vpop.f32.mrf.mxu0  ;;  %v7143_v35 = vld [vmem:[#allocation8 + $0x60] ss:$16 sps:$4 sm:$0xff]   ;;  %v9203_v31 = vpop.f32.mrf.mxu1 }
 0x3bc   : > { %3291 = vmatprep.mubr.bf16.mxu1 %v8743_v11  ;;  %3484 = vmatprep.mubr.bf16.mxu0 %v8751_v7  ;;  %v7148_v11 = vld [vmem:[#allocation8 + $0x44] ss:$16 sps:$4 sm:$0xff]  }
 0x3bd   : > { %4484 = vmatpush1.bf16.msra.mxu1 %v7134_v19  ;;  %4677 = vmatpush1.bf16.msra.mxu0 %v7158_v57  ;;  %v7187_v7 = vld [vmem:[#allocation8 + $0x244] ss:$16 sps:$4 sm:$0xff]   ;;  %v9193_v34 = vpop.f32.mrf.mxu0  ;;  %v7155_v19 = vld [vmem:[#allocation8] ss:$16 sps:$4 sm:$0xff]  }
 0x3be   : > { %4485 = vmatprep.subr.bf16.mxu1 %v7139_v62  ;;  %4678 = vmatprep.subr.bf16.mxu0 %v7169_v4  ;;  %v7197_v57 = vld [vmem:[#allocation8 + $0x200] ss:$16 sps:$4 sm:$0xff]   ;;  %v7163_v62 = vld [vmem:[#allocation8 + $0x1e4] ss:$16 sps:$4 sm:$0xff]  }
 0x3bf   : > { %v7202_v4 = vld [vmem:[#allocation8 + $0x3e4] ss:$16 sps:$4 sm:$0xff]  }
 0x3c1   : > { %4486 = vmatpush1.bf16.msra.mxu1 %v7137_v16  ;;  %4679 = vmatpush1.bf16.msra.mxu0 %v7167_v38  ;;  %v9209_v16 = vpop.f32.mrf.mxu1  ;;  %v7200_v38 = vld [vmem:[#allocation8 + $0x3e0] ss:$16 sps:$4 sm:$0xff]  }
 0x3c2   : > { %4487 = vmatprep.subr.bf16.mxu1 %v7145_v53  ;;  %4680 = vmatprep.subr.bf16.mxu0 %v7178_v39 }
 0x3c3   : > { %3292 = vmatmul.mubr.bf16.gmra.mxu1 %v8763_v56  ;;  %3485 = vmatmul.mubr.bf16.gmra.mxu0 %v8765_v0  ;;  %v9199_v56 = vpop.f32.mrf.mxu0  ;;  %v7152_v0 = vld [vmem:[#allocation8 + $0x20] ss:$16 sps:$4 sm:$0xff]   ;;  %v9215_v53 = vpop.f32.mrf.mxu1 }
 0x3c4   : > { %3301 = vmatprep.mubr.bf16.mxu1 %v8787_v41  ;;  %3494 = vmatprep.mubr.bf16.mxu0 %v8795_v30  ;;  %v7157_v41 = vld [vmem:[#allocation8 + $0x4] ss:$16 sps:$4 sm:$0xff]  }
 0x3c5   : > { %4488 = vmatpush1.bf16.msra.mxu1 %v7143_v35  ;;  %4681 = vmatpush1.bf16.msra.mxu0 %v7176_v29  ;;  %v7199_v30 = vld [vmem:[#allocation8 + $0x204] ss:$16 sps:$4 sm:$0xff]   ;;  %v9205_v44 = vpop.f32.mrf.mxu0  ;;  %v7164_v35 = vld [vmem:[#allocation8 + $0x1c0] ss:$16 sps:$4 sm:$0xff]  }
 0x3c6   : > { %4489 = vmatprep.subr.bf16.mxu1 %v7148_v11  ;;  %4682 = vmatprep.subr.bf16.mxu0 %v7187_v7  ;;  %v7203_v29 = vld [vmem:[#allocation8 + $0x3c0] ss:$16 sps:$4 sm:$0xff]   ;;  %v7172_v11 = vld [vmem:[#allocation8 + $0x1a4] ss:$16 sps:$4 sm:$0xff]  }
 0x3c7   : > { %v7208_v7 = vld [vmem:[#allocation8 + $0x3a4] ss:$16 sps:$4 sm:$0xff]  }
 0x3c9   : > { %4490 = vmatpush1.bf16.msra.mxu1 %v7146_v13  ;;  %4683 = vmatpush1.bf16.msra.mxu0 %v7185_v42  ;;  %v9221_v13 = vpop.f32.mrf.mxu1  ;;  %v7206_v42 = vld [vmem:[#allocation8 + $0x3a0] ss:$16 sps:$4 sm:$0xff]  }
 0x3ca   : > { %4491 = vmatprep.subr.bf16.mxu1 %v7154_v20  ;;  %4684 = vmatprep.subr.bf16.mxu0 %v7196_v27 }
 0x3cb   : > { %3302 = vmatmul.mubr.bf16.gmra.mxu1 %v8807_v3  ;;  %3495 = vmatmul.mubr.bf16.gmra.mxu0 %v8809_v17  ;;  %v9211_v3 = vpop.f32.mrf.mxu0  ;;  %v7161_v17 = vld [vmem:[#allocation8 + $0x1e0] ss:$16 sps:$4 sm:$0xff]   ;;  %v9227_v20 = vpop.f32.mrf.mxu1 }
 0x3cc   : > { %3311 = vmatprep.mubr.bf16.mxu1 %v8905_v28  ;;  %3504 = vmatprep.mubr.bf16.mxu0 %v8909_v9  ;;  %v7166_v28 = vld [vmem:[#allocation8 + $0x1c4] ss:$16 sps:$4 sm:$0xff]  }
 0x3cd   : > { %4492 = vmatpush1.bf16.msra.mxu1 %v7152_v0  ;;  %4685 = vmatpush1.bf16.msra.mxu0 %v7194_v49  ;;  %v7205_v9 = vld [vmem:[#allocation8 + $0x3c4] ss:$16 sps:$4 sm:$0xff]   ;;  %v9217_v39 = vpop.f32.mrf.mxu0  ;;  %v7173_v0 = vld [vmem:[#allocation8 + $0x180] ss:$16 sps:$4 sm:$0xff]  }
 0x3ce   : > { %4493 = vmatprep.subr.bf16.mxu1 %v7157_v41  ;;  %4686 = vmatprep.subr.bf16.mxu0 %v7199_v30  ;;  %v7209_v49 = vld [vmem:[#allocation8 + $0x380] ss:$16 sps:$4 sm:$0xff]   ;;  %v7181_v41 = vld [vmem:[#allocation8 + $0x164] ss:$16 sps:$4 sm:$0xff]  }
 0x3cf   : > { %v7214_v30 = vld [vmem:[#allocation8 + $0x364] ss:$16 sps:$4 sm:$0xff]  }
 0x3d1   : > { %4494 = vmatpush1.bf16.msra.mxu1 %v7155_v19  ;;  %4687 = vmatpush1.bf16.msra.mxu0 %v7197_v57  ;;  %v9233_v19 = vpop.f32.mrf.mxu1  ;;  %v7212_v57 = vld [vmem:[#allocation8 + $0x360] ss:$16 sps:$4 sm:$0xff]  }
 0x3d2   : > { %4495 = vmatprep.subr.bf16.mxu1 %v7163_v62  ;;  %4688 = vmatprep.subr.bf16.mxu0 %v7202_v4  ;;  %v7182_v4 = vld [vmem:[#allocation8 + $0x140] ss:$16 sps:$4 sm:$0xff]  }
 0x3d3   : > { %3312 = vmatmul.mubr.bf16.gmra.mxu1 %v8907_v45  ;;  %3505 = vmatmul.mubr.bf16.gmra.mxu0 %v8917_v5  ;;  %v9223_v45 = vpop.f32.mrf.mxu0  ;;  %v7170_v5 = vld [vmem:[#allocation8 + $0x1a0] ss:$16 sps:$4 sm:$0xff]  }
 0x3d4   : > { %3321 = vmatprep.mubr.bf16.mxu1 %v8937_v52  ;;  %3514 = vmatprep.mubr.bf16.mxu0 %v8941_v2  ;;  %v7175_v52 = vld [vmem:[#allocation8 + $0x184] ss:$16 sps:$4 sm:$0xff]  }
 0x3d5   : > { %4496 = vmatpush2.bf16.msra.mxu1 %v7161_v17  ;;  %4689 = vmatpush2.bf16.msra.mxu0 %v7200_v38  ;;  %v7211_v2 = vld [vmem:[#allocation8 + $0x384] ss:$16 sps:$4 sm:$0xff]   ;;  %v9229_v27 = vpop.f32.mrf.mxu0 }
 0x3d6   : > { %4497 = vmatprep.subr.bf16.mxu1 %v7166_v28  ;;  %4690 = vmatprep.subr.bf16.mxu0 %v7205_v9  ;;  %v7190_v17 = vld [vmem:[#allocation8 + $0x124] ss:$16 sps:$4 sm:$0xff]   ;;  %v7215_v9 = vld [vmem:[#allocation8 + $0x340] ss:$16 sps:$4 sm:$0xff]  }
 0x3d9   : > { %4498 = vmatpush2.bf16.msra.mxu1 %v7164_v35  ;;  %4691 = vmatpush2.bf16.msra.mxu0 %v7203_v29  ;;  %v7217_v35 = vld [vmem:[#allocation8 + $0x344] ss:$16 sps:$4 sm:$0xff]   ;;  %v7191_v29 = vld [vmem:[#allocation8 + $0x100] ss:$16 sps:$4 sm:$0xff]  }
 0x3da   : > { %4499 = vmatprep.subr.bf16.mxu1 %v7172_v11  ;;  %4692 = vmatprep.subr.bf16.mxu0 %v7208_v7  ;;  %v7218_v7 = vld [vmem:[#allocation8 + $0x320] ss:$16 sps:$4 sm:$0xff]  }
 0x3db   : > { %3322 = vmatmul.mubr.bf16.gmra.mxu1 %v8939_v21  ;;  %3515 = vmatmul.mubr.bf16.gmra.mxu0 %v8949_v58  ;;  %v9235_v21 = vpop.f32.mrf.mxu0  ;;  %v7179_v58 = vld [vmem:[#allocation8 + $0x160] ss:$16 sps:$4 sm:$0xff]  }
 0x3dc   : > { %3331 = vmatprep.mubr.bf16.mxu1 %v8975_v18  ;;  %3524 = vmatprep.mubr.bf16.mxu0 %v8977_v1  ;;  %v7184_v18 = vld [vmem:[#allocation8 + $0x144] ss:$16 sps:$4 sm:$0xff]   ;;  %v9239_v1 = vpop.f32.mrf.mxu1 }
 0x3dd   : > { %4500 = vmatpush2.bf16.msra.mxu1 %v7170_v5  ;;  %4693 = vmatpush2.bf16.msra.mxu0 %v7206_v42  ;;  %v9241_v62 = vpop.f32.mrf.mxu0  ;;  %v7220_v5 = vld [vmem:[#allocation8 + $0x324] ss:$16 sps:$4 sm:$0xff]  }
 0x3de   : > { %4501 = vmatprep.subr.bf16.mxu1 %v7175_v52  ;;  %4694 = vmatprep.subr.bf16.mxu0 %v7211_v2  ;;  %v9245_v38 = vpop.f32.mrf.mxu1  ;;  %v10961_v2 = vld [vmem:[#allocation20_spill] sm:$0xff] }
 0x3df   : > { %v9247_v28 = vpop.f32.mrf.mxu0 }
 0x3e1   : > { %4502 = vmatpush2.bf16.msra.mxu1 %v7173_v0  ;;  %4695 = vmatpush2.bf16.msra.mxu0 %v7209_v49  ;;  %v7227_v0 = vld [vmem:[#allocation8 + $0x300] ss:$16 sps:$4 sm:$0xff]   ;;  %v7229_v49 = vld [vmem:[#allocation8 + $0x304] ss:$16 sps:$4 sm:$0xff]  }
 0x3e2   : > { %4503 = vmatprep.subr.bf16.mxu1 %v7181_v41  ;;  %4696 = vmatprep.subr.bf16.mxu0 %v7214_v30 }
 0x3e3   : > { %3332 = vmatmul.mubr.bf16.gmra.mxu1 %v8979_v23  ;;  %3525 = vmatmul.mubr.bf16.gmra.mxu0 %v8981_v54  ;;  %v7188_v23 = vld [vmem:[#allocation8 + $0x120] ss:$16 sps:$4 sm:$0xff]   ;;  %v7193_v54 = vld [vmem:[#allocation8 + $0x104] ss:$16 sps:$4 sm:$0xff]  }
 0x3e4   : > { %3341 = vmatprep.mubr.bf16.mxu1 %v8995_v55  ;;  %3534 = vmatprep.mubr.bf16.mxu0 %v8997_v61  ;;  %v9251_v55 = vpop.f32.mrf.mxu1  ;;  %v9253_v61 = vpop.f32.mrf.mxu0 }
 0x3e5   : > { %4504 = vmatpush2.bf16.msra.mxu1 %v7179_v58  ;;  %4697 = vmatpush2.bf16.msra.mxu0 %v7212_v57 }
 0x3e6   : > { %4505 = vmatprep.subr.bf16.mxu1 %v7184_v18  ;;  %4698 = vmatprep.subr.bf16.mxu0 %v7217_v35  ;;  %v9257_v11 = vpop.f32.mrf.mxu1  ;;  %v10964_v18 = vld [vmem:[#allocation23_spill] sm:$0xff] }
 0x3e9   : > { %4506 = vmatpush2.bf16.msra.mxu1 %v7182_v4  ;;  %4699 = vmatpush2.bf16.msra.mxu0 %v7215_v9  ;;  %v10966_v4 = vld [vmem:[#allocation25_spill] sm:$0xff] }
 0x3ea   : > { %4507 = vmatprep.subr.bf16.mxu1 %v7190_v17  ;;  %4700 = vmatprep.subr.bf16.mxu0 %v7220_v5  ;;  %v10967_v17 = vld [vmem:[#allocation26_spill] sm:$0xff] }
 0x3eb   : > { %3342 = vmatmul.mubr.bf16.gmra.mxu1 %v8999_v50  ;;  %3535 = vmatmul.mubr.bf16.gmra.mxu0 %v9001_v10  ;;  %v9259_v50 = vpop.f32.mrf.mxu0  ;;  %v7223_v10 = vld [vmem:[#allocation8 + $0xec] ss:$16 sps:$4 sm:$0xff]  }
 0x3ec   : > { %3351 = vmatprep.mubr.bf16.mxu1 %v9015_v24  ;;  %3544 = vmatprep.mubr.bf16.mxu0 %v9017_v48  ;;  %v9263_v24 = vpop.f32.mrf.mxu1 }
 0x3ed   : > { %4508 = vmatpush2.bf16.msra.mxu1 %v7188_v23  ;;  %v9265_v48 = vpop.f32.mrf.mxu0  ;;  %4701 = vmatpush2.bf16.msra.mxu0 %v7218_v7  ;;  %v7238_v23 = vld [vmem:[#allocation8 + $0x2ec] ss:$16 sps:$4 sm:$0xff]   ;;  %v10970_v7 = vld [vmem:[#allocation28_spill] sm:$0xff] }
 0x3ee   : > { %4509 = vmatprep.subr.bf16.mxu1 %v7193_v54  ;;  %v9269_v42 = vpop.f32.mrf.mxu1  ;;  %4702 = vmatprep.subr.bf16.mxu0 %v7229_v49  ;;  %v10973_v49 = vld [vmem:[#allocation30_spill] sm:$0xff] }
 0x3ef   : > { %v9271_v52 = vpop.f32.mrf.mxu0 }
 0x3f1   : > { %4510 = vmatpush2.bf16.msra.mxu1 %v7191_v29  ;;  %4703 = vmatpush2.bf16.msra.mxu0 %v7227_v0  ;;  %v10972_v0 = vld [vmem:[#allocation29_spill] sm:$0xff] }
 0x3f2   : > { %4865 = vmatprep.subr.bf16.mxu1 %v7223_v10  ;;  %5058 = vmatprep.subr.bf16.mxu0 %v7238_v23  ;;  %v10969_v10 = vld [vmem:[#allocation27_spill] sm:$0xff] }
 0x3f3   : > { %3352 = vmatmul.mubr.bf16.gmra.mxu1 %v9019_v33  ;;  %3545 = vmatmul.mubr.bf16.gmra.mxu0 %v9021_v51  ;;  %v9273_v33 = vpop.f32.mrf.mxu1  ;;  %v9275_v51 = vpop.f32.mrf.mxu0 }
 0x3f4   : > { %3361 = vmatprep.mubr.bf16.mxu1 %v9035_v43  ;;  %3554 = vmatprep.mubr.bf16.mxu0 %v9037_v63  ;;  %v10962_v43 = vld [vmem:[#allocation21_spill] sm:$0xff]  ;;  %v10963_v63 = vld [vmem:[#allocation22_spill] sm:$0xff] }
 0x3f5   : > { %v9281_v41 = vpop.f32.mrf.mxu1  ;;  %v9283_v30 = vpop.f32.mrf.mxu0 }
 0x3f7   : > { %v9285_v58 = vpop.f32.mrf.mxu1  ;;  %v9287_v57 = vpop.f32.mrf.mxu0 }
 0x3f9   : > { %v9293_v54 = vpop.f32.mrf.mxu1  ;;  %v9295_v9 = vpop.f32.mrf.mxu0 }
 0x3fa   : > { %10968 = vst [vmem:[#allocation20_spill] sm:$0xff] %v9295_v9  ;;  %v10989_v9 = vld [vmem:[#allocation18_spill] sm:$0xff] }
 0x3fb   : > { %3362 = vmatmul.mubr.bf16.gmra.mxu1 %v9039_v46  ;;  %3555 = vmatmul.mubr.bf16.gmra.mxu0 %v10961_v2  ;;  %v10965_v46 = vld [vmem:[#allocation24_spill] sm:$0xff]  ;;  %v9297_v35 = vpop.f32.mrf.mxu1  ;;  %v9299_v29 = vpop.f32.mrf.mxu0 }
 0x3fc   : > { %3371 = vmatprep.mubr.bf16.mxu1 %v10962_v43  ;;  %3564 = vmatprep.mubr.bf16.mxu0 %v10963_v63 }
 0x3fd   : > { %v9305_v5 = vpop.f32.mrf.mxu1  ;;  %v9307_v2 = vpop.f32.mrf.mxu0 }
 0x3fe   : > { %10971 = vst [vmem:[#allocation21_spill] sm:$0xff] %v9307_v2 }
 0x3ff   : > { %v9309_v43 = vpop.f32.mrf.mxu1  ;;  %v9311_v63 = vpop.f32.mrf.mxu0 }
 0x403   : > { %3372 = vmatmul.mubr.bf16.gmra.mxu1 %v10964_v18  ;;  %3565 = vmatmul.mubr.bf16.gmra.mxu0 %v10965_v46 }
 0x404   : > { %3381 = vmatprep.mubr.bf16.mxu1 %v10966_v4  ;;  %3574 = vmatprep.mubr.bf16.mxu0 %v10967_v17  ;;  %v10976_v4 = vld [vmem:[#allocation31_spill] sm:$0xff] }
 0x40b   : > { %3382 = vmatmul.mubr.bf16.gmra.mxu1 %v10969_v10  ;;  %3575 = vmatmul.mubr.bf16.gmra.mxu0 %v10970_v7 }
 0x40c   : > { %3391 = vmatprep.mubr.bf16.mxu1 %v9095_v60  ;;  %3584 = vmatprep.mubr.bf16.mxu0 %v9097_v36  ;;  %v10977_v60 = vld [vmem:[#allocation32_spill] sm:$0xff] }
 0x413   : > { %3392 = vmatmul.mubr.bf16.gmra.mxu1 %v10972_v0  ;;  %3585 = vmatmul.mubr.bf16.gmra.mxu0 %v10973_v49  ;;  %v10982_v49 = vld [vmem:[#allocation33_spill] sm:$0xff] }
 0x414   : > { %v9315_v18 = vpop.f32.mrf.mxu1  ;;  %v9317_v46 = vpop.f32.mrf.mxu0  ;;  %3401 = vmatprep.mubr.bf16.mxu1 %v10976_v4  ;;  %3594 = vmatprep.mubr.bf16.mxu0 %v10977_v60  ;;  %v10986_v60 = vld [vmem:[#allocation35_spill] sm:$0xff] }
 0x415   : > { %10974 = vst [vmem:[#allocation22_spill] sm:$0xff] %v9315_v18  ;;  %10975 = vst [vmem:[#allocation23_spill] sm:$0xff] %v9317_v46  ;;  %v10983_v18 = vld [vmem:[#allocation34_spill] sm:$0xff] }
 0x416   : > { %v9321_v36 = vpop.f32.mrf.mxu1  ;;  %v9323_v17 = vpop.f32.mrf.mxu0 }
 0x417   : > { %10978 = vst [vmem:[#allocation24_spill] sm:$0xff] %v9323_v17 }
 0x418   : > { %v9325_v23 = vpop.f32.mrf.mxu1  ;;  %v9327_v10 = vpop.f32.mrf.mxu0 }
 0x419   : > { %10979 = vst [vmem:[#allocation25_spill] sm:$0xff] %v9325_v23  ;;  %10980 = vst [vmem:[#allocation26_spill] sm:$0xff] %v9327_v10  ;;  %v7384_v10 = vld [vmem:[#allocation7] sm:$0xf] }
 0x41a   : > { %v9329_v7 = vpop.f32.mrf.mxu1  ;;  %v9331_v0 = vpop.f32.mrf.mxu0  ;;  %v9346_v2 = vrot.slane %v7384_v10, %v10989_v9 }
 0x41b   : > { %10981 = vst [vmem:[#allocation27_spill] sm:$0xff] %v9331_v0  ;;  %3402 = vmatmul.mubr.bf16.gmra.mxu1 %v10982_v49  ;;  %3595 = vmatmul.mubr.bf16.gmra.mxu0 %v10983_v18 }
 0x41c   : > { %v9335_v46 = vpop.f32.mrf.mxu1  ;;  %v9337_v4 = vpop.f32.mrf.mxu0  ;;  %3411 = vmatprep.mubr.bf16.mxu1 %v9135_v32  ;;  %3604 = vmatprep.mubr.bf16.mxu0 %v10986_v60  ;;  %v2894_v18 = vadd.f32 %v9191_v14, %v9346_v2  ;;  %v10993_v60 = vld [vmem:[#allocation36_spill] sm:$0xff] }
 0x41d   : > { %10984 = vst [vmem:[#allocation28_spill] sm:$0xff] %v9335_v46  ;;  %10985 = vst [vmem:[#allocation29_spill] sm:$0xff] %v9337_v4  ;;  %v10994_v46 = vld [vmem:[#allocation37_spill] sm:$0xff] }
 0x41e   : > { %v9341_v17 = vpop.f32.mrf.mxu1  ;;  %v9343_v23 = vpop.f32.mrf.mxu0  ;;  %v3087_v14 = vadd.f32 %v9193_v34, %v2894_v18 }
 0x41f   : > { %10987 = vst [vmem:[#allocation30_spill] sm:$0xff] %v9341_v17  ;;  %10988 = vst [vmem:[#allocation31_spill] sm:$0xff] %v9343_v23  ;;  %v2890_v23 = vadd.f32 %v9179_v26, %v9346_v2 }
 0x420   : > { %v9348_v0 = vpop.f32.mrf.mxu1  ;;  %v9350_v49 = vpop.f32.mrf.mxu0 }
 0x421   : > { %10990 = vst [vmem:[#allocation32_spill] sm:$0xff] %v9348_v0  ;;  %10991 = vst [vmem:[#allocation33_spill] sm:$0xff] %v9350_v49 }
 0x422   : > { %v9354_v4 = vpop.f32.mrf.mxu1  ;;  %v9356_v32 = vpop.f32.mrf.mxu0 }
 0x423   : > { %10992 = vst [vmem:[#allocation34_spill] sm:$0xff] %v9356_v32  ;;  %3412 = vmatmul.mubr.bf16.gmra.mxu1 %v10993_v60  ;;  %3605 = vmatmul.mubr.bf16.gmra.mxu0 %v10994_v46  ;;  %v10997_v60 = vld [vmem:[#allocation19_spill] sm:$0xff]  ;;  %v3083_v46 = vadd.f32 %v9181_v15, %v2890_v23  ;;  %v2900_v15 = vadd.f32 %v9203_v31, %v9346_v2 }
 0x424   : > { %v9362_v9 = vpop.f32.mrf.mxu1  ;;  %v9364_v17 = vpop.f32.mrf.mxu0  ;;  %3421 = vmatprep.mubr.bf16.mxu1 %v9155_v6  ;;  %3614 = vmatprep.mubr.bf16.mxu0 %v9157_v12  ;;  %v9374_v32 = vrot.slane %v7384_v10, %v10997_v60  ;;  %v2904_v12 = vadd.f32 %v9215_v53, %v9346_v2 }
 0x425   : > { %10995 = vst [vmem:[#allocation35_spill] sm:$0xff] %v9362_v9  ;;  %10996 = vst [vmem:[#allocation36_spill] sm:$0xff] %v9364_v17  ;;  %v9383_v17 = vpack.c.bf16 %v3087_v14, %v3083_v46 }
 0x426   : > { %v9369_v49 = vpop.f32.mrf.mxu1  ;;  %v9371_v0 = vpop.f32.mrf.mxu0  ;;  %v2892_v6 = vadd.f32 %v9185_v8, %v9374_v32  ;;  %v2888_v10 = vadd.f32 %v9173_v37, %v9374_v32  ;;  %v3097_v14 = vadd.f32 %v9217_v39, %v2904_v12  ;;  %v2914_v12 = vadd.f32 %v9239_v1, %v9346_v2  ;;  %v7224_v1 = vld [vmem:[#allocation8 + $0xc8] ss:$16 sps:$4 sm:$0xff]  }
 0x427   : > { %10998 = vst [vmem:[#allocation37_spill] sm:$0xff] %v9383_v17 }
 0x428   : > { %v9377_v26 = vpop.f32.mrf.mxu1  ;;  %v9379_v9 = vpop.f32.mrf.mxu0  ;;  %v3085_v53 = vadd.f32 %v9187_v25, %v2892_v6  ;;  %v2902_v25 = vadd.f32 %v9209_v16, %v9374_v32  ;;  %v7226_v6 = vld [vmem:[#allocation8 + $0xcc] ss:$16 sps:$4 sm:$0xff]  }
 0x42a   : > { %v9387_v34 = vpop.f32.mrf.mxu1  ;;  %v9389_v18 = vpop.f32.mrf.mxu0 }
 0x42b   : > { %3422 = vmatmul.mubr.bf16.gmra.mxu1 %v9159_v59  ;;  %3615 = vmatmul.mubr.bf16.gmra.mxu0 %v9161_v47  ;;  %v3081_v59 = vadd.f32 %v9175_v40, %v2888_v10  ;;  %v3093_v47 = vadd.f32 %v9205_v44, %v2900_v15  ;;  %v2898_v44 = vadd.f32 %v9197_v22, %v9374_v32 }
 0x42c   : > { %v9397_v8 = vpop.f32.mrf.mxu1  ;;  %v9399_v23 = vpop.f32.mrf.mxu0  ;;  %4511 = vmatprep.mubr.bf16.mxu1 %v9383_v17  ;;  %v2910_v10 = vadd.f32 %v9227_v20, %v9346_v2 }
 0x42d   : > { %10999 = vst [vmem:[#allocation38_spill] sm:$0xff] %v9397_v8  ;;  %11000 = vst [vmem:[#allocation39_spill] sm:$0xff] %v9399_v23  ;;  %v7221_v8 = vld [vmem:[#allocation8 + $0xe8] ss:$16 sps:$4 sm:$0xff]   ;;  %v9414_v23 = vpack.c.bf16 %v3085_v53, %v3081_v59  ;;  %v9418_v39 = vpack.c.bf16 %v3097_v14, %v3093_v47  ;;  %v3095_v53 = vadd.f32 %v9211_v3, %v2902_v25  ;;  %v7232_v14 = vld [vmem:[#allocation8 + $0xac] ss:$16 sps:$4 sm:$0xff]  }
 0x42e   : > { %v9404_v46 = vpop.f32.mrf.mxu1  ;;  %v9406_v37 = vpop.f32.mrf.mxu0  ;;  %v3107_v59 = vadd.f32 %v9241_v62, %v2914_v12  ;;  %v3091_v20 = vadd.f32 %v9199_v56, %v2898_v44  ;;  %v2912_v3 = vadd.f32 %v9233_v19, %v9374_v32  ;;  %v7235_v62 = vld [vmem:[#allocation8 + $0x8c] ss:$16 sps:$4 sm:$0xff]   ;;  %v2924_v56 = vadd.f32 %v9263_v24, %v9346_v2  ;;  %v7233_v24 = vld [vmem:[#allocation8 + $0x88] ss:$16 sps:$4 sm:$0xff]  }
 0x42f   : > { %11001 = vst [vmem:[#allocation40_spill] sm:$0xff] %v9414_v23  ;;  %11002 = vst [vmem:[#allocation41_spill] sm:$0xff] %v9418_v39  ;;  %v2908_v12 = vadd.f32 %v9221_v13, %v9374_v32  ;;  %v2920_v44 = vadd.f32 %v9251_v55, %v9346_v2 }
 0x430   : > { %v9410_v60 = vpop.f32.mrf.mxu1  ;;  %v9412_v31 = vpop.f32.mrf.mxu0 }
 0x431   : > { %v3101_v55 = vadd.f32 %v9223_v45, %v2908_v12  ;;  %v2934_v45 = vadd.f32 %v9285_v58, %v9346_v2  ;;  %v2930_v12 = vadd.f32 %v9273_v33, %v9346_v2  ;;  %v7242_v58 = vld [vmem:[#allocation8 + $0x48] ss:$16 sps:$4 sm:$0xff]  }
 0x432   : > { %v9422_v17 = vpop.f32.mrf.mxu1  ;;  %v9424_v40 = vpop.f32.mrf.mxu0 }
 0x433   : > { %4512 = vmatmul.mubr.bf16.vlgmr.msra.gmra.mxu1 %v9414_v23  ;;  %v3103_v23 = vadd.f32 %v9229_v27, %v2910_v10  ;;  %v3123_v33 = vadd.f32 %v9275_v51, %v2930_v12 }
 0x434   : > { %v9431_v15 = vpop.f32.mrf.mxu1  ;;  %v9433_v16 = vpop.f32.mrf.mxu0  ;;  %4521 = vmatprep.mubr.bf16.mxu1 %v9418_v39  ;;  %4866 = vmatpush1.bf16.msra.mxu1 %v7221_v8  ;;  %v7230_v8 = vld [vmem:[#allocation8 + $0xa8] ss:$16 sps:$4 sm:$0xff]   ;;  %v9448_v39 = vpack.c.bf16 %v3095_v53, %v3091_v20  ;;  %v3117_v53 = vadd.f32 %v9265_v48, %v2924_v56  ;;  %v7244_v48 = vld [vmem:[#allocation8 + $0x4c] ss:$16 sps:$4 sm:$0xff]   ;;  %v2918_v56 = vadd.f32 %v9245_v38, %v9374_v32 }
 0x435   : > { %11003 = vst [vmem:[#allocation42_spill] sm:$0xff] %v9431_v15  ;;  %11004 = vst [vmem:[#allocation43_spill] sm:$0xff] %v9433_v16  ;;  %4867 = vmatprep.subr.bf16.mxu1 %v7226_v6  ;;  %v9452_v25 = vpack.c.bf16 %v3107_v59, %v3103_v23  ;;  %v3105_v23 = vadd.f32 %v9235_v21, %v2912_v3  ;;  %v3113_v59 = vadd.f32 %v9253_v61, %v2920_v44 }
 0x436   : > { %v9438_v22 = vpop.f32.mrf.mxu1  ;;  %v9440_v47 = vpop.f32.mrf.mxu0  ;;  %11005 = vst [vmem:[#allocation44_spill] sm:$0xff] %v9448_v39  ;;  %v2922_v21 = vadd.f32 %v9257_v11, %v9374_v32  ;;  %v3111_v38 = vadd.f32 %v9247_v28, %v2918_v56  ;;  %v2944_v28 = vadd.f32 %v9309_v43, %v9346_v2  ;;  %v7259_v43 = vld [vmem:[#allocation8 + $0x1ec] ss:$16 sps:$4 sm:$0xff]  }
 0x437   : > { %11006 = vst [vmem:[#allocation45_spill] sm:$0xff] %v9452_v25  ;;  %v9486_v3 = vpack.c.bf16 %v3117_v53, %v3113_v59  ;;  %v7248_v59 = vld [vmem:[#allocation8 + $0x28] ss:$16 sps:$4 sm:$0xff]  }
 0x438   : > { %v9444_v15 = vpop.f32.mrf.mxu1  ;;  %v9446_v16 = vpop.f32.mrf.mxu0  ;;  %4868 = vmatpush1.bf16.msra.mxu1 %v7224_v1  ;;  %v7241_v1 = vld [vmem:[#allocation8 + $0x6c] ss:$16 sps:$4 sm:$0xff]   ;;  %v3137_v12 = vadd.f32 %v9311_v63, %v2944_v28  ;;  %v2938_v63 = vadd.f32 %v9293_v54, %v9374_v32  ;;  %v11015_v54 = vld [vmem:[#allocation20_spill] sm:$0xff] }
 0x439   : > { %4869 = vmatprep.subr.bf16.mxu1 %v7232_v14  ;;  %11008 = vst [vmem:[#allocation47_spill] sm:$0xff] %v9486_v3 }
 0x43a   : > { %v9456_v6 = vpop.f32.mrf.mxu1  ;;  %v9458_v27 = vpop.f32.mrf.mxu0 }
 0x43b   : > { %4522 = vmatmul.mubr.bf16.gmra.mxu1 %v9448_v39 }
 0x43c   : > { %v9465_v19 = vpop.f32.mrf.mxu1  ;;  %v9467_v10 = vpop.f32.mrf.mxu0  ;;  %4531 = vmatprep.mubr.bf16.mxu1 %v9452_v25  ;;  %4870 = vmatpush1.bf16.msra.mxu1 %v7230_v8  ;;  %v7239_v8 = vld [vmem:[#allocation8 + $0x68] ss:$16 sps:$4 sm:$0xff]   ;;  %v9482_v25 = vpack.c.bf16 %v3105_v23, %v3101_v55  ;;  %v7250_v23 = vld [vmem:[#allocation8 + $0x2c] ss:$16 sps:$4 sm:$0xff]  }
 0x43d   : > { %4871 = vmatprep.subr.bf16.mxu1 %v7235_v62 }
 0x43e   : > { %v9472_v13 = vpop.f32.mrf.mxu1  ;;  %v9474_v14 = vpop.f32.mrf.mxu0  ;;  %11007 = vst [vmem:[#allocation46_spill] sm:$0xff] %v9482_v25 }
 0x440   : > { %v9478_v20 = vpop.f32.mrf.mxu1  ;;  %v9480_v39 = vpop.f32.mrf.mxu0  ;;  %4872 = vmatpush1.bf16.msra.mxu1 %v7233_v24  ;;  %v3115_v24 = vadd.f32 %v9259_v50, %v2922_v21  ;;  %v7253_v50 = vld [vmem:[#allocation8 + $0xc] ss:$16 sps:$4 sm:$0xff]  }
 0x441   : > { %4873 = vmatprep.subr.bf16.mxu1 %v7241_v1  ;;  %v3127_v1 = vadd.f32 %v9287_v57, %v2934_v45  ;;  %v2928_v57 = vadd.f32 %v9269_v42, %v9374_v32  ;;  %v2940_v45 = vadd.f32 %v9297_v35, %v9346_v2  ;;  %v7257_v35 = vld [vmem:[#allocation8 + $0x1e8] ss:$16 sps:$4 sm:$0xff]  }
 0x442   : > { %v9490_v62 = vpop.f32.mrf.mxu1  ;;  %v9492_v61 = vpop.f32.mrf.mxu0 }
 0x443   : > { %4532 = vmatmul.mubr.bf16.gmra.mxu1 %v9482_v25  ;;  %v9512_v25 = vpack.c.bf16 %v3115_v24, %v3111_v38  ;;  %v9516_v21 = vpack.c.bf16 %v3127_v1, %v3123_v33  ;;  %v3121_v42 = vadd.f32 %v9271_v52, %v2928_v57  ;;  %v2942_v38 = vadd.f32 %v9305_v5, %v9374_v32  ;;  %v7260_v5 = vld [vmem:[#allocation8 + $0x1c8] ss:$16 sps:$4 sm:$0xff]   ;;  %v11014_v57 = vld [vmem:[#allocation27_spill] sm:$0xff] }
 0x444   : > { %v9499_v11 = vpop.f32.mrf.mxu1  ;;  %v9501_v44 = vpop.f32.mrf.mxu0  ;;  %4541 = vmatprep.mubr.bf16.mxu1 %v9486_v3  ;;  %4874 = vmatpush1.bf16.msra.mxu1 %v7239_v8  ;;  %v2932_v8 = vadd.f32 %v9281_v41, %v9374_v32  ;;  %v7251_v41 = vld [vmem:[#allocation8 + $0x8] ss:$16 sps:$4 sm:$0xff]   ;;  %v2954_v52 = vadd.f32 %v9329_v7, %v9346_v2  ;;  %v7268_v7 = vld [vmem:[#allocation8 + $0x1ac] ss:$16 sps:$4 sm:$0xff]  }
 0x445   : > { %4875 = vmatprep.subr.bf16.mxu1 %v7244_v48  ;;  %11009 = vst [vmem:[#allocation48_spill] sm:$0xff] %v9512_v25  ;;  %11010 = vst [vmem:[#allocation49_spill] sm:$0xff] %v9516_v21 }
 0x446   : > { %v9507_v53 = vpop.f32.mrf.mxu1  ;;  %v9509_v55 = vpop.f32.mrf.mxu0  ;;  %v3125_v56 = vadd.f32 %v9283_v30, %v2932_v8  ;;  %v7262_v30 = vld [vmem:[#allocation8 + $0x1cc] ss:$16 sps:$4 sm:$0xff]   ;;  %v2950_v8 = vadd.f32 %v9321_v36, %v9346_v2  ;;  %v7266_v36 = vld [vmem:[#allocation8 + $0x1a8] ss:$16 sps:$4 sm:$0xff]  }
 0x448   : > { %4876 = vmatpush1.bf16.msra.mxu1 %v7242_v58  ;;  %v9522_v48 = vpop.f32.mrf.mxu1  ;;  %v9524_v51 = vpop.f32.mrf.mxu0  ;;  %v9538_v1 = vpack.c.bf16 %v3125_v56, %v3121_v42 }
 0x449   : > { %4877 = vmatprep.subr.bf16.mxu1 %v7250_v23  ;;  %v3133_v23 = vadd.f32 %v9299_v29, %v2940_v45  ;;  %v3147_v45 = vadd.f32 %v11014_v57, %v2954_v52  ;;  %v2964_v52 = vadd.f32 %v9354_v4, %v9346_v2  ;;  %v7277_v4 = vld [vmem:[#allocation8 + $0x16c] ss:$16 sps:$4 sm:$0xff]  }
 0x44a   : > { %v9533_v58 = vpop.f32.mrf.mxu1  ;;  %v9535_v24 = vpop.f32.mrf.mxu0  ;;  %11011 = vst [vmem:[#allocation50_spill] sm:$0xff] %v9538_v1 }
 0x44b   : > { %4542 = vmatmul.mubr.bf16.gmra.mxu1 %v9512_v25  ;;  %v9542_v33 = vpack.c.bf16 %v3137_v12, %v3133_v23  ;;  %v11016_v12 = vld [vmem:[#allocation24_spill] sm:$0xff] }
 0x44c   : > { %4551 = vmatprep.mubr.bf16.mxu1 %v9516_v21  ;;  %4878 = vmatpush1.bf16.msra.mxu1 %v7248_v59  ;;  %v9548_v59 = vpop.f32.mrf.mxu1  ;;  %v9550_v29 = vpop.f32.mrf.mxu0  ;;  %v3143_v42 = vadd.f32 %v11016_v12, %v2950_v8 }
 0x44d   : > { %4879 = vmatprep.subr.bf16.mxu1 %v7253_v50  ;;  %11012 = vst [vmem:[#allocation51_spill] sm:$0xff] %v9542_v33  ;;  %v11013_v50 = vld [vmem:[#allocation21_spill] sm:$0xff] }
 0x44e   : > { %v3135_v28 = vadd.f32 %v11013_v50, %v2942_v38  ;;  %v9559_v56 = vpop.f32.mrf.mxu1  ;;  %v7271_v38 = vld [vmem:[#allocation8 + $0x18c] ss:$16 sps:$4 sm:$0xff]  }
 0x450   : > { %4880 = vmatpush1.bf16.msra.mxu1 %v7251_v41  ;;  %v3131_v41 = vadd.f32 %v11015_v54, %v2938_v63  ;;  %v11020_v63 = vld [vmem:[#allocation22_spill] sm:$0xff]  ;;  %v9574_v57 = vpop.f32.mrf.mxu1 }
 0x451   : > { %4881 = vmatprep.subr.bf16.mxu1 %v7259_v43  ;;  %v9561_v43 = vpop.f32.mrf.mxu0  ;;  %v2948_v50 = vadd.f32 %v11020_v63, %v9374_v32 }
 0x452   : > { %v9564_v23 = vpack.c.bf16 %v3135_v28, %v3131_v41  ;;  %v11023_v41 = vld [vmem:[#allocation34_spill] sm:$0xff]  ;;  %v9585_v63 = vpop.f32.mrf.mxu1 }
 0x453   : > { %4552 = vmatmul.mubr.bf16.gmra.mxu1 %v9538_v1  ;;  %v9576_v8 = vpop.f32.mrf.mxu0  ;;  %v3157_v12 = vadd.f32 %v11023_v41, %v2964_v52  ;;  %v7280_v52 = vld [vmem:[#allocation8 + $0x14c] ss:$16 sps:$4 sm:$0xff]   ;;  %v2970_v41 = vadd.f32 %v9369_v49, %v9346_v2  ;;  %v7284_v49 = vld [vmem:[#allocation8 + $0x128] ss:$16 sps:$4 sm:$0xff]  }
 0x454   : > { %4561 = vmatprep.mubr.bf16.mxu1 %v9542_v33  ;;  %4882 = vmatpush2.bf16.msra.mxu1 %v7257_v35  ;;  %11017 = vst [vmem:[#allocation21_spill] sm:$0xff] %v9564_v23  ;;  %v11018_v35 = vld [vmem:[#allocation25_spill] sm:$0xff] }
 0x455   : > { %4883 = vmatprep.subr.bf16.mxu1 %v7262_v30  ;;  %v2952_v33 = vadd.f32 %v11018_v35, %v9374_v32  ;;  %v9568_v30 = vpack.c.bf16 %v3147_v45, %v3143_v42  ;;  %v11022_v45 = vld [vmem:[#allocation26_spill] sm:$0xff]  ;;  %v11024_v42 = vld [vmem:[#allocation23_spill] sm:$0xff]  ;;  %v9587_v1 = vpop.f32.mrf.mxu0 }
 0x456   : > { %v3141_v35 = vadd.f32 %v11024_v42, %v2948_v50 }
 0x457   : > { %11019 = vst [vmem:[#allocation27_spill] sm:$0xff] %v9568_v30  ;;  %v3145_v54 = vadd.f32 %v11022_v45, %v2952_v33  ;;  %v2974_v45 = vadd.f32 %v9387_v34, %v9346_v2 }
 0x458   : > { %4884 = vmatpush2.bf16.msra.mxu1 %v7260_v5  ;;  %v11021_v5 = vld [vmem:[#allocation30_spill] sm:$0xff] }
 0x459   : > { %4885 = vmatprep.subr.bf16.mxu1 %v7268_v7  ;;  %v2960_v28 = vadd.f32 %v11021_v5, %v9346_v2  ;;  %v7269_v7 = vld [vmem:[#allocation8 + $0x188] ss:$16 sps:$4 sm:$0xff]   ;;  %v9590_v25 = vpack.c.bf16 %v3145_v54, %v3141_v35  ;;  %v7286_v35 = vld [vmem:[#allocation8 + $0x12c] ss:$16 sps:$4 sm:$0xff]  }
 0x45a   : > { %v7275_v5 = vld [vmem:[#allocation8 + $0x168] ss:$16 sps:$4 sm:$0xff]  }
 0x45b   : > { %4562 = vmatmul.mubr.bf16.gmra.mxu1 %v9564_v23  ;;  %v11025_v23 = vld [vmem:[#allocation31_spill] sm:$0xff]  ;;  %11026 = vst [vmem:[#allocation20_spill] sm:$0xff] %v9590_v25 }
 0x45c   : > { %4571 = vmatprep.mubr.bf16.mxu1 %v9568_v30  ;;  %4886 = vmatpush2.bf16.msra.mxu1 %v7266_v36  ;;  %v3153_v21 = vadd.f32 %v11025_v23, %v2960_v28  ;;  %v11027_v36 = vld [vmem:[#allocation32_spill] sm:$0xff] }
 0x45d   : > { %4887 = vmatprep.subr.bf16.mxu1 %v7271_v38  ;;  %v2962_v30 = vadd.f32 %v11027_v36, %v9374_v32  ;;  %v11030_v23 = vld [vmem:[#allocation28_spill] sm:$0xff]  ;;  %v3167_v36 = vadd.f32 %v9389_v18, %v2974_v45  ;;  %v2984_v18 = vadd.f32 %v9422_v17, %v9346_v2 }
 0x45e   : > { %v9598_v50 = vpack.c.bf16 %v3157_v12, %v3153_v21  ;;  %v2958_v28 = vadd.f32 %v11030_v23, %v9374_v32  ;;  %v7278_v21 = vld [vmem:[#allocation8 + $0x148] ss:$16 sps:$4 sm:$0xff]   ;;  %v11032_v23 = vld [vmem:[#allocation29_spill] sm:$0xff] }
 0x460   : > { %4888 = vmatpush2.bf16.msra.mxu1 %v7269_v7  ;;  %11029 = vst [vmem:[#allocation25_spill] sm:$0xff] %v9598_v50  ;;  %v3151_v3 = vadd.f32 %v11032_v23, %v2958_v28 }
 0x461   : > { %v9594_v33 = vpop.f32.mrf.mxu1  ;;  %v9596_v38 = vpop.f32.mrf.mxu0  ;;  %4889 = vmatprep.subr.bf16.mxu1 %v7277_v4  ;;  %v11031_v4 = vld [vmem:[#allocation33_spill] sm:$0xff] }
 0x462   : > { %11028 = vst [vmem:[#allocation24_spill] sm:$0xff] %v9596_v38  ;;  %v3155_v12 = vadd.f32 %v11031_v4, %v2962_v30 }
 0x463   : > { %v9604_v7 = vpop.f32.mrf.mxu1  ;;  %v9606_v54 = vpop.f32.mrf.mxu0  ;;  %4572 = vmatmul.mubr.bf16.gmra.mxu1 %v9590_v25  ;;  %v3163_v25 = vadd.f32 %v9371_v0, %v2970_v41  ;;  %v11035_v0 = vld [vmem:[#allocation35_spill] sm:$0xff] }
 0x464   : > { %4581 = vmatprep.mubr.bf16.mxu1 %v9598_v50  ;;  %4890 = vmatpush2.bf16.msra.mxu1 %v7275_v5  ;;  %v9620_v38 = vpack.c.bf16 %v3155_v12, %v3151_v3  ;;  %v2972_v5 = vadd.f32 %v9377_v26, %v9374_v32  ;;  %v2968_v45 = vadd.f32 %v11035_v0, %v9374_v32 }
 0x465   : > { %v9613_v42 = vpop.f32.mrf.mxu1  ;;  %v9615_v34 = vpop.f32.mrf.mxu0  ;;  %4891 = vmatprep.subr.bf16.mxu1 %v7280_v52  ;;  %v7289_v52 = vld [vmem:[#allocation8 + $0x10c] ss:$16 sps:$4 sm:$0xff]   ;;  %v9628_v50 = vpack.c.bf16 %v3167_v36, %v3163_v25  ;;  %v2980_v26 = vadd.f32 %v9404_v46, %v9346_v2  ;;  %v7287_v25 = vld [vmem:[#allocation8 + $0x108] ss:$16 sps:$4 sm:$0xff]   ;;  %v3177_v12 = vadd.f32 %v9424_v40, %v2984_v18  ;;  %v2994_v40 = vadd.f32 %v9456_v6, %v9346_v2 }
 0x466   : > { %11033 = vst [vmem:[#allocation22_spill] sm:$0xff] %v9620_v38  ;;  %v3165_v41 = vadd.f32 %v9379_v9, %v2972_v5  ;;  %v2982_v9 = vadd.f32 %v9410_v60, %v9374_v32  ;;  %v11045_v18 = vld [vmem:[#allocation38_spill] sm:$0xff] }
 0x467   : > { %v9624_v30 = vpop.f32.mrf.mxu1  ;;  %v9626_v4 = vpop.f32.mrf.mxu0  ;;  %11034 = vst [vmem:[#allocation30_spill] sm:$0xff] %v9628_v50  ;;  %v3173_v46 = vadd.f32 %v9406_v37, %v2980_v26  ;;  %v2990_v26 = vadd.f32 %v9438_v22, %v9346_v2  ;;  %v2992_v22 = vadd.f32 %v9444_v15, %v9374_v32  ;;  %v3000_v15 = vadd.f32 %v9472_v13, %v9346_v2 }
 0x468   : > { %4892 = vmatpush2.bf16.msra.mxu1 %v7278_v21  ;;  %v3175_v60 = vadd.f32 %v9412_v31, %v2982_v9 }
 0x469   : > { %4893 = vmatprep.subr.bf16.mxu1 %v7286_v35  ;;  %v11039_v35 = vld [vmem:[#allocation36_spill] sm:$0xff] }
 0x46a   : > { %v3161_v36 = vadd.f32 %v11039_v35, %v2968_v45  ;;  %v2978_v45 = vadd.f32 %v11045_v18, %v9374_v32  ;;  %v3183_v18 = vadd.f32 %v9440_v47, %v2990_v26 }
 0x46b   : > { %v9634_v28 = vpop.f32.mrf.mxu1  ;;  %v9636_v3 = vpop.f32.mrf.mxu0  ;;  %4582 = vmatmul.mubr.bf16.gmra.mxu1 %v9620_v38 }
 0x46c   : > { %11036 = vst [vmem:[#allocation26_spill] sm:$0xff] %v9634_v28  ;;  %11037 = vst [vmem:[#allocation34_spill] sm:$0xff] %v9636_v3  ;;  %4591 = vmatprep.mubr.bf16.mxu1 %v9628_v50  ;;  %4894 = vmatpush2.bf16.msra.mxu1 %v7284_v49  ;;  %v9654_v49 = vpack.c.bf16 %v3165_v41, %v3161_v36  ;;  %v11046_v36 = vld [vmem:[#allocation39_spill] sm:$0xff] }
 0x46d   : > { %v9643_v21 = vpop.f32.mrf.mxu1  ;;  %v9645_v17 = vpop.f32.mrf.mxu0  ;;  %4895 = vmatprep.subr.bf16.mxu1 %v7289_v52  ;;  %v9662_v52 = vpack.c.bf16 %v3177_v12, %v3173_v46  ;;  %v3187_v12 = vadd.f32 %v9458_v27, %v2994_v40  ;;  %v3171_v6 = vadd.f32 %v11046_v36, %v2978_v45  ;;  %v11047_v3 = vld [vmem:[#allocation15_spill] sm:$0xff]  ;;  %v3004_v40 = vadd.f32 %v9490_v62, %v9346_v2  ;;  %v11050_v45 = vld [vmem:[#allocation42_spill] sm:$0xff] }
 0x46e   : > { %11038 = vst [vmem:[#allocation23_spill] sm:$0xff] %v9645_v17  ;;  %11042 = vst [vmem:[#allocation28_spill] sm:$0xff] %v9654_v49  ;;  %v2988_v26 = vadd.f32 %v11050_v45, %v9374_v32 }
 0x46f   : > { %v9649_v23 = vpop.f32.mrf.mxu1  ;;  %v9651_v0 = vpop.f32.mrf.mxu0  ;;  %11044 = vst [vmem:[#allocation29_spill] sm:$0xff] %v9662_v52  ;;  %v9683_v27 = vpack.c.bf16 %v3187_v12, %v3183_v18  ;;  %v3185_v12 = vadd.f32 %v9446_v16, %v2992_v22 }
 0x470   : > { %11040 = vst [vmem:[#allocation31_spill] sm:$0xff] %v9649_v23  ;;  %11041 = vst [vmem:[#allocation32_spill] sm:$0xff] %v9651_v0  ;;  %4896 = vmatpush2.bf16.msra.mxu1 %v7287_v25  ;;  %v9678_v23 = vpack.c.bf16 %v3175_v60, %v3171_v6 }
 0x471   : > { %v9658_v5 = vpop.f32.mrf.mxu1  ;;  %v9660_v50 = vpop.f32.mrf.mxu0 }
 0x472   : > { %11043 = vst [vmem:[#allocation33_spill] sm:$0xff] %v9660_v50  ;;  %11049 = vst [vmem:[#allocation35_spill] sm:$0xff] %v9678_v23 }
 0x473   : > { %v3273_v35 = vpop.f32.mrf.mxu1  ;;  %v3466_v37 = vpop.f32.mrf.mxu0  ;;  %4592 = vmatmul.mubr.bf16.gmra.mxu1 %v9654_v49  ;;  %v11048_v49 = vld [vmem:[#allocation14_spill] sm:$0xff] }
 0x474   : > { %4601 = vmatprep.mubr.bf16.mxu1 %v9662_v52  ;;  %v3274_v31 = vadd.f32 %v3273_v35, %v11048_v49 }
 0x475   : > { %v3275_v25 = vpop.f32.mrf.mxu1  ;;  %v3468_v41 = vpop.f32.mrf.mxu0 }
 0x476   : > { %v3276_v0 = vadd.f32 %v3275_v25, %v11047_v3  ;;  %v3467_v62 = vadd.f32 %v3466_v37, %v3274_v31 }
 0x477   : > { %v3277_v46 = vpop.f32.mrf.mxu1  ;;  %v3470_v38 = vpop.f32.mrf.mxu0 }
 0x478   : > { %v3278_v28 = vadd.f32 %v3277_v46, %v11048_v49  ;;  %v3469_v35 = vadd.f32 %v3468_v41, %v3276_v0  ;;  %v7247_v0 = vld [vmem:[#allocation8 + $0x2cc] ss:$16 sps:$4 sm:$0xff]  }
 0x479   : > { %v3279_v9 = vpop.f32.mrf.mxu1  ;;  %v3472_v52 = vpop.f32.mrf.mxu0 }
 0x47a   : > { %v3280_v47 = vadd.f32 %v3279_v9, %v11047_v3  ;;  %v3471_v25 = vadd.f32 %v3470_v38, %v3278_v28  ;;  %v3197_v9 = vadd.f32 %v9492_v61, %v3004_v40  ;;  %v7236_v38 = vld [vmem:[#allocation8 + $0x2e8] ss:$16 sps:$4 sm:$0xff]   ;;  %v11051_v28 = vld [vmem:[#allocation43_spill] sm:$0xff]  ;;  %v3002_v61 = vadd.f32 %v9478_v20, %v9374_v32 }
 0x47b   : > { %v3283_v60 = vpop.f32.mrf.mxu1  ;;  %v3476_v36 = vpop.f32.mrf.mxu0  ;;  %4602 = vmatmul.mubr.bf16.gmra.mxu1 %v9678_v23  ;;  %v3181_v17 = vadd.f32 %v11051_v28, %v2988_v26  ;;  %v7245_v26 = vld [vmem:[#allocation8 + $0x2c8] ss:$16 sps:$4 sm:$0xff]  }
 0x47c   : > { %v3473_v6 = vadd.f32 %v3472_v52, %v3280_v47  ;;  %4611 = vmatprep.mubr.bf16.mxu1 %v9683_v27  ;;  %v9699_v23 = vpack.c.bf16 %v3471_v25, %v3467_v62  ;;  %v3193_v52 = vadd.f32 %v9474_v14, %v3000_v15  ;;  %v3284_v22 = vadd.f32 %v3283_v60, %v11048_v49  ;;  %v7256_v60 = vld [vmem:[#allocation8 + $0x2ac] ss:$16 sps:$4 sm:$0xff]   ;;  %v7254_v28 = vld [vmem:[#allocation8 + $0x2a8] ss:$16 sps:$4 sm:$0xff]  }
 0x47d   : > { %v3285_v46 = vpop.f32.mrf.mxu1  ;;  %v3478_v18 = vpop.f32.mrf.mxu0  ;;  %v9705_v37 = vpack.c.bf16 %v3185_v12, %v3181_v17  ;;  %v3014_v14 = vadd.f32 %v9533_v58, %v9346_v2  ;;  %v2998_v17 = vadd.f32 %v9465_v19, %v9374_v32  ;;  %v3195_v58 = vadd.f32 %v9480_v39, %v3002_v61 }
 0x47e   : > { %v9696_v45 = vpack.c.bf16 %v3473_v6, %v3469_v35  ;;  %v3286_v41 = vadd.f32 %v3285_v46, %v11047_v3  ;;  %v9711_v47 = vpack.c.bf16 %v3197_v9, %v3193_v52  ;;  %v3010_v35 = vadd.f32 %v9507_v53, %v9346_v2  ;;  %v7265_v52 = vld [vmem:[#allocation8 + $0x28c] ss:$16 sps:$4 sm:$0xff]  }
 0x47f   : > { %v3287_v50 = vpop.f32.mrf.mxu1  ;;  %v3480_v13 = vpop.f32.mrf.mxu0  ;;  %v3477_v62 = vadd.f32 %v3476_v36, %v3284_v22  ;;  %v3207_v19 = vadd.f32 %v9535_v24, %v3014_v14  ;;  %v7263_v14 = vld [vmem:[#allocation8 + $0x288] ss:$16 sps:$4 sm:$0xff]  }
 0x480   : > { %v3288_v16 = vadd.f32 %v3287_v50, %v11048_v49  ;;  %4704 = vmatprep.mubr.bf16.mxu0 %v9696_v45  ;;  %v3479_v6 = vadd.f32 %v3478_v18, %v3286_v41  ;;  %v3203_v41 = vadd.f32 %v9509_v55, %v3010_v35  ;;  %v3024_v55 = vadd.f32 %v9585_v63, %v9346_v2 }
 0x481   : > { %v3289_v31 = vpop.f32.mrf.mxu1  ;;  %v3482_v40 = vpop.f32.mrf.mxu0  ;;  %4705 = vmatmul.mubr.bf16.vlgmr.msra.gmra.mxu0 %v9699_v23 }
 0x482   : > { %v3290_v50 = vadd.f32 %v3289_v31, %v11047_v3  ;;  %5059 = vmatpush1.bf16.msra.mxu0 %v7236_v38  ;;  %v3481_v25 = vadd.f32 %v3480_v13, %v3288_v16  ;;  %v3191_v13 = vadd.f32 %v9467_v10, %v2998_v17  ;;  %v3012_v16 = vadd.f32 %v9522_v48, %v9374_v32 }
 0x483   : > { %v3293_v20 = vpop.f32.mrf.mxu1  ;;  %v3486_v15 = vpop.f32.mrf.mxu0  ;;  %4612 = vmatmul.mubr.bf16.gmra.mxu1 %v9705_v37  ;;  %5060 = vmatprep.subr.bf16.mxu0 %v7247_v0  ;;  %v9739_v31 = vpack.c.bf16 %v3207_v19, %v3203_v41 }
 0x484   : > { %v3483_v12 = vadd.f32 %v3482_v40, %v3290_v50  ;;  %4621 = vmatprep.mubr.bf16.mxu1 %v9711_v47  ;;  %v9727_v0 = vpack.c.bf16 %v3481_v25, %v3477_v62  ;;  %v9733_v24 = vpack.c.bf16 %v3195_v58, %v3191_v13  ;;  %v3294_v10 = vadd.f32 %v3293_v20, %v11048_v49  ;;  %v7274_v25 = vld [vmem:[#allocation8 + $0x26c] ss:$16 sps:$4 sm:$0xff]  }
 0x485   : > { %v3295_v46 = vpop.f32.mrf.mxu1  ;;  %v3488_v9 = vpop.f32.mrf.mxu0  ;;  %v3008_v50 = vadd.f32 %v9499_v11, %v9374_v32  ;;  %v3020_v20 = vadd.f32 %v9559_v56, %v9346_v2  ;;  %v3205_v63 = vadd.f32 %v9524_v51, %v3012_v16  ;;  %v3217_v11 = vadd.f32 %v9587_v1, %v3024_v55  ;;  %v7283_v13 = vld [vmem:[#allocation8 + $0x24c] ss:$16 sps:$4 sm:$0xff]   ;;  %v7281_v16 = vld [vmem:[#allocation8 + $0x248] ss:$16 sps:$4 sm:$0xff]  }
 0x486   : > { %v9724_v38 = vpack.c.bf16 %v3483_v12, %v3479_v6  ;;  %5061 = vmatpush1.bf16.msra.mxu0 %v7245_v26  ;;  %v3296_v39 = vadd.f32 %v3295_v46, %v11047_v3  ;;  %v3487_v6 = vadd.f32 %v3486_v15, %v3294_v10  ;;  %v7272_v46 = vld [vmem:[#allocation8 + $0x268] ss:$16 sps:$4 sm:$0xff]   ;;  %v3018_v10 = vadd.f32 %v9548_v59, %v9374_v32  ;;  %v7292_v55 = vld [vmem:[#allocation8 + $0x22c] ss:$16 sps:$4 sm:$0xff]  }
 0x487   : > { %v3297_v53 = vpop.f32.mrf.mxu1  ;;  %v3490_v18 = vpop.f32.mrf.mxu0  ;;  %5062 = vmatprep.subr.bf16.mxu0 %v7256_v60  ;;  %v3201_v19 = vadd.f32 %v9501_v44, %v3008_v50 }
 0x488   : > { %v3298_v36 = vadd.f32 %v3297_v53, %v11048_v49  ;;  %4714 = vmatprep.mubr.bf16.mxu0 %v9724_v38  ;;  %v3489_v60 = vadd.f32 %v3488_v9, %v3296_v39  ;;  %v3213_v53 = vadd.f32 %v9561_v43, %v3020_v20  ;;  %v3034_v43 = vadd.f32 %v9624_v30, %v9346_v2 }
 0x489   : > { %v3299_v61 = vpop.f32.mrf.mxu1  ;;  %v3492_v22 = vpop.f32.mrf.mxu0  ;;  %4715 = vmatmul.mubr.bf16.gmra.mxu0 %v9727_v0  ;;  %v9761_v1 = vpack.c.bf16 %v3205_v63, %v3201_v19 }
 0x48a   : > { %v3300_v40 = vadd.f32 %v3299_v61, %v11047_v3  ;;  %5063 = vmatpush1.bf16.msra.mxu0 %v7254_v28  ;;  %v3491_v26 = vadd.f32 %v3490_v18, %v3298_v36  ;;  %v3022_v18 = vadd.f32 %v9574_v57, %v9374_v32  ;;  %v9767_v39 = vpack.c.bf16 %v3217_v11, %v3213_v53 }
 0x48b   : > { %v3303_v48 = vpop.f32.mrf.mxu1  ;;  %v3496_v17 = vpop.f32.mrf.mxu0  ;;  %4622 = vmatmul.mubr.bf16.gmra.mxu1 %v9733_v24  ;;  %5064 = vmatprep.subr.bf16.mxu0 %v7265_v52  ;;  %v3227_v59 = vadd.f32 %v9626_v4, %v3034_v43  ;;  %v3032_v11 = vadd.f32 %v9613_v42, %v9374_v32  ;;  %v3028_v53 = vadd.f32 %v9594_v33, %v9374_v32  ;;  %v11052_v33 = vld [vmem:[#allocation33_spill] sm:$0xff] }
 0x48c   : > { %v3493_v35 = vadd.f32 %v3492_v22, %v3300_v40  ;;  %4631 = vmatprep.mubr.bf16.mxu1 %v9739_v31  ;;  %v9755_v28 = vpack.c.bf16 %v3491_v26, %v3487_v6  ;;  %v3304_v44 = vadd.f32 %v3303_v48, %v11048_v49  ;;  %v3030_v40 = vadd.f32 %v9604_v7, %v9346_v2 }
 0x48d   : > { %v3305_v12 = vpop.f32.mrf.mxu1  ;;  %v3498_v58 = vpop.f32.mrf.mxu0  ;;  %v3215_v30 = vadd.f32 %v9576_v8, %v3022_v18  ;;  %v7298_v18 = vld [vmem:[#allocation8 + $0x3ec] ss:$16 sps:$4 sm:$0xff]  }
 0x48e   : > { %v9752_v62 = vpack.c.bf16 %v3493_v35, %v3489_v60  ;;  %5065 = vmatpush1.bf16.msra.mxu0 %v7263_v14  ;;  %v3306_v51 = vadd.f32 %v3305_v12, %v11047_v3  ;;  %v3497_v26 = vadd.f32 %v3496_v17, %v3304_v44  ;;  %v7290_v60 = vld [vmem:[#allocation8 + $0x228] ss:$16 sps:$4 sm:$0xff]   ;;  %v3211_v35 = vadd.f32 %v9550_v29, %v3018_v10  ;;  %v7295_v12 = vld [vmem:[#allocation8 + $0x20c] ss:$16 sps:$4 sm:$0xff]  }
 0x48f   : > { %v3307_v56 = vpop.f32.mrf.mxu1  ;;  %v3500_v9 = vpop.f32.mrf.mxu0  ;;  %5066 = vmatprep.subr.bf16.mxu0 %v7274_v25  ;;  %v3040_v44 = vadd.f32 %v9643_v21, %v9346_v2 }
 0x490   : > { %v3308_v15 = vadd.f32 %v3307_v56, %v11048_v49  ;;  %4724 = vmatprep.mubr.bf16.mxu0 %v9752_v62  ;;  %v3499_v14 = vadd.f32 %v3498_v58, %v3306_v51  ;;  %v3223_v58 = vadd.f32 %v9606_v54, %v3030_v40  ;;  %v9789_v4 = vpack.c.bf16 %v3215_v30, %v3211_v35  ;;  %v11054_v30 = vld [vmem:[#allocation23_spill] sm:$0xff] }
 0x491   : > { %v3309_v52 = vpop.f32.mrf.mxu1  ;;  %v3502_v41 = vpop.f32.mrf.mxu0  ;;  %4725 = vmatmul.mubr.bf16.gmra.mxu0 %v9755_v28  ;;  %v3044_v54 = vadd.f32 %v9658_v5, %v9346_v2  ;;  %v3225_v5 = vadd.f32 %v9615_v34, %v3032_v11 }
 0x492   : > { %v3310_v36 = vadd.f32 %v3309_v52, %v11047_v3  ;;  %5067 = vmatpush1.bf16.msra.mxu0 %v7272_v46  ;;  %v3501_v61 = vadd.f32 %v3500_v9, %v3308_v15  ;;  %v9795_v56 = vpack.c.bf16 %v3227_v59, %v3223_v58  ;;  %v7299_v58 = vld [vmem:[#allocation8 + $0x3c8] ss:$16 sps:$4 sm:$0xff]  }
 0x493   : > { %v3313_v57 = vpop.f32.mrf.mxu1  ;;  %v3506_v22 = vpop.f32.mrf.mxu0  ;;  %4632 = vmatmul.mubr.bf16.gmra.mxu1 %v9761_v1  ;;  %5068 = vmatprep.subr.bf16.mxu0 %v7283_v13  ;;  %v7293_v13 = vld [vmem:[#allocation8 + $0x208] ss:$16 sps:$4 sm:$0xff]   ;;  %v3237_v10 = vadd.f32 %v11052_v33, %v3044_v54 }
 0x494   : > { %v3503_v50 = vadd.f32 %v3502_v41, %v3310_v36  ;;  %4641 = vmatprep.mubr.bf16.mxu1 %v9767_v39  ;;  %v9783_v63 = vpack.c.bf16 %v3501_v61, %v3497_v26  ;;  %v3314_v29 = vadd.f32 %v3313_v57, %v11048_v49  ;;  %v7296_v57 = vld [vmem:[#allocation8 + $0x3e8] ss:$16 sps:$4 sm:$0xff]   ;;  %v3233_v26 = vadd.f32 %v11054_v30, %v3040_v44 }
 0x495   : > { %v3315_v48 = vpop.f32.mrf.mxu1  ;;  %v3508_v25 = vpop.f32.mrf.mxu0 }
 0x496   : > { %v9780_v20 = vpack.c.bf16 %v3503_v50, %v3499_v14  ;;  %5069 = vmatpush1.bf16.msra.mxu0 %v7281_v16  ;;  %v3316_v8 = vadd.f32 %v3315_v48, %v11047_v3  ;;  %v3507_v43 = vadd.f32 %v3506_v22, %v3314_v29  ;;  %v7301_v50 = vld [vmem:[#allocation8 + $0x3cc] ss:$16 sps:$4 sm:$0xff]  }
 0x497   : > { %v3317_v7 = vpop.f32.mrf.mxu1  ;;  %v3510_v6 = vpop.f32.mrf.mxu0  ;;  %5070 = vmatprep.subr.bf16.mxu0 %v7292_v55  ;;  %v11053_v55 = vld [vmem:[#allocation24_spill] sm:$0xff] }
 0x498   : > { %v3318_v17 = vadd.f32 %v3317_v7, %v11048_v49  ;;  %4734 = vmatprep.mubr.bf16.mxu0 %v9780_v20  ;;  %v3509_v52 = vadd.f32 %v3508_v25, %v3316_v8  ;;  %v3221_v40 = vadd.f32 %v11053_v55, %v3028_v53  ;;  %v11055_v25 = vld [vmem:[#allocation31_spill] sm:$0xff]  ;;  %v11056_v8 = vld [vmem:[#allocation26_spill] sm:$0xff] }
 0x499   : > { %v3319_v46 = vpop.f32.mrf.mxu1  ;;  %v3512_v19 = vpop.f32.mrf.mxu0  ;;  %4735 = vmatmul.mubr.bf16.gmra.mxu0 %v9783_v63  ;;  %v3042_v59 = vadd.f32 %v11055_v25, %v9374_v32 }
 0x49a   : > { %v3320_v9 = vadd.f32 %v3319_v46, %v11047_v3  ;;  %5071 = vmatpush1.bf16.msra.mxu0 %v7290_v60  ;;  %v3511_v51 = vadd.f32 %v3510_v6, %v3318_v17  ;;  %v9817_v48 = vpack.c.bf16 %v3225_v5, %v3221_v40  ;;  %v9823_v6 = vpack.c.bf16 %v3237_v10, %v3233_v26 }
 0x49b   : > { %v3323_v42 = vpop.f32.mrf.mxu1  ;;  %v3516_v15 = vpop.f32.mrf.mxu0  ;;  %4642 = vmatmul.mubr.bf16.gmra.mxu1 %v9789_v4  ;;  %5072 = vmatprep.subr.bf16.mxu0 %v7295_v12  ;;  %v3038_v17 = vadd.f32 %v11056_v8, %v9374_v32  ;;  %v7302_v32 = vld [vmem:[#allocation8 + $0x3a8] ss:$16 sps:$4 sm:$0xff]  }
 0x49c   : > { %v3513_v41 = vadd.f32 %v3512_v19, %v3320_v9  ;;  %4651 = vmatprep.mubr.bf16.mxu1 %v9795_v56  ;;  %v9811_v14 = vpack.c.bf16 %v3511_v51, %v3507_v43  ;;  %v3324_v60 = vadd.f32 %v3323_v42, %v11048_v49  ;;  %v7304_v19 = vld [vmem:[#allocation8 + $0x3ac] ss:$16 sps:$4 sm:$0xff]   ;;  %v7308_v8 = vld [vmem:[#allocation8 + $0x368] ss:$16 sps:$4 sm:$0xff]  }
 0x49d   : > { %v3325_v36 = vpop.f32.mrf.mxu1  ;;  %v3518_v16 = vpop.f32.mrf.mxu0 }
 0x49e   : > { %v9808_v61 = vpack.c.bf16 %v3513_v41, %v3509_v52  ;;  %5073 = vmatpush1.bf16.msra.mxu0 %v7293_v13  ;;  %v3326_v34 = vadd.f32 %v3325_v36, %v11047_v3  ;;  %v11057_v13 = vld [vmem:[#allocation32_spill] sm:$0xff]  ;;  %v3517_v51 = vadd.f32 %v3516_v15, %v3324_v60  ;;  %v11058_v52 = vld [vmem:[#allocation34_spill] sm:$0xff] }
 0x49f   : > { %v3327_v2 = vpop.f32.mrf.mxu1  ;;  %v3520_v21 = vpop.f32.mrf.mxu0  ;;  %5074 = vmatprep.subr.bf16.mxu0 %v7298_v18  ;;  %v3235_v53 = vadd.f32 %v11057_v13, %v3042_v59  ;;  %v3231_v41 = vadd.f32 %v11058_v52, %v3038_v17  ;;  %v11059_v59 = vld [vmem:[#allocation37_spill] sm:$0xff]  ;;  %v7320_v60 = vld [vmem:[%s10883_s9 + $0x78] sm:$0xff]  }
 0x4a0   : > { %v3328_v22 = vadd.f32 %v3327_v2, %v11048_v49  ;;  %4744 = vmatprep.mubr.bf16.mxu0 %v9808_v61  ;;  %v3519_v54 = vadd.f32 %v3518_v16, %v3326_v34  ;;  %v7307_v16 = vld [vmem:[#allocation8 + $0x38c] ss:$16 sps:$4 sm:$0xff]   ;;  %6482 = vmatprep.subr.bf16.mxu1 %v7320_v60 }
 0x4a1   : > { %v3329_v35 = vpop.f32.mrf.mxu1  ;;  %v3522_v7 = vpop.f32.mrf.mxu0  ;;  %4745 = vmatmul.mubr.bf16.gmra.mxu0 %v9811_v14  ;;  %v9839_v15 = vpack.c.bf16 %v3235_v53, %v3231_v41  ;;  %v7310_v34 = vld [vmem:[#allocation8 + $0x36c] ss:$16 sps:$4 sm:$0xff]  }
 0x4a2   : > { %v3330_v12 = vadd.f32 %v3329_v35, %v11047_v3  ;;  %5075 = vmatpush2.bf16.msra.mxu0 %v7296_v57  ;;  %v3521_v11 = vadd.f32 %v3520_v21, %v3328_v22  ;;  %v7305_v21 = vld [vmem:[#allocation8 + $0x388] ss:$16 sps:$4 sm:$0xff]   ;;  %v7319_v60 = vld [vmem:[#allocation8 + $0x30c] ss:$16 sps:$4 sm:$0xff]  }
 0x4a3   : > { %v3333_v29 = vpop.f32.mrf.mxu1  ;;  %v3526_v46 = vpop.f32.mrf.mxu0  ;;  %4652 = vmatmul.mubr.bf16.gmra.mxu1 %v9817_v48  ;;  %5076 = vmatprep.subr.bf16.mxu0 %v7301_v50 }
 0x4a4   : > { %v3523_v9 = vadd.f32 %v3522_v7, %v3330_v12  ;;  %4661 = vmatprep.mubr.bf16.mxu1 %v9823_v6  ;;  %v9834_v5 = vpack.c.bf16 %v3521_v11, %v3517_v51  ;;  %v3334_v57 = vadd.f32 %v3333_v29, %v11048_v49 }
 0x4a5   : > { %v3335_v42 = vpop.f32.mrf.mxu1  ;;  %v3528_v18 = vpop.f32.mrf.mxu0 }
 0x4a6   : > { %v9831_v44 = vpack.c.bf16 %v3523_v9, %v3519_v54  ;;  %5077 = vmatpush2.bf16.msra.mxu0 %v7299_v58  ;;  %v3336_v33 = vadd.f32 %v3335_v42, %v11047_v3  ;;  %v3527_v35 = vadd.f32 %v3526_v46, %v3334_v57  ;;  %v7321_v46 = vld [vmem:[%s10883_s9 + $0x38] sm:$0xff]   ;;  %v7322_v42 = vld [vmem:[%s10883_s9 + $0x70] sm:$0xff]   ;;  %v11061_v57 = vld [vmem:[#allocation41_spill] sm:$0xff] }
 0x4a7   : > { %v3337_v43 = vpop.f32.mrf.mxu1  ;;  %v3530_v36 = vpop.f32.mrf.mxu0  ;;  %5078 = vmatprep.subr.bf16.mxu0 %v7304_v19  ;;  %v7313_v19 = vld [vmem:[#allocation8 + $0x34c] ss:$16 sps:$4 sm:$0xff]  }
 0x4a8   : > { %v3338_v10 = vadd.f32 %v3337_v43, %v11048_v49  ;;  %4754 = vmatprep.mubr.bf16.mxu0 %v9831_v44  ;;  %v3529_v22 = vadd.f32 %v3528_v18, %v3336_v33 }
 0x4a9   : > { %v3339_v55 = vpop.f32.mrf.mxu1  ;;  %v3532_v40 = vpop.f32.mrf.mxu0  ;;  %4755 = vmatmul.mubr.bf16.gmra.mxu0 %v9834_v5 }
 0x4aa   : > { %v3340_v2 = vadd.f32 %v3339_v55, %v11047_v3  ;;  %5079 = vmatpush2.bf16.msra.mxu0 %v7302_v32  ;;  %v3531_v50 = vadd.f32 %v3530_v36, %v3338_v10  ;;  %v7311_v32 = vld [vmem:[#allocation8 + $0x348] ss:$16 sps:$4 sm:$0xff]  }
 0x4ab   : > { %v3343_v30 = vpop.f32.mrf.mxu1  ;;  %v3536_v26 = vpop.f32.mrf.mxu0  ;;  %4662 = vmatmul.mubr.bf16.gmra.mxu1 %v9839_v15  ;;  %5080 = vmatprep.subr.bf16.mxu0 %v7307_v16  ;;  %v11060_v36 = vld [vmem:[#allocation40_spill] sm:$0xff]  ;;  %v7316_v16 = vld [vmem:[#allocation8 + $0x32c] ss:$16 sps:$4 sm:$0xff]  }
 0x4ac   : > { %v3533_v25 = vadd.f32 %v3532_v40, %v3340_v2  ;;  %4897 = vmatprep.mubr.bf16.mxu1 %v11059_v59  ;;  %v9851_v17 = vpack.c.bf16 %v3531_v50, %v3527_v35  ;;  %v3344_v13 = vadd.f32 %v3343_v30, %v11048_v49  ;;  %v7323_v55 = vld [vmem:[%s10883_s9 + $0x30] sm:$0xff]   ;;  %v7324_v50 = vld [vmem:[%s10883_s9 + $0x68] sm:$0xff]  }
 0x4ad   : > { %v3345_v7 = vpop.f32.mrf.mxu1  ;;  %v3538_v12 = vpop.f32.mrf.mxu0 }
 0x4ae   : > { %v9849_v58 = vpack.c.bf16 %v3533_v25, %v3529_v22  ;;  %5081 = vmatpush2.bf16.msra.mxu0 %v7305_v21  ;;  %v3346_v54 = vadd.f32 %v3345_v7, %v11047_v3  ;;  %v3537_v40 = vadd.f32 %v3536_v26, %v3344_v13  ;;  %v7325_v7 = vld [vmem:[%s10883_s9 + $0x28] sm:$0xff]  }
 0x4af   : > { %v3347_v11 = vpop.f32.mrf.mxu1  ;;  %v3540_v29 = vpop.f32.mrf.mxu0  ;;  %5082 = vmatprep.subr.bf16.mxu0 %v7310_v34  ;;  %v7314_v34 = vld [vmem:[#allocation8 + $0x328] ss:$16 sps:$4 sm:$0xff]  }
 0x4b0   : > { %v3348_v9 = vadd.f32 %v3347_v11, %v11048_v49  ;;  %4764 = vmatprep.mubr.bf16.mxu0 %v9849_v58  ;;  %v3539_v33 = vadd.f32 %v3538_v12, %v3346_v54  ;;  %v7317_v54 = vld [vmem:[#allocation8 + $0x308] ss:$16 sps:$4 sm:$0xff]  }
 0x4b1   : > { %v3349_v53 = vpop.f32.mrf.mxu1  ;;  %v3542_v51 = vpop.f32.mrf.mxu0  ;;  %4765 = vmatmul.mubr.bf16.gmra.mxu0 %v9851_v17 }
 0x4b2   : > { %v3350_v18 = vadd.f32 %v3349_v53, %v11047_v3  ;;  %5083 = vmatpush2.bf16.msra.mxu0 %v7308_v8  ;;  %v3541_v52 = vadd.f32 %v3540_v29, %v3348_v9  ;;  %v7326_v29 = vld [vmem:[%s10883_s9 + $0x60] sm:$0xff]  }
 0x4b3   : > { %v3353_v41 = vpop.f32.mrf.mxu1  ;;  %v3546_v43 = vpop.f32.mrf.mxu0  ;;  %4898 = vmatmul.mubr.bf16.vlgmr.msra.gmra.mxu1 %v11060_v36  ;;  %5084 = vmatprep.subr.bf16.mxu0 %v7313_v19  ;;  %v11062_v53 = vld [vmem:[#allocation44_spill] sm:$0xff] }
 0x4b4   : > { %v3543_v10 = vadd.f32 %v3542_v51, %v3350_v18  ;;  %4907 = vmatprep.mubr.bf16.mxu1 %v11061_v57  ;;  %6483 = vmatpush3.bf16.msra.mxu1 %v7321_v46  ;;  %v9875_v22 = vpack.c.bf16 %v3541_v52, %v3537_v40  ;;  %v3354_v12 = vadd.f32 %v3353_v41, %v11048_v49  ;;  %v11063_v18 = vld [vmem:[#allocation45_spill] sm:$0xff] }
 0x4b5   : > { %v3355_v2 = vpop.f32.mrf.mxu1  ;;  %v3548_v21 = vpop.f32.mrf.mxu0  ;;  %6484 = vmatprep.subr.bf16.mxu1 %v7322_v42 }
 0x4b6   : > { %v9873_v30 = vpack.c.bf16 %v3543_v10, %v3539_v33  ;;  %5085 = vmatpush2.bf16.msra.mxu0 %v7311_v32  ;;  %v3356_v35 = vadd.f32 %v3355_v2, %v11047_v3  ;;  %v7327_v32 = vld [vmem:[%s10883_s9 + $0x20] sm:$0xff]   ;;  %v3547_v52 = vadd.f32 %v3546_v43, %v3354_v12  ;;  %v7329_v43 = vld [vmem:[%s10883_s9 + $0x18] sm:$0xff]  }
 0x4b7   : > { %v3357_v25 = vpop.f32.mrf.mxu1  ;;  %v3550_v59 = vpop.f32.mrf.mxu0  ;;  %5086 = vmatprep.subr.bf16.mxu0 %v7316_v16  ;;  %v7328_v16 = vld [vmem:[%s10883_s9 + $0x58] sm:$0xff]  }
 0x4b8   : > { %v3358_v26 = vadd.f32 %v3357_v25, %v11048_v49  ;;  %4774 = vmatprep.mubr.bf16.mxu0 %v9873_v30  ;;  %6485 = vmatpush3.bf16.msra.mxu1 %v7323_v55  ;;  %v3549_v51 = vadd.f32 %v3548_v21, %v3356_v35  ;;  %v7330_v25 = vld [vmem:[%s10883_s9 + $0x50] sm:$0xff]  }
 0x4b9   : > { %v3359_v8 = vpop.f32.mrf.mxu1  ;;  %v3552_v11 = vpop.f32.mrf.mxu0  ;;  %4775 = vmatmul.mubr.bf16.gmra.mxu0 %v9875_v22  ;;  %6486 = vmatprep.subr.bf16.mxu1 %v7324_v50 }
 0x4ba   : > { %v3360_v19 = vadd.f32 %v3359_v8, %v11047_v3  ;;  %5087 = vmatpush2.bf16.msra.mxu0 %v7314_v34  ;;  %v3551_v9 = vadd.f32 %v3550_v59, %v3358_v26 }
 0x4bb   : > { %v3363_v46 = vpop.f32.mrf.mxu1  ;;  %v3556_v13 = vpop.f32.mrf.mxu0  ;;  %4908 = vmatmul.mubr.bf16.gmra.mxu1 %v11062_v53  ;;  %5088 = vmatprep.subr.bf16.mxu0 %v7319_v60 }
 0x4bc   : > { %v3553_v42 = vadd.f32 %v3552_v11, %v3360_v19  ;;  %4917 = vmatprep.mubr.bf16.mxu1 %v11063_v18  ;;  %6487 = vmatpush3.bf16.msra.mxu1 %v7325_v7  ;;  %v9899_v10 = vpack.c.bf16 %v3551_v9, %v3547_v52  ;;  %v3364_v21 = vadd.f32 %v3363_v46, %v11048_v49  ;;  %v11064_v7 = vld [vmem:[#allocation46_spill] sm:$0xff]  ;;  %v11065_v11 = vld [vmem:[#allocation47_spill] sm:$0xff] }
 0x4bd   : > { %v3365_v41 = vpop.f32.mrf.mxu1  ;;  %v3558_v36 = vpop.f32.mrf.mxu0  ;;  %6488 = vmatprep.subr.bf16.mxu1 %v7326_v29  ;;  %v7331_v29 = vld [vmem:[%s10883_s9 + $0x10] sm:$0xff]   ;;  %v7332_v46 = vld [vmem:[%s10883_s9 + $0x48] sm:$0xff]  }
 0x4be   : > { %v9897_v33 = vpack.c.bf16 %v3553_v42, %v3549_v51  ;;  %5089 = vmatpush2.bf16.msra.mxu0 %v7317_v54  ;;  %v3366_v40 = vadd.f32 %v3365_v41, %v11047_v3  ;;  %v3557_v19 = vadd.f32 %v3556_v13, %v3364_v21  ;;  %v7333_v13 = vld [vmem:[%s10883_s9 + $0x8] sm:$0xff]   ;;  %v11066_v21 = vld [vmem:[#allocation48_spill] sm:$0xff] }
 0x4bf   : > { %v3367_v57 = vpop.f32.mrf.mxu1  ;;  %v3560_v55 = vpop.f32.mrf.mxu0 }
 0x4c0   : > { %v3368_v2 = vadd.f32 %v3367_v57, %v11048_v49  ;;  %4784 = vmatprep.mubr.bf16.mxu0 %v9897_v33  ;;  %6489 = vmatpush3.bf16.msra.mxu1 %v7327_v32  ;;  %v3559_v12 = vadd.f32 %v3558_v36, %v3366_v40  ;;  %v7334_v57 = vld [vmem:[%s10883_s9 + $0x40] sm:$0xff]  }
 0x4c1   : > { %v3369_v50 = vpop.f32.mrf.mxu1  ;;  %v3562_v34 = vpop.f32.mrf.mxu0  ;;  %4785 = vmatmul.mubr.bf16.gmra.mxu0 %v9899_v10  ;;  %6490 = vmatprep.subr.bf16.mxu1 %v7328_v16 }
 0x4c2   : > { %v3370_v59 = vadd.f32 %v3369_v50, %v11047_v3  ;;  %v3561_v60 = vadd.f32 %v3560_v55, %v3368_v2 }
 0x4c3   : > { %v3373_v35 = vpop.f32.mrf.mxu1  ;;  %v3566_v26 = vpop.f32.mrf.mxu0  ;;  %4918 = vmatmul.mubr.bf16.gmra.mxu1 %v11064_v7 }
 0x4c4   : > { %v3563_v8 = vadd.f32 %v3562_v34, %v3370_v59  ;;  %4927 = vmatprep.mubr.bf16.mxu1 %v11065_v11  ;;  %6491 = vmatpush3.bf16.msra.mxu1 %v7329_v43  ;;  %v9923_v51 = vpack.c.bf16 %v3561_v60, %v3557_v19  ;;  %v3374_v41 = vadd.f32 %v3373_v35, %v11048_v49  ;;  %v7335_v59 = vld [vmem:[%s10883_s9] sm:$0xff]   ;;  %v7336_v60 = vld [vmem:[%s10883_s9 + $0xf8] sm:$0xff]  }
 0x4c5   : > { %v3375_v54 = vpop.f32.mrf.mxu1  ;;  %v3568_v9 = vpop.f32.mrf.mxu0  ;;  %6492 = vmatprep.subr.bf16.mxu1 %v7330_v25  ;;  %v11067_v25 = vld [vmem:[#allocation49_spill] sm:$0xff]  ;;  %6594 = vmatprep.subr.bf16.mxu0 %v7336_v60 }
 0x4c6   : > { %v9921_v53 = vpack.c.bf16 %v3563_v8, %v3559_v12  ;;  %v3376_v32 = vadd.f32 %v3375_v54, %v11047_v3  ;;  %v3567_v35 = vadd.f32 %v3566_v26, %v3374_v41  ;;  %v11068_v41 = vld [vmem:[#allocation50_spill] sm:$0xff] }
 0x4c7   : > { %v3377_v42 = vpop.f32.mrf.mxu1  ;;  %v3570_v18 = vpop.f32.mrf.mxu0 }
 0x4c8   : > { %v3378_v52 = vadd.f32 %v3377_v42, %v11048_v49  ;;  %4794 = vmatprep.mubr.bf16.mxu0 %v9921_v53  ;;  %6493 = vmatpush3.bf16.msra.mxu1 %v7331_v29  ;;  %v3569_v50 = vadd.f32 %v3568_v9, %v3376_v32 }
 0x4c9   : > { %v3379_v36 = vpop.f32.mrf.mxu1  ;;  %v3572_v16 = vpop.f32.mrf.mxu0  ;;  %4795 = vmatmul.mubr.bf16.gmra.mxu0 %v9923_v51  ;;  %6494 = vmatprep.subr.bf16.mxu1 %v7332_v46 }
 0x4ca   : > { %v3380_v55 = vadd.f32 %v3379_v36, %v11047_v3  ;;  %v3571_v40 = vadd.f32 %v3570_v18, %v3378_v52 }
 0x4cb   : > { %v3383_v2 = vpop.f32.mrf.mxu1  ;;  %v3576_v43 = vpop.f32.mrf.mxu0  ;;  %4928 = vmatmul.mubr.bf16.gmra.mxu1 %v11066_v21 }
 0x4cc   : > { %v3573_v34 = vadd.f32 %v3572_v16, %v3380_v55  ;;  %4937 = vmatprep.mubr.bf16.mxu1 %v11067_v25  ;;  %6495 = vmatpush3.bf16.msra.mxu1 %v7333_v13  ;;  %v9947_v11 = vpack.c.bf16 %v3571_v40, %v3567_v35  ;;  %v3384_v46 = vadd.f32 %v3383_v2, %v11048_v49 }
 0x4cd   : > { %v3385_v7 = vpop.f32.mrf.mxu1  ;;  %v3578_v12 = vpop.f32.mrf.mxu0  ;;  %6496 = vmatprep.subr.bf16.mxu1 %v7334_v57  ;;  %v11069_v57 = vld [vmem:[#allocation51_spill] sm:$0xff] }
 0x4ce   : > { %v9945_v8 = vpack.c.bf16 %v3573_v34, %v3569_v50  ;;  %v3386_v54 = vadd.f32 %v3385_v7, %v11047_v3  ;;  %v3577_v55 = vadd.f32 %v3576_v43, %v3384_v46 }
 0x4cf   : > { %v3387_v29 = vpop.f32.mrf.mxu1  ;;  %v3580_v19 = vpop.f32.mrf.mxu0 }
 0x4d0   : > { %v3388_v9 = vadd.f32 %v3387_v29, %v11048_v49  ;;  %4804 = vmatprep.mubr.bf16.mxu0 %v9945_v8  ;;  %6497 = vmatpush3.bf16.msra.mxu1 %v7335_v59  ;;  %v3579_v36 = vadd.f32 %v3578_v12, %v3386_v54 }
 0x4d1   : > { %v3389_v26 = vpop.f32.mrf.mxu1  ;;  %v3582_v42 = vpop.f32.mrf.mxu0  ;;  %4805 = vmatmul.mubr.bf16.gmra.mxu0 %v9947_v11 }
 0x4d2   : > { %v3390_v18 = vadd.f32 %v3389_v26, %v11047_v3  ;;  %v3581_v32 = vadd.f32 %v3580_v19, %v3388_v9  ;;  %v11070_v9 = vld [vmem:[#allocation21_spill] sm:$0xff] }
 0x4d3   : > { %v3393_v52 = vpop.f32.mrf.mxu1  ;;  %v3586_v13 = vpop.f32.mrf.mxu0  ;;  %4938 = vmatmul.mubr.bf16.gmra.mxu1 %v11068_v41 }
 0x4d4   : > { %v3583_v16 = vadd.f32 %v3582_v42, %v3390_v18  ;;  %4947 = vmatprep.mubr.bf16.mxu1 %v11069_v57  ;;  %v9959_v2 = vpack.c.bf16 %v3581_v32, %v3577_v55  ;;  %v3394_v35 = vadd.f32 %v3393_v52, %v11048_v49  ;;  %v11071_v42 = vld [vmem:[#allocation27_spill] sm:$0xff] }
 0x4d5   : > { %v3395_v40 = vpop.f32.mrf.mxu1  ;;  %v3588_v21 = vpop.f32.mrf.mxu0 }
 0x4d6   : > { %v9957_v50 = vpack.c.bf16 %v3583_v16, %v3579_v36  ;;  %v3396_v59 = vadd.f32 %v3395_v40, %v11047_v3  ;;  %v3587_v18 = vadd.f32 %v3586_v13, %v3394_v35 }
 0x4d7   : > { %v3397_v34 = vpop.f32.mrf.mxu1  ;;  %v3590_v25 = vpop.f32.mrf.mxu0 }
 0x4d8   : > { %v3398_v60 = vadd.f32 %v3397_v34, %v11048_v49  ;;  %4814 = vmatprep.mubr.bf16.mxu0 %v9957_v50  ;;  %v3589_v46 = vadd.f32 %v3588_v21, %v3396_v59 }
 0x4d9   : > { %v3399_v7 = vpop.f32.mrf.mxu1  ;;  %v3592_v12 = vpop.f32.mrf.mxu0  ;;  %4815 = vmatmul.mubr.bf16.gmra.mxu0 %v9959_v2 }
 0x4da   : > { %v3400_v43 = vadd.f32 %v3399_v7, %v11047_v3  ;;  %v3591_v29 = vadd.f32 %v3590_v25, %v3398_v60  ;;  %v11072_v7 = vld [vmem:[#allocation20_spill] sm:$0xff] }
 0x4db   : > { %v3403_v19 = vpop.f32.mrf.mxu1  ;;  %v3596_v54 = vpop.f32.mrf.mxu0  ;;  %4948 = vmatmul.mubr.bf16.gmra.mxu1 %v11070_v9 }
 0x4dc   : > { %v3593_v26 = vadd.f32 %v3592_v12, %v3400_v43  ;;  %4957 = vmatprep.mubr.bf16.mxu1 %v11071_v42  ;;  %v9971_v52 = vpack.c.bf16 %v3591_v29, %v3587_v18  ;;  %v3404_v21 = vadd.f32 %v3403_v19, %v11048_v49  ;;  %v11073_v29 = vld [vmem:[#allocation25_spill] sm:$0xff] }
 0x4dd   : > { %v3405_v32 = vpop.f32.mrf.mxu1  ;;  %v3598_v41 = vpop.f32.mrf.mxu0 }
 0x4de   : > { %v9969_v36 = vpack.c.bf16 %v3593_v26, %v3589_v46  ;;  %v3406_v55 = vadd.f32 %v3405_v32, %v11047_v3  ;;  %v3597_v9 = vadd.f32 %v3596_v54, %v3404_v21 }
 0x4df   : > { %v3407_v16 = vpop.f32.mrf.mxu1  ;;  %v3600_v57 = vpop.f32.mrf.mxu0 }
 0x4e0   : > { %v3408_v40 = vadd.f32 %v3407_v16, %v11048_v49  ;;  %4824 = vmatprep.mubr.bf16.mxu0 %v9969_v36  ;;  %v3599_v12 = vadd.f32 %v3598_v41, %v3406_v55 }
 0x4e1   : > { %v3409_v34 = vpop.f32.mrf.mxu1  ;;  %v3602_v25 = vpop.f32.mrf.mxu0  ;;  %4825 = vmatmul.mubr.bf16.gmra.mxu0 %v9971_v52 }
 0x4e2   : > { %v3410_v13 = vadd.f32 %v3409_v34, %v11047_v3  ;;  %v3601_v59 = vadd.f32 %v3600_v57, %v3408_v40 }
 0x4e3   : > { %v3413_v60 = vpop.f32.mrf.mxu1  ;;  %v3606_v35 = vpop.f32.mrf.mxu0  ;;  %4958 = vmatmul.mubr.bf16.gmra.mxu1 %v11072_v7 }
 0x4e4   : > { %v3603_v43 = vadd.f32 %v3602_v25, %v3410_v13  ;;  %4967 = vmatprep.mubr.bf16.mxu1 %v11073_v29  ;;  %v9983_v19 = vpack.c.bf16 %v3601_v59, %v3597_v9  ;;  %v3414_v41 = vadd.f32 %v3413_v60, %v11048_v49  ;;  %v11075_v13 = vld [vmem:[#allocation22_spill] sm:$0xff] }
 0x4e5   : > { %v3415_v46 = vpop.f32.mrf.mxu1  ;;  %v3608_v26 = vpop.f32.mrf.mxu0 }
 0x4e6   : > { %v9981_v42 = vpack.c.bf16 %v3603_v43, %v3599_v12  ;;  %11074 = vst [vmem:[#allocation36_spill] sm:$0xff] %v9983_v19  ;;  %v3416_v16 = vadd.f32 %v3415_v46, %v11047_v3  ;;  %v11076_v12 = vld [vmem:[#allocation30_spill] sm:$0xff]  ;;  %v3607_v43 = vadd.f32 %v3606_v35, %v3414_v41 }
 0x4e7   : > { %v3417_v18 = vpop.f32.mrf.mxu1  ;;  %v3610_v32 = vpop.f32.mrf.mxu0 }
 0x4e8   : > { %v3418_v57 = vadd.f32 %v3417_v18, %v11048_v49  ;;  %4834 = vmatprep.mubr.bf16.mxu0 %v9981_v42  ;;  %v3609_v59 = vadd.f32 %v3608_v26, %v3416_v16 }
 0x4e9   : > { %v3419_v55 = vpop.f32.mrf.mxu1  ;;  %v3612_v40 = vpop.f32.mrf.mxu0  ;;  %4835 = vmatmul.mubr.bf16.gmra.mxu0 %v9983_v19 }
 0x4ea   : > { %v3420_v54 = vadd.f32 %v3419_v55, %v11047_v3  ;;  %v3611_v21 = vadd.f32 %v3610_v32, %v3418_v57 }
 0x4eb   : > { %v3423_v34 = vpop.f32.mrf.mxu1  ;;  %v3616_v25 = vpop.f32.mrf.mxu0  ;;  %4968 = vmatmul.mubr.bf16.gmra.mxu1 %v11075_v13 }
 0x4ec   : > { %v3613_v7 = vadd.f32 %v3612_v40, %v3420_v54  ;;  %4977 = vmatprep.mubr.bf16.mxu1 %v11076_v12  ;;  %v9995_v60 = vpack.c.bf16 %v3611_v21, %v3607_v43  ;;  %v3424_v26 = vadd.f32 %v3423_v34, %v11048_v49  ;;  %v11077_v54 = vld [vmem:[#allocation28_spill] sm:$0xff] }
 0x4ed   : > { %v3425_v29 = vpop.f32.mrf.mxu1  ;;  %v3618_v9 = vpop.f32.mrf.mxu0 }
 0x4ee   : > { %v9993_v46 = vpack.c.bf16 %v3613_v7, %v3609_v59  ;;  %v3426_v55 = vadd.f32 %v3425_v29, %v11047_v3  ;;  %v11078_v59 = vld [vmem:[#allocation29_spill] sm:$0xff]  ;;  %v3617_v7 = vadd.f32 %v3616_v25, %v3424_v26  ;;  %v11079_v29 = vld [vmem:[#allocation35_spill] sm:$0xff] }
 0x4ef   : > { %v3427_v18 = vpop.f32.mrf.mxu1  ;;  %v3620_v19 = vpop.f32.mrf.mxu0  ;;  %v7340_v26 = vld [vmem:[%s10883_s9 + $0xe8] sm:$0xff]  }
 0x4f0   : > { %v3428_v32 = vadd.f32 %v3427_v18, %v11048_v49  ;;  %4844 = vmatprep.mubr.bf16.mxu0 %v9993_v46  ;;  %v3619_v21 = vadd.f32 %v3618_v9, %v3426_v55  ;;  %v7337_v9 = vld [vmem:[%s10883_s9 + $0xb8] sm:$0xff]   ;;  %v7338_v55 = vld [vmem:[%s10883_s9 + $0xf0] sm:$0xff]  }
 0x4f1   : > { %v3429_v16 = vpop.f32.mrf.mxu1  ;;  %4845 = vmatmul.mubr.bf16.gmra.mxu0 %v9995_v60  ;;  %v3622_v41 = vpop.f32.mrf.mxu0 }
 0x4f2   : > { %v3430_v35 = vadd.f32 %v3429_v16, %v11047_v3  ;;  %v3621_v57 = vadd.f32 %v3620_v19, %v3428_v32 }
 0x4f3   : > { %v10003_v40 = vpop.f32.mrf.mxu1  ;;  %4978 = vmatmul.mubr.bf16.gmra.mxu1 %v11077_v54 }
 0x4f4   : > { %v3623_v13 = vadd.f32 %v3622_v41, %v3430_v35  ;;  %4987 = vmatprep.mubr.bf16.mxu1 %v11078_v59  ;;  %v10011_v49 = vpack.c.bf16 %v3621_v57, %v3617_v7  ;;  %v7344_v41 = vld [vmem:[%s10883_s9 + $0xd8] sm:$0xff]  }
 0x4f5   : > { %v10007_v12 = vpop.f32.mrf.mxu1 }
 0x4f6   : > { %v10009_v43 = vpack.c.bf16 %v3623_v13, %v3619_v21 }
 0x4f7   : > { %v10013_v34 = vpop.f32.mrf.mxu1 }
 0x4f8   : > { %4854 = vmatprep.mubr.bf16.mxu0 %v10009_v43 }
 0x4f9   : > { %v10016_v3 = vpop.f32.mrf.mxu1  ;;  %4855 = vmatmul.mubr.bf16.gmra.mxu0 %v10011_v49 }
 0x4fa   : > { %5090 = vmatprep.mubr.bf16.mxu0 %v9696_v45 }
 0x4fb   : > { %v10020_v19 = vpop.f32.mrf.mxu1  ;;  %4988 = vmatmul.mubr.bf16.gmra.mxu1 %v11079_v29 }
 0x4fc   : > { %4997 = vmatprep.mubr.bf16.mxu1 %v9683_v27  ;;  %v7339_v27 = vld [vmem:[%s10883_s9 + $0xb0] sm:$0xff]  }
 0x4fd   : > { %v10024_v25 = vpop.f32.mrf.mxu1 }
 0x4ff   : > { %v10029_v18 = vpop.f32.mrf.mxu1 }
 0x501   : > { %v10034_v32 = vpop.f32.mrf.mxu1  ;;  %5091 = vmatmul.mubr.bf16.vlgmr.msra.gmra.mxu0 %v9699_v23  ;;  %v7341_v23 = vld [vmem:[%s10883_s9 + $0xa8] sm:$0xff]  }
 0x502   : > { %5100 = vmatprep.mubr.bf16.mxu0 %v9724_v38  ;;  %6595 = vmatpush3.bf16.msra.mxu0 %v7337_v9  ;;  %v7349_v9 = vld [vmem:[%s10883_s9 + $0x88] sm:$0xff]  }
 0x503   : > { %v10041_v45 = vpop.f32.mrf.mxu1  ;;  %4998 = vmatmul.mubr.bf16.gmra.mxu1 %v9705_v37  ;;  %6596 = vmatprep.subr.bf16.mxu0 %v7338_v55  ;;  %v7342_v37 = vld [vmem:[%s10883_s9 + $0xe0] sm:$0xff]  }
 0x504   : > { %5007 = vmatprep.mubr.bf16.mxu1 %v9711_v47  ;;  %v7343_v47 = vld [vmem:[%s10883_s9 + $0xa0] sm:$0xff]  }
 0x505   : > { %v10048_v16 = vpop.f32.mrf.mxu1 }
 0x506   : > { %6597 = vmatpush3.bf16.msra.mxu0 %v7339_v27 }
 0x507   : > { %v10053_v38 = vpop.f32.mrf.mxu1  ;;  %6598 = vmatprep.subr.bf16.mxu0 %v7340_v26 }
 0x509   : > { %v10058_v35 = vpop.f32.mrf.mxu1  ;;  %5101 = vmatmul.mubr.bf16.gmra.mxu0 %v9727_v0 }
 0x50a   : > { %5110 = vmatprep.mubr.bf16.mxu0 %v9752_v62  ;;  %6599 = vmatpush3.bf16.msra.mxu0 %v7341_v23  ;;  %v7345_v62 = vld [vmem:[%s10883_s9 + $0x98] sm:$0xff]  }
 0x50b   : > { %v10065_v57 = vpop.f32.mrf.mxu1  ;;  %5008 = vmatmul.mubr.bf16.gmra.mxu1 %v9733_v24  ;;  %6600 = vmatprep.subr.bf16.mxu0 %v7342_v37  ;;  %v7351_v37 = vld [vmem:[%s10883_s9 + $0x80] sm:$0xff]  }
 0x50c   : > { %5017 = vmatprep.mubr.bf16.mxu1 %v9739_v31 }
 0x50d   : > { %v10072_v54 = vpop.f32.mrf.mxu1 }
 0x50e   : > { %6601 = vmatpush3.bf16.msra.mxu0 %v7343_v47 }
 0x50f   : > { %v10074_v0 = vpop.f32.mrf.mxu1  ;;  %6602 = vmatprep.subr.bf16.mxu0 %v7344_v41  ;;  %v11086_v41 = vld [vmem:[#allocation18_spill] sm:$0xff] }
 0x511   : > { %v10079_v21 = vpop.f32.mrf.mxu1  ;;  %5111 = vmatmul.mubr.bf16.gmra.mxu0 %v9755_v28 }
 0x512   : > { %5120 = vmatprep.mubr.bf16.mxu0 %v9780_v20  ;;  %6603 = vmatpush3.bf16.msra.mxu0 %v7345_v62 }
 0x513   : > { %v10083_v24 = vpop.f32.mrf.mxu1  ;;  %5018 = vmatmul.mubr.bf16.gmra.mxu1 %v9761_v1  ;;  %v7346_v1 = vld [vmem:[%s10883_s9 + $0xd0] sm:$0xff]  }
 0x514   : > { %5027 = vmatprep.mubr.bf16.mxu1 %v9767_v39  ;;  %6604 = vmatprep.subr.bf16.mxu0 %v7346_v1  ;;  %v11087_v1 = vld [vmem:[#allocation19_spill] sm:$0xff] }
 0x515   : > { %v10087_v31 = vpop.f32.mrf.mxu1 }
 0x517   : > { %v10089_v13 = vpop.f32.mrf.mxu1 }
 0x519   : > { %v10091_v59 = vpop.f32.mrf.mxu1  ;;  %5121 = vmatmul.mubr.bf16.gmra.mxu0 %v9783_v63  ;;  %v7347_v63 = vld [vmem:[%s10883_s9 + $0x90] sm:$0xff]  }
 0x51a   : > { %5130 = vmatprep.mubr.bf16.mxu0 %v9808_v61  ;;  %6605 = vmatpush3.bf16.msra.mxu0 %v7347_v63 }
 0x51b   : > { %v10095_v28 = vpop.f32.mrf.mxu1  ;;  %5028 = vmatmul.mubr.bf16.gmra.mxu1 %v9789_v4 }
 0x51c   : > { %5037 = vmatprep.mubr.bf16.mxu1 %v9795_v56 }
 0x51d   : > { %v10102_v39 = vpop.f32.mrf.mxu1 }
 0x51f   : > { %v10104_v20 = vpop.f32.mrf.mxu1 }
 0x521   : > { %v10109_v61 = vpop.f32.mrf.mxu1  ;;  %5131 = vmatmul.mubr.bf16.gmra.mxu0 %v9811_v14 }
 0x522   : > { %5140 = vmatprep.mubr.bf16.mxu0 %v9831_v44 }
 0x523   : > { %v10113_v4 = vpop.f32.mrf.mxu1  ;;  %5038 = vmatmul.mubr.bf16.gmra.mxu1 %v9817_v48  ;;  %v7348_v48 = vld [vmem:[%s10883_s9 + $0xc8] sm:$0xff]  }
 0x524   : > { %5047 = vmatprep.mubr.bf16.mxu1 %v9823_v6  ;;  %6606 = vmatprep.subr.bf16.mxu0 %v7348_v48 }
 0x525   : > { %v10117_v56 = vpop.f32.mrf.mxu1  ;;  %6607 = vmatpush3.bf16.msra.mxu0 %v7349_v9 }
 0x527   : > { %v10119_v7 = vpop.f32.mrf.mxu1 }
 0x529   : > { %v10121_v29 = vpop.f32.mrf.mxu1  ;;  %5141 = vmatmul.mubr.bf16.gmra.mxu0 %v9834_v5 }
 0x52a   : > { %5150 = vmatprep.mubr.bf16.mxu0 %v9849_v58 }
 0x52b   : > { %v10125_v14 = vpop.f32.mrf.mxu1  ;;  %5048 = vmatmul.mubr.bf16.gmra.mxu1 %v9839_v15 }
 0x52d   : > { %v10131_v44 = vpop.f32.mrf.mxu1 }
 0x52f   : > { %v10133_v6 = vpop.f32.mrf.mxu1 }
 0x531   : > { %v10138_v5 = vpop.f32.mrf.mxu1  ;;  %5151 = vmatmul.mubr.bf16.gmra.mxu0 %v9851_v17  ;;  %v7350_v17 = vld [vmem:[%s10883_s9 + $0xc0] sm:$0xff]  }
 0x532   : > { %5160 = vmatprep.mubr.bf16.mxu0 %v9873_v30  ;;  %6608 = vmatprep.subr.bf16.mxu0 %v7350_v17 }
 0x533   : > { %v10142_v15 = vpop.f32.mrf.mxu1  ;;  %6609 = vmatpush3.bf16.msra.mxu0 %v7351_v37 }
 0x534   : > { %11080 = vst [vmem:[#allocation38_spill] sm:$0xff] %v10142_v15 }
 0x535   : > { %v10144_v58 = vpop.f32.mrf.mxu1 }
 0x537   : > { %v10146_v55 = vpop.f32.mrf.mxu1 }
 0x539   : > { %v10148_v27 = vpop.f32.mrf.mxu1  ;;  %5161 = vmatmul.mubr.bf16.gmra.mxu0 %v9875_v22 }
 0x53a   : > { %11081 = vst [vmem:[#allocation39_spill] sm:$0xff] %v10148_v27  ;;  %5170 = vmatprep.mubr.bf16.mxu0 %v9897_v33  ;;  %v7385_v33 = vld [vmem:[#allocation10] sm:$0xf] }
 0x53b   : > { %v10152_v26 = vpop.f32.mrf.mxu1  ;;  %v10168_v62 = vrot.slane %v7385_v33, %v11086_v41  ;;  %v10172_v63 = vrot.slane %v7385_v33, %v11087_v1 }
 0x53c   : > { %11082 = vst [vmem:[#allocation15_spill] sm:$0xff] %v10152_v26 }
 0x53d   : > { %v10157_v30 = vpop.f32.mrf.mxu1  ;;  %v4518_v17 = vadd.f32 %v10013_v34, %v10172_v63  ;;  %v4520_v41 = vadd.f32 %v10016_v3, %v10168_v62 }
 0x53e   : > { %11083 = vst [vmem:[#allocation14_spill] sm:$0xff] %v10157_v30 }
 0x53f   : > { %v10159_v23 = vpop.f32.mrf.mxu1 }
 0x540   : > { %11084 = vst [vmem:[#allocation42_spill] sm:$0xff] %v10159_v23 }
 0x541   : > { %v10164_v47 = vpop.f32.mrf.mxu1  ;;  %v4706_v22 = vpop.f32.mrf.mxu0  ;;  %5171 = vmatmul.mubr.bf16.gmra.mxu0 %v9899_v10  ;;  %v4516_v10 = vadd.f32 %v10007_v12, %v10168_v62 }
 0x542   : > { %11085 = vst [vmem:[#allocation43_spill] sm:$0xff] %v10164_v47  ;;  %5180 = vmatprep.mubr.bf16.mxu0 %v9921_v53  ;;  %v4514_v53 = vadd.f32 %v10003_v40, %v10172_v63  ;;  %v4528_v40 = vadd.f32 %v10029_v18, %v10172_v63 }
 0x543   : > { %v10174_v48 = vpop.f32.mrf.mxu1  ;;  %v4708_v9 = vpop.f32.mrf.mxu0 }
 0x544   : > { %11088 = vst [vmem:[#allocation33_spill] sm:$0xff] %v10174_v48  ;;  %v4709_v48 = vadd.f32 %v4708_v9, %v4516_v10  ;;  %v4707_v23 = vadd.f32 %v4706_v22, %v4514_v53  ;;  %v4526_v22 = vadd.f32 %v10024_v25, %v10168_v62 }
 0x545   : > { %v10178_v26 = vpop.f32.mrf.mxu1  ;;  %v4710_v47 = vpop.f32.mrf.mxu0 }
 0x546   : > { %11089 = vst [vmem:[#allocation24_spill] sm:$0xff] %v10178_v26  ;;  %v4711_v37 = vadd.f32 %v4710_v47, %v4518_v17 }
 0x547   : > { %v10186_v33 = vpop.f32.mrf.mxu1  ;;  %v4712_v1 = vpop.f32.mrf.mxu0 }
 0x548   : > { %v4713_v30 = vadd.f32 %v4712_v1, %v4520_v41  ;;  %v5251_v12 = vpack.c.bf16 %v4711_v37, %v4707_v23 }
 0x549   : > { %v10188_v34 = vpop.f32.mrf.mxu1  ;;  %v4716_v26 = vpop.f32.mrf.mxu0  ;;  %5181 = vmatmul.mubr.bf16.gmra.mxu0 %v9923_v51  ;;  %v4530_v51 = vadd.f32 %v10034_v32, %v10168_v62 }
 0x54a   : > { %v5252_v15 = vpack.c.bf16 %v4713_v30, %v4709_v48  ;;  %5190 = vmatprep.mubr.bf16.mxu0 %v9945_v8  ;;  %v4524_v8 = vadd.f32 %v10020_v19, %v10172_v63  ;;  %v4538_v19 = vadd.f32 %v10053_v38, %v10172_v63 }
 0x54b   : > { %v10192_v3 = vpop.f32.mrf.mxu1  ;;  %v4718_v27 = vpop.f32.mrf.mxu0 }
 0x54c   : > { %5603 = vmatprep.mubr.bf16.mxu1 %v5252_v15  ;;  %v4719_v48 = vadd.f32 %v4718_v27, %v4526_v22  ;;  %v4717_v18 = vadd.f32 %v4716_v26, %v4524_v8  ;;  %v4536_v26 = vadd.f32 %v10048_v16, %v10168_v62 }
 0x54d   : > { %v10196_v47 = vpop.f32.mrf.mxu1  ;;  %v4720_v9 = vpop.f32.mrf.mxu0  ;;  %5604 = vmatmul.mubr.bf16.vlgmr.msra.gmra.mxu1 %v5251_v12 }
 0x54e   : > { %v4721_v30 = vadd.f32 %v4720_v9, %v4528_v40 }
 0x54f   : > { %v10204_v23 = vpop.f32.mrf.mxu1  ;;  %v4722_v15 = vpop.f32.mrf.mxu0 }
 0x550   : > { %v4723_v17 = vadd.f32 %v4722_v15, %v4530_v51  ;;  %v5255_v25 = vpack.c.bf16 %v4721_v30, %v4717_v18 }
 0x551   : > { %v10206_v10 = vpop.f32.mrf.mxu1  ;;  %v4726_v41 = vpop.f32.mrf.mxu0  ;;  %5191 = vmatmul.mubr.bf16.gmra.mxu0 %v9947_v11  ;;  %v4540_v11 = vadd.f32 %v10058_v35, %v10168_v62 }
 0x552   : > { %v5256_v53 = vpack.c.bf16 %v4723_v17, %v4719_v48  ;;  %5200 = vmatprep.mubr.bf16.mxu0 %v9957_v50  ;;  %v4534_v50 = vadd.f32 %v10041_v45, %v10172_v63  ;;  %v4548_v45 = vadd.f32 %v10074_v0, %v10172_v63 }
 0x553   : > { %v10210_v32 = vpop.f32.mrf.mxu1  ;;  %v4728_v37 = vpop.f32.mrf.mxu0 }
 0x554   : > { %5611 = vmatprep.mubr.bf16.mxu1 %v5256_v53  ;;  %v4729_v22 = vadd.f32 %v4728_v37, %v4536_v26  ;;  %v4727_v38 = vadd.f32 %v4726_v41, %v4534_v50  ;;  %v4546_v41 = vadd.f32 %v10072_v54, %v10168_v62 }
 0x555   : > { %v10214_v1 = vpop.f32.mrf.mxu1  ;;  %v4730_v27 = vpop.f32.mrf.mxu0  ;;  %5612 = vmatmul.mubr.bf16.gmra.mxu1 %v5255_v25 }
 0x556   : > { %v4731_v12 = vadd.f32 %v4730_v27, %v4538_v19 }
 0x557   : > { %v10222_v40 = vpop.f32.mrf.mxu1  ;;  %v4732_v9 = vpop.f32.mrf.mxu0 }
 0x558   : > { %v4733_v51 = vadd.f32 %v4732_v9, %v4540_v11  ;;  %v5259_v16 = vpack.c.bf16 %v4731_v12, %v4727_v38 }
 0x559   : > { %v10224_v8 = vpop.f32.mrf.mxu1  ;;  %v4736_v30 = vpop.f32.mrf.mxu0  ;;  %5201 = vmatmul.mubr.bf16.gmra.mxu0 %v9959_v2  ;;  %v4550_v2 = vadd.f32 %v10079_v21, %v10168_v62 }
 0x55a   : > { %v5260_v15 = vpack.c.bf16 %v4733_v51, %v4729_v22  ;;  %5210 = vmatprep.mubr.bf16.mxu0 %v9969_v36  ;;  %v4544_v36 = vadd.f32 %v10065_v57, %v10172_v63  ;;  %v4558_v57 = vadd.f32 %v10089_v13, %v10172_v63  ;;  %v4556_v51 = vadd.f32 %v10087_v31, %v10168_v62 }
 0x55b   : > { %v10228_v35 = vpop.f32.mrf.mxu1  ;;  %v4738_v48 = vpop.f32.mrf.mxu0 }
 0x55c   : > { %5619 = vmatprep.mubr.bf16.mxu1 %v5260_v15  ;;  %v4739_v19 = vadd.f32 %v4738_v48, %v4546_v41  ;;  %v4737_v0 = vadd.f32 %v4736_v30, %v4544_v36  ;;  %v11090_v41 = vld [vmem:[#allocation36_spill] sm:$0xff] }
 0x55d   : > { %v10232_v17 = vpop.f32.mrf.mxu1  ;;  %v4740_v18 = vpop.f32.mrf.mxu0  ;;  %5620 = vmatmul.mubr.bf16.gmra.mxu1 %v5259_v16 }
 0x55e   : > { %v4741_v53 = vadd.f32 %v4740_v18, %v4548_v45 }
 0x55f   : > { %v10240_v25 = vpop.f32.mrf.mxu1  ;;  %v4742_v37 = vpop.f32.mrf.mxu0 }
 0x560   : > { %v4743_v27 = vadd.f32 %v4742_v37, %v4550_v2  ;;  %v5263_v54 = vpack.c.bf16 %v4741_v53, %v4737_v0 }
 0x561   : > { %v10242_v26 = vpop.f32.mrf.mxu1  ;;  %v4746_v11 = vpop.f32.mrf.mxu0  ;;  %5211 = vmatmul.mubr.bf16.gmra.mxu0 %v9971_v52  ;;  %v4560_v52 = vadd.f32 %v10091_v59, %v10168_v62 }
 0x562   : > { %v5264_v50 = vpack.c.bf16 %v4743_v27, %v4739_v19  ;;  %5220 = vmatprep.mubr.bf16.mxu0 %v9981_v42  ;;  %v4554_v42 = vadd.f32 %v10083_v24, %v10172_v63  ;;  %v4568_v24 = vadd.f32 %v10104_v20, %v10172_v63  ;;  %v4566_v19 = vadd.f32 %v10102_v39, %v10168_v62 }
 0x563   : > { %v10246_v21 = vpop.f32.mrf.mxu1  ;;  %v4748_v12 = vpop.f32.mrf.mxu0  ;;  %v4570_v27 = vadd.f32 %v10109_v61, %v10168_v62 }
 0x564   : > { %5627 = vmatprep.mubr.bf16.mxu1 %v5264_v50  ;;  %v4749_v16 = vadd.f32 %v4748_v12, %v4556_v51  ;;  %v4747_v13 = vadd.f32 %v4746_v11, %v4554_v42 }
 0x565   : > { %v10250_v9 = vpop.f32.mrf.mxu1  ;;  %v4750_v22 = vpop.f32.mrf.mxu0  ;;  %5628 = vmatmul.mubr.bf16.gmra.mxu1 %v5263_v54 }
 0x566   : > { %v4751_v38 = vadd.f32 %v4750_v22, %v4558_v57 }
 0x567   : > { %v10258_v30 = vpop.f32.mrf.mxu1  ;;  %v4752_v15 = vpop.f32.mrf.mxu0 }
 0x568   : > { %v4753_v48 = vadd.f32 %v4752_v15, %v4560_v52  ;;  %v5267_v31 = vpack.c.bf16 %v4751_v38, %v4747_v13  ;;  %v4576_v15 = vadd.f32 %v10117_v56, %v10168_v62 }
 0x569   : > { %v10260_v45 = vpop.f32.mrf.mxu1  ;;  %v4756_v18 = vpop.f32.mrf.mxu0  ;;  %5221 = vmatmul.mubr.bf16.gmra.mxu0 %v11090_v41 }
 0x56a   : > { %v5268_v2 = vpack.c.bf16 %v4753_v48, %v4749_v16  ;;  %5230 = vmatprep.mubr.bf16.mxu0 %v9993_v46  ;;  %v4564_v46 = vadd.f32 %v10095_v28, %v10172_v63  ;;  %v4578_v28 = vadd.f32 %v10119_v7, %v10172_v63 }
 0x56b   : > { %v10264_v59 = vpop.f32.mrf.mxu1  ;;  %v4758_v36 = vpop.f32.mrf.mxu0 }
 0x56c   : > { %5635 = vmatprep.mubr.bf16.mxu1 %v5268_v2  ;;  %v4759_v54 = vadd.f32 %v4758_v36, %v4566_v19  ;;  %v4757_v20 = vadd.f32 %v4756_v18, %v4564_v46  ;;  %v4590_v46 = vadd.f32 %v10138_v5, %v10168_v62  ;;  %v4598_v5 = vadd.f32 %v10146_v55, %v10172_v63 }
 0x56d   : > { %v10268_v53 = vpop.f32.mrf.mxu1  ;;  %v4760_v37 = vpop.f32.mrf.mxu0  ;;  %5636 = vmatmul.mubr.bf16.gmra.mxu1 %v5267_v31 }
 0x56e   : > { %v4761_v0 = vadd.f32 %v4760_v37, %v4568_v24 }
 0x56f   : > { %v10276_v11 = vpop.f32.mrf.mxu1  ;;  %v4762_v50 = vpop.f32.mrf.mxu0 }
 0x570   : > { %v4763_v12 = vadd.f32 %v4762_v50, %v4570_v27  ;;  %v5271_v39 = vpack.c.bf16 %v4761_v0, %v4757_v20  ;;  %v4586_v27 = vadd.f32 %v10131_v44, %v10168_v62 }
 0x571   : > { %v10278_v57 = vpop.f32.mrf.mxu1  ;;  %v4766_v22 = vpop.f32.mrf.mxu0  ;;  %5231 = vmatmul.mubr.bf16.gmra.mxu0 %v9995_v60  ;;  %v4580_v60 = vadd.f32 %v10121_v29, %v10168_v62 }
 0x572   : > { %v5272_v51 = vpack.c.bf16 %v4763_v12, %v4759_v54  ;;  %5240 = vmatprep.mubr.bf16.mxu0 %v10009_v43  ;;  %v4574_v43 = vadd.f32 %v10113_v4, %v10172_v63  ;;  %v4588_v4 = vadd.f32 %v10133_v6, %v10172_v63 }
 0x573   : > { %v4768_v61 = vpop.f32.mrf.mxu0  ;;  %v10282_v52 = vpop.f32.mrf.mxu1 }
 0x574   : > { %5643 = vmatprep.mubr.bf16.mxu1 %v5272_v51  ;;  %v4769_v18 = vadd.f32 %v4768_v61, %v4576_v15  ;;  %v4767_v7 = vadd.f32 %v4766_v22, %v4574_v43  ;;  %v4596_v15 = vadd.f32 %v10144_v58, %v10168_v62 }
 0x575   : > { %v4770_v42 = vpop.f32.mrf.mxu0  ;;  %v10286_v38 = vpop.f32.mrf.mxu1  ;;  %5644 = vmatmul.mubr.bf16.gmra.mxu1 %v5271_v39 }
 0x576   : > { %v4771_v16 = vadd.f32 %v4770_v42, %v4578_v28 }
 0x577   : > { %v4772_v48 = vpop.f32.mrf.mxu0  ;;  %v10294_v13 = vpop.f32.mrf.mxu1 }
 0x578   : > { %v4773_v41 = vadd.f32 %v4772_v48, %v4580_v60  ;;  %v5275_v56 = vpack.c.bf16 %v4771_v16, %v4767_v7  ;;  %v11091_v60 = vld [vmem:[#allocation39_spill] sm:$0xff]  ;;  %v11092_v16 = vld [vmem:[#allocation38_spill] sm:$0xff] }
 0x579   : > { %v4776_v2 = vpop.f32.mrf.mxu0  ;;  %v10296_v31 = vpop.f32.mrf.mxu1  ;;  %5241 = vmatmul.mubr.bf16.gmra.mxu0 %v10011_v49  ;;  %v4584_v49 = vadd.f32 %v10125_v14, %v10172_v63  ;;  %v4600_v43 = vadd.f32 %v11091_v60, %v10168_v62  ;;  %v4594_v48 = vadd.f32 %v11092_v16, %v10172_v63 }
 0x57a   : > { %v5276_v36 = vpack.c.bf16 %v4773_v41, %v4769_v18 }
 0x57b   : > { %v4778_v24 = vpop.f32.mrf.mxu0  ;;  %v10299_v37 = vpop.f32.mrf.mxu1  ;;  %v4777_v6 = vadd.f32 %v4776_v2, %v4584_v49 }
 0x57c   : > { %5651 = vmatprep.mubr.bf16.mxu1 %v5276_v36  ;;  %v4779_v12 = vadd.f32 %v4778_v24, %v4586_v27 }
 0x57d   : > { %v4780_v29 = vpop.f32.mrf.mxu0  ;;  %v10303_v19 = vpop.f32.mrf.mxu1  ;;  %5652 = vmatmul.mubr.bf16.gmra.mxu1 %v5275_v56 }
 0x57e   : > { %v4781_v0 = vadd.f32 %v4780_v29, %v4588_v4 }
 0x57f   : > { %v4782_v50 = vpop.f32.mrf.mxu0  ;;  %v10311_v54 = vpop.f32.mrf.mxu1 }
 0x580   : > { %v4783_v20 = vadd.f32 %v4782_v50, %v4590_v46  ;;  %v5279_v61 = vpack.c.bf16 %v4781_v0, %v4777_v6  ;;  %v11093_v46 = vld [vmem:[#allocation42_spill] sm:$0xff]  ;;  %v11095_v6 = vld [vmem:[#allocation43_spill] sm:$0xff] }
 0x581   : > { %v4786_v22 = vpop.f32.mrf.mxu0  ;;  %v10313_v51 = vpop.f32.mrf.mxu1  ;;  %v4608_v49 = vadd.f32 %v11093_v46, %v10172_v63 }
 0x582   : > { %v5280_v39 = vpack.c.bf16 %v4783_v20, %v4779_v12  ;;  %v4787_v55 = vadd.f32 %v4786_v22, %v4594_v48  ;;  %v11094_v12 = vld [vmem:[#allocation14_spill] sm:$0xff]  ;;  %v4610_v22 = vadd.f32 %v11095_v6, %v10168_v62 }
 0x583   : > { %v4788_v28 = vpop.f32.mrf.mxu0  ;;  %v10315_v44 = vpop.f32.mrf.mxu1  ;;  %v4606_v20 = vadd.f32 %v11094_v12, %v10168_v62 }
 0x584   : > { %5659 = vmatprep.mubr.bf16.mxu1 %v5280_v39  ;;  %v4789_v2 = vadd.f32 %v4788_v28, %v4596_v15  ;;  %v11096_v39 = vld [vmem:[#allocation15_spill] sm:$0xff] }
 0x585   : > { %v4790_v14 = vpop.f32.mrf.mxu0  ;;  %v10319_v42 = vpop.f32.mrf.mxu1  ;;  %5660 = vmatmul.mubr.bf16.gmra.mxu1 %v5279_v61  ;;  %v4604_v61 = vadd.f32 %v11096_v39, %v10172_v63 }
 0x586   : > { %v4791_v18 = vadd.f32 %v4790_v14, %v4598_v5 }
 0x587   : > { %v4792_v41 = vpop.f32.mrf.mxu0  ;;  %v10327_v7 = vpop.f32.mrf.mxu1 }
 0x588   : > { %v4793_v36 = vadd.f32 %v4792_v41, %v4600_v43  ;;  %v5283_v29 = vpack.c.bf16 %v4791_v18, %v4787_v55  ;;  %v4618_v55 = vadd.f32 %v10186_v33, %v10172_v63 }
 0x589   : > { %v4796_v56 = vpop.f32.mrf.mxu0  ;;  %v10329_v24 = vpop.f32.mrf.mxu1 }
 0x58a   : > { %v5284_v4 = vpack.c.bf16 %v4793_v36, %v4789_v2  ;;  %v4797_v43 = vadd.f32 %v4796_v56, %v4604_v61  ;;  %v4620_v56 = vadd.f32 %v10188_v34, %v10168_v62  ;;  %v4628_v34 = vadd.f32 %v10204_v23, %v10172_v63 }
 0x58b   : > { %v4798_v27 = vpop.f32.mrf.mxu0  ;;  %v10331_v58 = vpop.f32.mrf.mxu1 }
 0x58c   : > { %5667 = vmatprep.mubr.bf16.mxu1 %v5284_v4  ;;  %v4799_v15 = vadd.f32 %v4798_v27, %v4606_v20  ;;  %v11097_v27 = vld [vmem:[#allocation24_spill] sm:$0xff] }
 0x58d   : > { %v4800_v0 = vpop.f32.mrf.mxu0  ;;  %v10335_v50 = vpop.f32.mrf.mxu1  ;;  %5668 = vmatmul.mubr.bf16.gmra.mxu1 %v5283_v29  ;;  %v4616_v46 = vadd.f32 %v11097_v27, %v10168_v62 }
 0x58e   : > { %v4801_v28 = vadd.f32 %v4800_v0, %v4608_v49  ;;  %v11098_v49 = vld [vmem:[#allocation33_spill] sm:$0xff] }
 0x58f   : > { %v4802_v5 = vpop.f32.mrf.mxu0  ;;  %v10343_v14 = vpop.f32.mrf.mxu1  ;;  %v4614_v0 = vadd.f32 %v11098_v49, %v10172_v63 }
 0x590   : > { %v4803_v60 = vadd.f32 %v4802_v5, %v4610_v22  ;;  %v5287_v41 = vpack.c.bf16 %v4801_v28, %v4797_v43 }
 0x591   : > { %v4806_v16 = vpop.f32.mrf.mxu0  ;;  %v10345_v48 = vpop.f32.mrf.mxu1 }
 0x592   : > { %v5288_v18 = vpack.c.bf16 %v4803_v60, %v4799_v15  ;;  %v4807_v33 = vadd.f32 %v4806_v16, %v4614_v0  ;;  %v4630_v16 = vadd.f32 %v10206_v10, %v10168_v62  ;;  %v4638_v10 = vadd.f32 %v10222_v40, %v10172_v63 }
 0x593   : > { %v4808_v2 = vpop.f32.mrf.mxu0  ;;  %v10347_v36 = vpop.f32.mrf.mxu1 }
 0x594   : > { %5675 = vmatprep.mubr.bf16.mxu1 %v5288_v18  ;;  %v4809_v22 = vadd.f32 %v4808_v2, %v4616_v46  ;;  %v4626_v2 = vadd.f32 %v10196_v47, %v10168_v62 }
 0x595   : > { %v4810_v4 = vpop.f32.mrf.mxu0  ;;  %v10351_v29 = vpop.f32.mrf.mxu1  ;;  %5676 = vmatmul.mubr.bf16.gmra.mxu1 %v5287_v41 }
 0x596   : > { %v4811_v12 = vadd.f32 %v4810_v4, %v4618_v55  ;;  %v4624_v55 = vadd.f32 %v10192_v3, %v10172_v63 }
 0x597   : > { %v4812_v20 = vpop.f32.mrf.mxu0  ;;  %v10359_v6 = vpop.f32.mrf.mxu1 }
 0x598   : > { %v4813_v39 = vadd.f32 %v4812_v20, %v4620_v56  ;;  %v5291_v15 = vpack.c.bf16 %v4811_v12, %v4807_v33 }
 0x599   : > { %v4816_v61 = vpop.f32.mrf.mxu0  ;;  %v10361_v28 = vpop.f32.mrf.mxu1 }
 0x59a   : > { %v5292_v5 = vpack.c.bf16 %v4813_v39, %v4809_v22  ;;  %v4817_v23 = vadd.f32 %v4816_v61, %v4624_v55  ;;  %v4640_v61 = vadd.f32 %v10224_v8, %v10168_v62  ;;  %v4648_v8 = vadd.f32 %v10240_v25, %v10172_v63 }
 0x59b   : > { %v4818_v60 = vpop.f32.mrf.mxu0  ;;  %v10363_v43 = vpop.f32.mrf.mxu1 }
 0x59c   : > { %5683 = vmatprep.mubr.bf16.mxu1 %v5292_v5  ;;  %v4819_v56 = vadd.f32 %v4818_v60, %v4626_v2  ;;  %v4636_v5 = vadd.f32 %v10214_v1, %v10168_v62 }
 0x59d   : > { %v4820_v18 = vpop.f32.mrf.mxu0  ;;  %v10367_v41 = vpop.f32.mrf.mxu1  ;;  %5684 = vmatmul.mubr.bf16.gmra.mxu1 %v5291_v15  ;;  %v4634_v15 = vadd.f32 %v10210_v32, %v10172_v63 }
 0x59e   : > { %v4821_v4 = vadd.f32 %v4820_v18, %v4628_v34 }
 0x59f   : > { %v4822_v27 = vpop.f32.mrf.mxu0  ;;  %v10375_v46 = vpop.f32.mrf.mxu1 }
 0x5a0   : > { %v4823_v49 = vadd.f32 %v4822_v27, %v4630_v16  ;;  %v5295_v22 = vpack.c.bf16 %v4821_v4, %v4817_v23 }
 0x5a1   : > { %v4826_v0 = vpop.f32.mrf.mxu0  ;;  %v10377_v12 = vpop.f32.mrf.mxu1 }
 0x5a2   : > { %v5296_v20 = vpack.c.bf16 %v4823_v49, %v4819_v56  ;;  %v4827_v40 = vadd.f32 %v4826_v0, %v4634_v15  ;;  %v4650_v0 = vadd.f32 %v10242_v26, %v10168_v62  ;;  %v4658_v26 = vadd.f32 %v10258_v30, %v10172_v63 }
 0x5a3   : > { %v4828_v39 = vpop.f32.mrf.mxu0  ;;  %v10379_v47 = vpop.f32.mrf.mxu1 }
 0x5a4   : > { %5691 = vmatprep.mubr.bf16.mxu1 %v5296_v20  ;;  %v4829_v2 = vadd.f32 %v4828_v39, %v4636_v5  ;;  %v4646_v20 = vadd.f32 %v10232_v17, %v10168_v62 }
 0x5a5   : > { %v4830_v3 = vpop.f32.mrf.mxu0  ;;  %v10383_v33 = vpop.f32.mrf.mxu1  ;;  %5692 = vmatmul.mubr.bf16.gmra.mxu1 %v5295_v22  ;;  %v4644_v22 = vadd.f32 %v10228_v35, %v10172_v63 }
 0x5a6   : > { %v4831_v60 = vadd.f32 %v4830_v3, %v4638_v10 }
 0x5a7   : > { %v4832_v34 = vpop.f32.mrf.mxu0  ;;  %v10391_v18 = vpop.f32.mrf.mxu1 }
 0x5a8   : > { %v4833_v16 = vadd.f32 %v4832_v34, %v4640_v61  ;;  %v5299_v56 = vpack.c.bf16 %v4831_v60, %v4827_v40 }
 0x5a9   : > { %v4836_v55 = vpop.f32.mrf.mxu0  ;;  %v10393_v4 = vpop.f32.mrf.mxu1 }
 0x5aa   : > { %v5300_v27 = vpack.c.bf16 %v4833_v16, %v4829_v2  ;;  %v4837_v25 = vadd.f32 %v4836_v55, %v4644_v22  ;;  %v4660_v55 = vadd.f32 %v10260_v45, %v10168_v62  ;;  %v4668_v45 = vadd.f32 %v10276_v11, %v10172_v63 }
 0x5ab   : > { %v4838_v49 = vpop.f32.mrf.mxu0  ;;  %v10395_v1 = vpop.f32.mrf.mxu1 }
 0x5ac   : > { %5699 = vmatprep.mubr.bf16.mxu1 %v5300_v27  ;;  %v4839_v5 = vadd.f32 %v4838_v49, %v4646_v20  ;;  %v4656_v27 = vadd.f32 %v10250_v9, %v10168_v62 }
 0x5ad   : > { %v4840_v32 = vpop.f32.mrf.mxu0  ;;  %v10399_v23 = vpop.f32.mrf.mxu1  ;;  %5700 = vmatmul.mubr.bf16.gmra.mxu1 %v5299_v56  ;;  %v4654_v56 = vadd.f32 %v10246_v21, %v10172_v63 }
 0x5ae   : > { %v4841_v39 = vadd.f32 %v4840_v32, %v4648_v8 }
 0x5af   : > { %v4842_v10 = vpop.f32.mrf.mxu0  ;;  %v10407_v3 = vpop.f32.mrf.mxu1 }
 0x5b0   : > { %v4843_v61 = vadd.f32 %v4842_v10, %v4650_v0  ;;  %v5303_v2 = vpack.c.bf16 %v4841_v39, %v4837_v25 }
 0x5b1   : > { %v4846_v15 = vpop.f32.mrf.mxu0  ;;  %v10409_v60 = vpop.f32.mrf.mxu1 }
 0x5b2   : > { %v5304_v34 = vpack.c.bf16 %v4843_v61, %v4839_v5  ;;  %v4847_v30 = vadd.f32 %v4846_v15, %v4654_v56  ;;  %v4670_v15 = vadd.f32 %v10278_v57, %v10168_v62 }
 0x5b3   : > { %v4848_v16 = vpop.f32.mrf.mxu0  ;;  %v10411_v17 = vpop.f32.mrf.mxu1 }
 0x5b4   : > { %5707 = vmatprep.mubr.bf16.mxu1 %v5304_v34  ;;  %v4849_v20 = vadd.f32 %v4848_v16, %v4656_v27  ;;  %v4666_v34 = vadd.f32 %v10268_v53, %v10168_v62  ;;  %v11099_v62 = vld [vmem:[#allocation16_spill] sm:$0xff] }
 0x5b5   : > { %v4850_v35 = vpop.f32.mrf.mxu0  ;;  %v10415_v40 = vpop.f32.mrf.mxu1  ;;  %5708 = vmatmul.mubr.bf16.gmra.mxu1 %v5303_v2  ;;  %v4664_v2 = vadd.f32 %v10264_v59, %v10172_v63  ;;  %v4904_v57 = vadd.f32 %v10294_v13, %v11099_v62 }
 0x5b6   : > { %v4851_v49 = vadd.f32 %v4850_v35, %v4658_v26 }
 0x5b7   : > { %v4852_v8 = vpop.f32.mrf.mxu0  ;;  %v10423_v32 = vpop.f32.mrf.mxu1 }
 0x5b8   : > { %v4853_v0 = vadd.f32 %v4852_v8, %v4660_v55  ;;  %v5307_v5 = vpack.c.bf16 %v4851_v49, %v4847_v30  ;;  %v11100_v30 = vld [vmem:[#allocation17_spill] sm:$0xff] }
 0x5b9   : > { %v4856_v22 = vpop.f32.mrf.mxu0  ;;  %v10425_v39 = vpop.f32.mrf.mxu1 }
 0x5ba   : > { %v5308_v10 = vpack.c.bf16 %v4853_v0, %v4849_v20  ;;  %v4857_v11 = vadd.f32 %v4856_v22, %v4664_v2  ;;  %v4906_v22 = vadd.f32 %v10296_v31, %v11100_v30  ;;  %v4914_v31 = vadd.f32 %v10311_v54, %v11099_v62 }
 0x5bb   : > { %v4858_v61 = vpop.f32.mrf.mxu0  ;;  %v10427_v9 = vpop.f32.mrf.mxu1 }
 0x5bc   : > { %5715 = vmatprep.mubr.bf16.mxu1 %v5308_v10  ;;  %v4859_v27 = vadd.f32 %v4858_v61, %v4666_v34  ;;  %v4902_v10 = vadd.f32 %v10286_v38, %v11100_v30 }
 0x5bd   : > { %v4860_v21 = vpop.f32.mrf.mxu0  ;;  %v10431_v25 = vpop.f32.mrf.mxu1  ;;  %5716 = vmatmul.mubr.bf16.gmra.mxu1 %v5307_v5  ;;  %v4900_v5 = vadd.f32 %v10282_v52, %v11099_v62 }
 0x5be   : > { %v4861_v16 = vadd.f32 %v4860_v21, %v4668_v45 }
 0x5bf   : > { %v4862_v26 = vpop.f32.mrf.mxu0  ;;  %v10439_v35 = vpop.f32.mrf.mxu1 }
 0x5c0   : > { %v4863_v55 = vadd.f32 %v4862_v26, %v4670_v15  ;;  %v5311_v20 = vpack.c.bf16 %v4861_v16, %v4857_v11 }
 0x5c1   : > { %v10441_v56 = vpop.f32.mrf.mxu1  ;;  %v5092_v49 = vpop.f32.mrf.mxu0 }
 0x5c2   : > { %v5312_v8 = vpack.c.bf16 %v4863_v55, %v4859_v27  ;;  %v5093_v13 = vadd.f32 %v5092_v49, %v4900_v5  ;;  %v4916_v49 = vadd.f32 %v10313_v51, %v11100_v30  ;;  %v4924_v51 = vadd.f32 %v10327_v7, %v11099_v62 }
 0x5c3   : > { %v10443_v0 = vpop.f32.mrf.mxu1  ;;  %v5094_v53 = vpop.f32.mrf.mxu0 }
 0x5c4   : > { %5723 = vmatprep.mubr.bf16.mxu1 %v5312_v8  ;;  %v5095_v34 = vadd.f32 %v5094_v53, %v4902_v10  ;;  %v4912_v8 = vadd.f32 %v10303_v19, %v11100_v30 }
 0x5c5   : > { %v10447_v63 = vpop.f32.mrf.mxu1  ;;  %v5096_v59 = vpop.f32.mrf.mxu0  ;;  %5724 = vmatmul.mubr.bf16.gmra.mxu1 %v5311_v20  ;;  %v4910_v20 = vadd.f32 %v10299_v37, %v11099_v62 }
 0x5c6   : > { %v5097_v61 = vadd.f32 %v5096_v59, %v4904_v57 }
 0x5c7   : > { %v10455_v45 = vpop.f32.mrf.mxu1  ;;  %v5098_v21 = vpop.f32.mrf.mxu0 }
 0x5c8   : > { %v5099_v15 = vadd.f32 %v5098_v21, %v4906_v22  ;;  %v5253_v27 = vpack.c.bf16 %v5097_v61, %v5093_v13 }
 0x5c9   : > { %v10457_v2 = vpop.f32.mrf.mxu1  ;;  %v5102_v16 = vpop.f32.mrf.mxu0 }
 0x5ca   : > { %v5254_v26 = vpack.c.bf16 %v5099_v15, %v5095_v34  ;;  %v5103_v54 = vadd.f32 %v5102_v16, %v4910_v20  ;;  %v4926_v16 = vadd.f32 %v10329_v24, %v11100_v30 }
 0x5cb   : > { %v10459_v55 = vpop.f32.mrf.mxu1  ;;  %v5104_v38 = vpop.f32.mrf.mxu0 }
 0x5cc   : > { %5764 = vmatprep.mubr.bf16.mxu0 %v5254_v26  ;;  %v5105_v10 = vadd.f32 %v5104_v38, %v4912_v8  ;;  %v4922_v26 = vadd.f32 %v10319_v42, %v11100_v30  ;;  %v4934_v42 = vadd.f32 %v10343_v14, %v11099_v62 }
 0x5cd   : > { %v10463_v52 = vpop.f32.mrf.mxu1  ;;  %v5106_v11 = vpop.f32.mrf.mxu0  ;;  %5765 = vmatmul.mubr.bf16.vlgmr.msra.gmra.mxu0 %v5253_v27  ;;  %v4920_v27 = vadd.f32 %v10315_v44, %v11099_v62  ;;  %v4932_v44 = vadd.f32 %v10335_v50, %v11100_v30  ;;  %v4944_v50 = vadd.f32 %v10359_v6, %v11099_v62 }
 0x5ce   : > { %v5107_v53 = vadd.f32 %v5106_v11, %v4914_v31 }
 0x5cf   : > { %v10471_v57 = vpop.f32.mrf.mxu1  ;;  %v5108_v59 = vpop.f32.mrf.mxu0 }
 0x5d0   : > { %v5109_v22 = vadd.f32 %v5108_v59, %v4916_v49  ;;  %v5257_v34 = vpack.c.bf16 %v5107_v53, %v5103_v54  ;;  %v4936_v54 = vadd.f32 %v10345_v48, %v11100_v30 }
 0x5d1   : > { %v10473_v5 = vpop.f32.mrf.mxu1  ;;  %v5112_v61 = vpop.f32.mrf.mxu0 }
 0x5d2   : > { %v5258_v21 = vpack.c.bf16 %v5109_v22, %v5105_v10  ;;  %v5113_v7 = vadd.f32 %v5112_v61, %v4920_v27  ;;  %v4930_v61 = vadd.f32 %v10331_v58, %v11099_v62  ;;  %v4942_v58 = vadd.f32 %v10351_v29, %v11100_v30 }
 0x5d3   : > { %v10475_v15 = vpop.f32.mrf.mxu1  ;;  %v5114_v19 = vpop.f32.mrf.mxu0  ;;  %v4954_v29 = vadd.f32 %v10375_v46, %v11099_v62 }
 0x5d4   : > { %5772 = vmatprep.mubr.bf16.mxu0 %v5258_v21  ;;  %v5115_v8 = vadd.f32 %v5114_v19, %v4922_v26 }
 0x5d5   : > { %v10479_v37 = vpop.f32.mrf.mxu1  ;;  %v5116_v13 = vpop.f32.mrf.mxu0  ;;  %5773 = vmatmul.mubr.bf16.gmra.mxu0 %v5257_v34 }
 0x5d6   : > { %v5117_v38 = vadd.f32 %v5116_v13, %v4924_v51 }
 0x5d7   : > { %v10487_v31 = vpop.f32.mrf.mxu1  ;;  %v5118_v11 = vpop.f32.mrf.mxu0 }
 0x5d8   : > { %v5119_v49 = vadd.f32 %v5118_v11, %v4926_v16  ;;  %v5261_v59 = vpack.c.bf16 %v5117_v38, %v5113_v7 }
 0x5d9   : > { %v5122_v20 = vpop.f32.mrf.mxu0  ;;  %v10489_v10 = vpop.f32.mrf.mxu1 }
 0x5da   : > { %v5262_v53 = vpack.c.bf16 %v5119_v49, %v5115_v8  ;;  %v5123_v26 = vadd.f32 %v5122_v20, %v4930_v61  ;;  %v4946_v8 = vadd.f32 %v10361_v28, %v11100_v30  ;;  %v4940_v49 = vadd.f32 %v10347_v36, %v11099_v62 }
 0x5db   : > { %v5124_v22 = vpop.f32.mrf.mxu0  ;;  %v10499_v21 = vpop.f32.mrf.mxu1  ;;  %v4952_v36 = vadd.f32 %v10367_v41, %v11100_v30  ;;  %v4964_v41 = vadd.f32 %v10391_v18, %v11099_v62 }
 0x5dc   : > { %5780 = vmatprep.mubr.bf16.mxu0 %v5262_v53  ;;  %v5125_v51 = vadd.f32 %v5124_v22, %v4932_v44 }
 0x5dd   : > { %v5126_v24 = vpop.f32.mrf.mxu0  ;;  %5781 = vmatmul.mubr.bf16.gmra.mxu0 %v5261_v59  ;;  %v10501_v27 = vpop.f32.mrf.mxu1 }
 0x5de   : > { %v5127_v34 = vadd.f32 %v5126_v24, %v4934_v42 }
 0x5df   : > { %v5128_v19 = vpop.f32.mrf.mxu0  ;;  %v10511_v7 = vpop.f32.mrf.mxu1 }
 0x5e0   : > { %v5129_v13 = vadd.f32 %v5128_v19, %v4936_v54  ;;  %v5265_v38 = vpack.c.bf16 %v5127_v34, %v5123_v26  ;;  %v4956_v34 = vadd.f32 %v10377_v12, %v11100_v30  ;;  %v4950_v19 = vadd.f32 %v10363_v43, %v11099_v62 }
 0x5e1   : > { %v5132_v16 = vpop.f32.mrf.mxu0  ;;  %v10513_v44 = vpop.f32.mrf.mxu1  ;;  %v4962_v43 = vadd.f32 %v10383_v33, %v11100_v30  ;;  %v4974_v33 = vadd.f32 %v10407_v3, %v11099_v62 }
 0x5e2   : > { %v5266_v14 = vpack.c.bf16 %v5129_v13, %v5125_v51  ;;  %v5133_v42 = vadd.f32 %v5132_v16, %v4940_v49  ;;  %v4960_v49 = vadd.f32 %v10379_v47, %v11099_v62  ;;  %v4972_v47 = vadd.f32 %v10399_v23, %v11100_v30 }
 0x5e3   : > { %v5134_v11 = vpop.f32.mrf.mxu0  ;;  %v10523_v51 = vpop.f32.mrf.mxu1  ;;  %v4984_v23 = vadd.f32 %v10423_v32, %v11099_v62 }
 0x5e4   : > { %5788 = vmatprep.mubr.bf16.mxu0 %v5266_v14  ;;  %v5135_v59 = vadd.f32 %v5134_v11, %v4942_v58 }
 0x5e5   : > { %v5136_v48 = vpop.f32.mrf.mxu0  ;;  %5789 = vmatmul.mubr.bf16.gmra.mxu0 %v5265_v38 }
 0x5e6   : > { %v5137_v20 = vadd.f32 %v5136_v48, %v4944_v50  ;;  %v10525_v50 = vpop.f32.mrf.mxu1 }
 0x5e7   : > { %v5138_v53 = vpop.f32.mrf.mxu0 }
 0x5e8   : > { %v5139_v22 = vadd.f32 %v5138_v53, %v4946_v8  ;;  %v5269_v54 = vpack.c.bf16 %v5137_v20, %v5133_v42  ;;  %v4966_v8 = vadd.f32 %v10393_v4, %v11100_v30  ;;  %v10535_v20 = vpop.f32.mrf.mxu1 }
 0x5e9   : > { %v5142_v24 = vpop.f32.mrf.mxu0 }
 0x5ea   : > { %v5270_v6 = vpack.c.bf16 %v5139_v22, %v5135_v59  ;;  %v5143_v38 = vadd.f32 %v5142_v24, %v4950_v19 }
 0x5eb   : > { %v5144_v61 = vpop.f32.mrf.mxu0 }
 0x5ec   : > { %5796 = vmatprep.mubr.bf16.mxu0 %v5270_v6  ;;  %v5145_v16 = vadd.f32 %v5144_v61, %v4952_v36  ;;  %v4970_v36 = vadd.f32 %v10395_v1, %v11099_v62  ;;  %v4982_v1 = vadd.f32 %v10415_v40, %v11100_v30  ;;  %v4994_v40 = vadd.f32 %v10439_v35, %v11099_v62 }
 0x5ed   : > { %v5146_v28 = vpop.f32.mrf.mxu0  ;;  %5797 = vmatmul.mubr.bf16.gmra.mxu0 %v5269_v54  ;;  %v10537_v54 = vpop.f32.mrf.mxu1 }
 0x5ee   : > { %v5147_v13 = vadd.f32 %v5146_v28, %v4954_v29  ;;  %v4976_v28 = vadd.f32 %v10409_v60, %v11100_v30 }
 0x5ef   : > { %v5148_v26 = vpop.f32.mrf.mxu0 }
 0x5f0   : > { %v5149_v14 = vadd.f32 %v5148_v26, %v4956_v34  ;;  %v5273_v48 = vpack.c.bf16 %v5147_v13, %v5143_v38  ;;  %v10547_v34 = vpop.f32.mrf.mxu1 }
 0x5f1   : > { %v5152_v11 = vpop.f32.mrf.mxu0 }
 0x5f2   : > { %v5274_v46 = vpack.c.bf16 %v5149_v14, %v5145_v16  ;;  %v5153_v24 = vadd.f32 %v5152_v11, %v4960_v49  ;;  %v10549_v11 = vpop.f32.mrf.mxu1 }
 0x5f3   : > { %v5154_v58 = vpop.f32.mrf.mxu0 }
 0x5f4   : > { %5804 = vmatprep.mubr.bf16.mxu0 %v5274_v46  ;;  %v5155_v22 = vadd.f32 %v5154_v58, %v4962_v43  ;;  %v4986_v58 = vadd.f32 %v10425_v39, %v11100_v30 }
 0x5f5   : > { %v5156_v12 = vpop.f32.mrf.mxu0  ;;  %5805 = vmatmul.mubr.bf16.gmra.mxu0 %v5273_v48 }
 0x5f6   : > { %v5157_v53 = vadd.f32 %v5156_v12, %v4964_v41  ;;  %v4980_v41 = vadd.f32 %v10411_v17, %v11099_v62  ;;  %v10559_v12 = vpop.f32.mrf.mxu1  ;;  %v4992_v17 = vadd.f32 %v10431_v25, %v11100_v30  ;;  %v5004_v25 = vadd.f32 %v10455_v45, %v11099_v62 }
 0x5f7   : > { %v5158_v59 = vpop.f32.mrf.mxu0 }
 0x5f8   : > { %v5159_v42 = vadd.f32 %v5158_v59, %v4966_v8  ;;  %v5277_v61 = vpack.c.bf16 %v5157_v53, %v5153_v24 }
 0x5f9   : > { %v5162_v6 = vpop.f32.mrf.mxu0 }
 0x5fa   : > { %v5278_v18 = vpack.c.bf16 %v5159_v42, %v5155_v22  ;;  %v5163_v14 = vadd.f32 %v5162_v6, %v4970_v36  ;;  %v10561_v42 = vpop.f32.mrf.mxu1 }
 0x5fb   : > { %v5164_v29 = vpop.f32.mrf.mxu0 }
 0x5fc   : > { %5812 = vmatprep.mubr.bf16.mxu0 %v5278_v18  ;;  %v5165_v26 = vadd.f32 %v5164_v29, %v4972_v47  ;;  %v4990_v29 = vadd.f32 %v10427_v9, %v11099_v62  ;;  %v5002_v9 = vadd.f32 %v10447_v63, %v11100_v30  ;;  %v5014_v63 = vadd.f32 %v10471_v57, %v11099_v62 }
 0x5fd   : > { %v5166_v4 = vpop.f32.mrf.mxu0  ;;  %5813 = vmatmul.mubr.bf16.gmra.mxu0 %v5277_v61  ;;  %v4996_v61 = vadd.f32 %v10441_v56, %v11100_v30 }
 0x5fe   : > { %v5167_v19 = vadd.f32 %v5166_v4, %v4974_v33 }
 0x5ff   : > { %v5168_v13 = vpop.f32.mrf.mxu0 }
 0x600   : > { %v5169_v16 = vadd.f32 %v5168_v13, %v4976_v28  ;;  %v5281_v46 = vpack.c.bf16 %v5167_v19, %v5163_v14 }
 0x601   : > { %v5172_v38 = vpop.f32.mrf.mxu0 }
 0x602   : > { %v5282_v3 = vpack.c.bf16 %v5169_v16, %v5165_v26  ;;  %v5173_v59 = vadd.f32 %v5172_v38, %v4980_v41  ;;  %v5006_v38 = vadd.f32 %v10457_v2, %v11100_v30 }
 0x603   : > { %v5174_v48 = vpop.f32.mrf.mxu0 }
 0x604   : > { %5820 = vmatprep.mubr.bf16.mxu0 %v5282_v3  ;;  %v5175_v49 = vadd.f32 %v5174_v48, %v4982_v1  ;;  %v5000_v3 = vadd.f32 %v10443_v0, %v11099_v62  ;;  %v5012_v0 = vadd.f32 %v10463_v52, %v11100_v30  ;;  %v5024_v52 = vadd.f32 %v10487_v31, %v11099_v62 }
 0x605   : > { %v5176_v60 = vpop.f32.mrf.mxu0  ;;  %5821 = vmatmul.mubr.bf16.gmra.mxu0 %v5281_v46 }
 0x606   : > { %v5177_v43 = vadd.f32 %v5176_v60, %v4984_v23 }
 0x607   : > { %v5178_v8 = vpop.f32.mrf.mxu0 }
 0x608   : > { %v5179_v53 = vadd.f32 %v5178_v8, %v4986_v58  ;;  %v5285_v24 = vpack.c.bf16 %v5177_v43, %v5173_v59  ;;  %v5010_v59 = vadd.f32 %v10459_v55, %v11099_v62  ;;  %v5022_v55 = vadd.f32 %v10479_v37, %v11100_v30 }
 0x609   : > { %v5182_v22 = vpop.f32.mrf.mxu0  ;;  %v5034_v37 = vadd.f32 %v10511_v7, %v11099_v62 }
 0x60a   : > { %v5286_v32 = vpack.c.bf16 %v5179_v53, %v5175_v49  ;;  %v5183_v36 = vadd.f32 %v5182_v22, %v4990_v29  ;;  %v5016_v53 = vadd.f32 %v10473_v5, %v11100_v30 }
 0x60b   : > { %v5184_v6 = vpop.f32.mrf.mxu0 }
 0x60c   : > { %5828 = vmatprep.mubr.bf16.mxu0 %v5286_v32  ;;  %v5185_v47 = vadd.f32 %v5184_v6, %v4992_v17 }
 0x60d   : > { %v5186_v39 = vpop.f32.mrf.mxu0  ;;  %v10565_v18 = vpop.f32.mrf.mxu1  ;;  %5829 = vmatmul.mubr.bf16.gmra.mxu0 %v5285_v24 }
 0x60e   : > { %v5187_v33 = vadd.f32 %v5186_v39, %v4994_v40 }
 0x60f   : > { %v5188_v4 = vpop.f32.mrf.mxu0  ;;  %v10573_v19 = vpop.f32.mrf.mxu1 }
 0x610   : > { %v5189_v28 = vadd.f32 %v5188_v4, %v4996_v61  ;;  %v5289_v26 = vpack.c.bf16 %v5187_v33, %v5183_v36  ;;  %v5026_v4 = vadd.f32 %v10489_v10, %v11100_v30 }
 0x611   : > { %v5192_v35 = vpop.f32.mrf.mxu0  ;;  %v10577_v14 = vpop.f32.mrf.mxu1 }
 0x612   : > { %v5290_v13 = vpack.c.bf16 %v5189_v28, %v5185_v47  ;;  %v5193_v1 = vadd.f32 %v5192_v35, %v5000_v3  ;;  %v5020_v47 = vadd.f32 %v10475_v15, %v11099_v62  ;;  %v5032_v15 = vadd.f32 %v10501_v27, %v11100_v30 }
 0x613   : > { %v5194_v16 = vpop.f32.mrf.mxu0  ;;  %v10585_v58 = vpop.f32.mrf.mxu1  ;;  %v5036_v3 = vadd.f32 %v10513_v44, %v11100_v30  ;;  %v5044_v27 = vadd.f32 %v10535_v20, %v11099_v62 }
 0x614   : > { %5836 = vmatprep.mubr.bf16.mxu0 %v5290_v13  ;;  %v5195_v23 = vadd.f32 %v5194_v16, %v5002_v9 }
 0x615   : > { %v5196_v56 = vpop.f32.mrf.mxu0  ;;  %5837 = vmatmul.mubr.bf16.gmra.mxu0 %v5289_v26  ;;  %v10589_v49 = vpop.f32.mrf.mxu1 }
 0x616   : > { %v5197_v46 = vadd.f32 %v5196_v56, %v5004_v25 }
 0x617   : > { %v5198_v48 = vpop.f32.mrf.mxu0  ;;  %v10597_v40 = vpop.f32.mrf.mxu1 }
 0x618   : > { %v5199_v60 = vadd.f32 %v5198_v48, %v5006_v38  ;;  %v5293_v43 = vpack.c.bf16 %v5197_v46, %v5193_v1  ;;  %v5030_v46 = vadd.f32 %v10499_v21, %v11099_v62  ;;  %v5042_v21 = vadd.f32 %v10525_v50, %v11100_v30 }
 0x619   : > { %v5202_v45 = vpop.f32.mrf.mxu0  ;;  %v10601_v33 = vpop.f32.mrf.mxu1  ;;  %v5054_v50 = vadd.f32 %v10559_v12, %v11099_v62 }
 0x61a   : > { %v5294_v41 = vpack.c.bf16 %v5199_v60, %v5195_v23  ;;  %v5203_v57 = vadd.f32 %v5202_v45, %v5010_v59 }
 0x61b   : > { %v5204_v8 = vpop.f32.mrf.mxu0  ;;  %v10609_v26 = vpop.f32.mrf.mxu1 }
 0x61c   : > { %5844 = vmatprep.mubr.bf16.mxu0 %v5294_v41  ;;  %v5205_v24 = vadd.f32 %v5204_v8, %v5012_v0  ;;  %v5046_v0 = vadd.f32 %v10537_v54, %v11100_v30 }
 0x61d   : > { %v5206_v2 = vpop.f32.mrf.mxu0  ;;  %5845 = vmatmul.mubr.bf16.gmra.mxu0 %v5293_v43  ;;  %v10613_v38 = vpop.f32.mrf.mxu1 }
 0x61e   : > { %v5207_v22 = vadd.f32 %v5206_v2, %v5014_v63 }
 0x61f   : > { %v5208_v32 = vpop.f32.mrf.mxu0  ;;  %v10621_v45 = vpop.f32.mrf.mxu1 }
 0x620   : > { %v5209_v6 = vadd.f32 %v5208_v32, %v5016_v53  ;;  %v5297_v61 = vpack.c.bf16 %v5207_v22, %v5203_v57  ;;  %v5040_v53 = vadd.f32 %v10523_v51, %v11099_v62  ;;  %v5052_v51 = vadd.f32 %v10549_v11, %v11100_v30 }
 0x621   : > { %v5212_v39 = vpop.f32.mrf.mxu0  ;;  %v10625_v2 = vpop.f32.mrf.mxu1 }
 0x622   : > { %v5298_v17 = vpack.c.bf16 %v5209_v6, %v5205_v24  ;;  %v5213_v31 = vadd.f32 %v5212_v39, %v5020_v47 }
 0x623   : > { %v5214_v29 = vpop.f32.mrf.mxu0  ;;  %v10633_v6 = vpop.f32.mrf.mxu1 }
 0x624   : > { %5852 = vmatprep.mubr.bf16.mxu0 %v5298_v17  ;;  %v5215_v35 = vadd.f32 %v5214_v29, %v5022_v55 }
 0x625   : > { %v5216_v5 = vpop.f32.mrf.mxu0  ;;  %5853 = vmatmul.mubr.bf16.gmra.mxu0 %v5297_v61  ;;  %v10637_v29 = vpop.f32.mrf.mxu1 }
 0x626   : > { %v5217_v28 = vadd.f32 %v5216_v5, %v5024_v52  ;;  %v5056_v52 = vadd.f32 %v10561_v42, %v11100_v30  ;;  %v5050_v5 = vadd.f32 %v10547_v34, %v11099_v62 }
 0x627   : > { %v5218_v36 = vpop.f32.mrf.mxu0 }
 0x628   : > { %v5219_v13 = vadd.f32 %v5218_v36, %v5026_v4  ;;  %v5301_v56 = vpack.c.bf16 %v5217_v28, %v5213_v31  ;;  %v10645_v36 = vpop.f32.mrf.mxu1 }
 0x629   : > { %v5222_v16 = vpop.f32.mrf.mxu0 }
 0x62a   : > { %v5302_v25 = vpack.c.bf16 %v5219_v13, %v5215_v35  ;;  %v5223_v7 = vadd.f32 %v5222_v16, %v5030_v46  ;;  %v10647_v31 = vpop.f32.mrf.mxu1 }
 0x62b   : > { %v5224_v9 = vpop.f32.mrf.mxu0 }
 0x62c   : > { %5860 = vmatprep.mubr.bf16.mxu0 %v5302_v25  ;;  %v5225_v60 = vadd.f32 %v5224_v9, %v5032_v15  ;;  %v10649_v11 = vpop.f32.mrf.mxu1 }
 0x62d   : > { %v5226_v10 = vpop.f32.mrf.mxu0  ;;  %5861 = vmatmul.mubr.bf16.gmra.mxu0 %v5301_v56 }
 0x62e   : > { %v5227_v48 = vadd.f32 %v5226_v10, %v5034_v37  ;;  %v10651_v16 = vpop.f32.mrf.mxu1 }
 0x62f   : > { %v5228_v23 = vpop.f32.mrf.mxu0 }
 0x630   : > { %v5229_v1 = vadd.f32 %v5228_v23, %v5036_v3  ;;  %v5305_v8 = vpack.c.bf16 %v5227_v48, %v5223_v7  ;;  %v10653_v30 = vpop.f32.mrf.mxu1 }
 0x631   : > { %v5232_v41 = vpop.f32.mrf.mxu0 }
 0x632   : > { %v5306_v43 = vpack.c.bf16 %v5229_v1, %v5225_v60  ;;  %v5233_v20 = vadd.f32 %v5232_v41, %v5040_v53  ;;  %v10655_v62 = vpop.f32.mrf.mxu1 }
 0x633   : > { %v5234_v63 = vpop.f32.mrf.mxu0 }
 0x634   : > { %5868 = vmatprep.mubr.bf16.mxu0 %v5306_v43  ;;  %v5235_v32 = vadd.f32 %v5234_v63, %v5042_v21  ;;  %v10657_v34 = vpop.f32.mrf.mxu1  ;;  %v6500_v43 = vadd.f32 %v10573_v19, %v10565_v18  ;;  %v6503_v18 = vadd.f32 %v10585_v58, %v10577_v14 }
 0x635   : > { %v5236_v44 = vpop.f32.mrf.mxu0  ;;  %5869 = vmatmul.mubr.bf16.gmra.mxu0 %v5305_v8 }
 0x636   : > { %v5237_v59 = vadd.f32 %v5236_v44, %v5044_v27  ;;  %v10659_v42 = vpop.f32.mrf.mxu1  ;;  %v10689_v27 = vld [vmem:[#allocation2] ss:$0 sm:$0xff] }
 0x637   : > { %v5238_v22 = vpop.f32.mrf.mxu0 }
 0x638   : > { %v5239_v24 = vadd.f32 %v5238_v22, %v5046_v0  ;;  %v5309_v17 = vpack.c.bf16 %v5237_v59, %v5233_v20  ;;  %v10661_v25 = vpop.f32.mrf.mxu1  ;;  %v6506_v20 = vadd.f32 %v10597_v40, %v10589_v49 }
 0x639   : > { %v5242_v57 = vpop.f32.mrf.mxu0 }
 0x63a   : > { %v5310_v39 = vpack.c.bf16 %v5239_v24, %v5235_v32  ;;  %v5243_v12 = vadd.f32 %v5242_v57, %v5050_v5  ;;  %v10663_v56 = vpop.f32.mrf.mxu1 }
 0x63b   : > { %v5244_v61 = vpop.f32.mrf.mxu0 }
 0x63c   : > { %5876 = vmatprep.mubr.bf16.mxu0 %v5310_v39  ;;  %v5245_v47 = vadd.f32 %v5244_v61, %v5052_v51  ;;  %v10665_v9 = vpop.f32.mrf.mxu1 }
 0x63d   : > { %v5246_v54 = vpop.f32.mrf.mxu0  ;;  %5877 = vmatmul.mubr.bf16.gmra.mxu0 %v5309_v17 }
 0x63e   : > { %v5247_v55 = vadd.f32 %v5246_v54, %v5054_v50  ;;  %v10667_v37 = vpop.f32.mrf.mxu1  ;;  %v6509_v50 = vadd.f32 %v10609_v26, %v10601_v33 }
 0x63f   : > { %v5248_v4 = vpop.f32.mrf.mxu0 }
 0x640   : > { %v5249_v28 = vadd.f32 %v5248_v4, %v5056_v52  ;;  %v5313_v13 = vpack.c.bf16 %v5247_v55, %v5243_v12  ;;  %v10669_v10 = vpop.f32.mrf.mxu1  ;;  %v6512_v55 = vadd.f32 %v10621_v45, %v10613_v38 }
 0x642   : > { %v5314_v35 = vpack.c.bf16 %v5249_v28, %v5245_v47  ;;  %v10671_v15 = vpop.f32.mrf.mxu1 }
 0x644   : > { %5884 = vmatprep.mubr.bf16.mxu0 %v5314_v35  ;;  %v10673_v3 = vpop.f32.mrf.mxu1  ;;  %v6515_v35 = vadd.f32 %v10633_v6, %v10625_v2 }
 0x645   : > { %5885 = vmatmul.mubr.bf16.gmra.mxu0 %v5313_v13 }
 0x646   : > { %v10675_v46 = vpop.f32.mrf.mxu1 }
 0x648   : > { %v10677_v48 = vpop.f32.mrf.mxu1 }
 0x64a   : > { %v10679_v23 = vpop.f32.mrf.mxu1 }
 0x64c   : > { %v10681_v60 = vpop.f32.mrf.mxu1 }
 0x64e   : > { %v10683_v1 = vpop.f32.mrf.mxu1 }
 0x650   : > { %v10687_v63 = vpop.f32.mrf.mxu1 }
 0x652   : > { %v10701_v59 = vpop.f32.mrf.mxu1 }
 0x654   : > { %v10708_v17 = vpop.f32.mrf.mxu1 }
 0x656   : > { %v10715_v52 = vpop.f32.mrf.mxu1 }
 0x658   : > { %v10722_v28 = vpop.f32.mrf.mxu1 }
 0x68d   : > { %v6610_v7 = vpop.f32.mrf.mxu0 }
 0x68f   : > { %v6611_v41 = vpop.f32.mrf.mxu0 }
 0x690   : > { %v6612_v8 = vadd.f32 %v6611_v41, %v6610_v7  ;;  %v10729_v41 = vpop.f32.mrf.mxu1 }
 0x691   : > { %v6613_v44 = vpop.f32.mrf.mxu0 }
 0x692   : > { %v5767_v21 = vadd.f32 %v6612_v8, %v6500_v43  ;;  %v6518_v8 = vadd.f32 %v10645_v36, %v10637_v29 }
 0x693   : > { %v6614_v0 = vpop.f32.mrf.mxu0 }
 0x694   : > { %v5900_v19 = vadd.f32 %v10689_v27, %v5767_v21  ;;  %v6615_v53 = vadd.f32 %v6614_v0, %v6613_v44  ;;  %v10736_v0 = vpop.f32.mrf.mxu1 }
 0x695   : > { %v6616_v22 = vpop.f32.mrf.mxu0 }
 0x696   : > { %5933 = vst.msk [vmem:[%s10696_s22] sm:$0xff] %vm5932_vm0, %v5900_v19  ;;  %v5770_v32 = vadd.f32 %v6615_v53, %v6503_v18  ;;  %v6521_v19 = vadd.f32 %v10649_v11, %v10647_v31 }
 0x697   : > { %v6617_v24 = vpop.f32.mrf.mxu0 }
 0x698   : > { %v5901_v57 = vadd.f32 %v10689_v27, %v5770_v32  ;;  %v6618_v39 = vadd.f32 %v6617_v24, %v6616_v22  ;;  %v10743_v32 = vpop.f32.mrf.mxu1 }
 0x699   : > { %v6619_v14 = vpop.f32.mrf.mxu0 }
 0x69a   : > { %5934 = vst.msk [vmem:[%s10696_s22 + $0x8] sm:$0xff] %vm5932_vm0, %v5901_v57  ;;  %v5775_v58 = vadd.f32 %v6618_v39, %v6506_v20  ;;  %v6524_v20 = vadd.f32 %v10653_v30, %v10651_v16 }
 0x69b   : > { %v6620_v61 = vpop.f32.mrf.mxu0 }
 0x69c   : > { %v5902_v54 = vadd.f32 %v10689_v27, %v5775_v58  ;;  %v6621_v51 = vadd.f32 %v6620_v61, %v6619_v14  ;;  %v10750_v14 = vpop.f32.mrf.mxu1  ;;  %v6527_v61 = vadd.f32 %v10657_v34, %v10655_v62 }
 0x69d   : > { %v6622_v49 = vpop.f32.mrf.mxu0 }
 0x69e   : > { %5935 = vst.msk [vmem:[%s10696_s22 + $0x10] sm:$0xff] %vm5932_vm0, %v5902_v54  ;;  %v5778_v40 = vadd.f32 %v6621_v51, %v6509_v50  ;;  %v10757_v51 = vpop.f32.mrf.mxu1 }
 0x69f   : > { %v6623_v5 = vpop.f32.mrf.mxu0 }
 0x6a0   : > { %v5903_v4 = vadd.f32 %v10689_v27, %v5778_v40  ;;  %v6624_v47 = vadd.f32 %v6623_v5, %v6622_v49  ;;  %v6530_v40 = vadd.f32 %v10661_v25, %v10659_v42 }
 0x6a1   : > { %v6625_v33 = vpop.f32.mrf.mxu0 }
 0x6a2   : > { %5936 = vst.msk [vmem:[%s10696_s22 + $0x18] sm:$0xff] %vm5932_vm0, %v5903_v4  ;;  %v5783_v26 = vadd.f32 %v6624_v47, %v6512_v55  ;;  %v10764_v4 = vpop.f32.mrf.mxu1 }
 0x6a3   : > { %v6626_v12 = vpop.f32.mrf.mxu0 }
 0x6a4   : > { %v5904_v13 = vadd.f32 %v10689_v27, %v5783_v26  ;;  %v6627_v7 = vadd.f32 %v6626_v12, %v6625_v33  ;;  %v6533_v33 = vadd.f32 %v10665_v9, %v10663_v56 }
 0x6a5   : > { %v6628_v38 = vpop.f32.mrf.mxu0 }
 0x6a6   : > { %5937 = vst.msk [vmem:[%s10696_s22 + $0x20] sm:$0xff] %vm5932_vm0, %v5904_v13  ;;  %v5786_v45 = vadd.f32 %v6627_v7, %v6515_v35  ;;  %v10771_v35 = vpop.f32.mrf.mxu1  ;;  %v6536_v7 = vadd.f32 %v10669_v10, %v10667_v37 }
 0x6a7   : > { %v6629_v43 = vpop.f32.mrf.mxu0 }
 0x6a8   : > { %v5905_v44 = vadd.f32 %v10689_v27, %v5786_v45  ;;  %v6630_v21 = vadd.f32 %v6629_v43, %v6628_v38  ;;  %v10778_v43 = vpop.f32.mrf.mxu1 }
 0x6a9   : > { %v6631_v2 = vpop.f32.mrf.mxu0 }
 0x6aa   : > { %5938 = vst.msk [vmem:[%s10696_s22 + $0x28] sm:$0xff] %vm5932_vm0, %v5905_v44  ;;  %v5791_v6 = vadd.f32 %v6630_v21, %v6518_v8  ;;  %v6539_v44 = vadd.f32 %v10673_v3, %v10671_v15 }
 0x6ab   : > { %v6632_v18 = vpop.f32.mrf.mxu0 }
 0x6ac   : > { %v5906_v53 = vadd.f32 %v10689_v27, %v5791_v6  ;;  %v6633_v22 = vadd.f32 %v6632_v18, %v6631_v2  ;;  %v10785_v6 = vpop.f32.mrf.mxu1 }
 0x6ad   : > { %v6634_v29 = vpop.f32.mrf.mxu0 }
 0x6ae   : > { %5939 = vst.msk [vmem:[%s10696_s22 + $0x30] sm:$0xff] %vm5932_vm0, %v5906_v53  ;;  %v5794_v36 = vadd.f32 %v6633_v22, %v6521_v19  ;;  %v6542_v19 = vadd.f32 %v10677_v48, %v10675_v46 }
 0x6af   : > { %v6635_v24 = vpop.f32.mrf.mxu0 }
 0x6b0   : > { %v5907_v57 = vadd.f32 %v10689_v27, %v5794_v36  ;;  %v6636_v39 = vadd.f32 %v6635_v24, %v6634_v29  ;;  %v10792_v29 = vpop.f32.mrf.mxu1  ;;  %v6545_v24 = vadd.f32 %v10681_v60, %v10679_v23 }
 0x6b1   : > { %v6637_v31 = vpop.f32.mrf.mxu0 }
 0x6b2   : > { %5940 = vst.msk [vmem:[%s10696_s22 + $0x38] sm:$0xff] %vm5932_vm0, %v5907_v57  ;;  %v5799_v11 = vadd.f32 %v6636_v39, %v6524_v20  ;;  %v10799_v39 = vpop.f32.mrf.mxu1 }
 0x6b3   : > { %v6638_v58 = vpop.f32.mrf.mxu0 }
 0x6b4   : > { %v5908_v50 = vadd.f32 %v10689_v27, %v5799_v11  ;;  %v6639_v54 = vadd.f32 %v6638_v58, %v6637_v31  ;;  %v6548_v11 = vadd.f32 %v10687_v63, %v10683_v1 }
 0x6b5   : > { %v6640_v16 = vpop.f32.mrf.mxu0 }
 0x6b6   : > { %5941 = vst.msk [vmem:[%s10696_s22 + $0x40] sm:$0xff] %vm5932_vm0, %v5908_v50  ;;  %v5802_v30 = vadd.f32 %v6639_v54, %v6527_v61  ;;  %v6571_v50 = vpop.f32.mrf.mxu1 }
 0x6b7   : > { %v6641_v49 = vpop.f32.mrf.mxu0 }
 0x6b8   : > { %v5909_v5 = vadd.f32 %v10689_v27, %v5802_v30  ;;  %v6642_v55 = vadd.f32 %v6641_v49, %v6640_v16  ;;  %v6551_v16 = vadd.f32 %v10708_v17, %v10701_v59 }
 0x6b9   : > { %v6643_v62 = vpop.f32.mrf.mxu0 }
 0x6ba   : > { %5942 = vst.msk [vmem:[%s10696_s22 + $0x48] sm:$0xff] %vm5932_vm0, %v5909_v5  ;;  %v5807_v34 = vadd.f32 %v6642_v55, %v6530_v40  ;;  %v6573_v40 = vpop.f32.mrf.mxu1  ;;  %v6554_v55 = vadd.f32 %v10722_v28, %v10715_v52 }
 0x6bb   : > { %v6644_v47 = vpop.f32.mrf.mxu0 }
 0x6bc   : > { %v5910_v26 = vadd.f32 %v10689_v27, %v5807_v34  ;;  %v6645_v12 = vadd.f32 %v6644_v47, %v6643_v62  ;;  %v6574_v47 = vpop.f32.mrf.mxu1 }
 0x6bd   : > { %v6646_v42 = vpop.f32.mrf.mxu0 }
 0x6be   : > { %5943 = vst.msk [vmem:[%s10696_s22 + $0x50] sm:$0xff] %vm5932_vm0, %v5910_v26  ;;  %v5810_v25 = vadd.f32 %v6645_v12, %v6533_v33  ;;  %v6557_v26 = vadd.f32 %v10736_v0, %v10729_v41 }
 0x6bf   : > { %v6647_v13 = vpop.f32.mrf.mxu0 }
 0x6c0   : > { %v5911_v38 = vadd.f32 %v10689_v27, %v5810_v25  ;;  %v6648_v45 = vadd.f32 %v6647_v13, %v6646_v42  ;;  %v6576_v25 = vpop.f32.mrf.mxu1 }
 0x6c1   : > { %v6649_v56 = vpop.f32.mrf.mxu0 }
 0x6c2   : > { %5944 = vst.msk [vmem:[%s10696_s22 + $0x58] sm:$0xff] %vm5932_vm0, %v5911_v38  ;;  %v5815_v9 = vadd.f32 %v6648_v45, %v6536_v7  ;;  %v6560_v7 = vadd.f32 %v10750_v14, %v10743_v32 }
 0x6c3   : > { %v6650_v8 = vpop.f32.mrf.mxu0 }
 0x6c4   : > { %v5912_v21 = vadd.f32 %v10689_v27, %v5815_v9  ;;  %v6651_v2 = vadd.f32 %v6650_v8, %v6649_v56  ;;  %v6577_v56 = vpop.f32.mrf.mxu1  ;;  %v6563_v8 = vadd.f32 %v10764_v4, %v10757_v51 }
 0x6c5   : > { %v6652_v37 = vpop.f32.mrf.mxu0 }
 0x6c6   : > { %5945 = vst.msk [vmem:[%s10696_s22 + $0x60] sm:$0xff] %vm5932_vm0, %v5912_v21  ;;  %v5818_v10 = vadd.f32 %v6651_v2, %v6539_v44  ;;  %v6579_v2 = vpop.f32.mrf.mxu1 }
 0x6c7   : > { %v6653_v18 = vpop.f32.mrf.mxu0 }
 0x6c8   : > { %v5913_v53 = vadd.f32 %v10689_v27, %v5818_v10  ;;  %v6654_v22 = vadd.f32 %v6653_v18, %v6652_v37  ;;  %v6566_v10 = vadd.f32 %v10778_v43, %v10771_v35 }
 0x6c9   : > { %v6655_v15 = vpop.f32.mrf.mxu0 }
 0x6ca   : > { %5946 = vst.msk [vmem:[%s10696_s22 + $0x68] sm:$0xff] %vm5932_vm0, %v5913_v53  ;;  %v5823_v3 = vadd.f32 %v6654_v22, %v6542_v19  ;;  %v6580_v53 = vpop.f32.mrf.mxu1 }
 0x6cb   : > { %v6656_v36 = vpop.f32.mrf.mxu0 }
 0x6cc   : > { %v5914_v20 = vadd.f32 %v10689_v27, %v5823_v3  ;;  %v6657_v57 = vadd.f32 %v6656_v36, %v6655_v15  ;;  %v6569_v15 = vadd.f32 %v10792_v29, %v10785_v6 }
 0x6cd   : > { %v6658_v46 = vpop.f32.mrf.mxu0 }
 0x6ce   : > { %5947 = vst.msk [vmem:[%s10696_s22 + $0x70] sm:$0xff] %vm5932_vm0, %v5914_v20  ;;  %v5826_v48 = vadd.f32 %v6657_v57, %v6545_v24  ;;  %v6582_v24 = vpop.f32.mrf.mxu1  ;;  %v6572_v57 = vadd.f32 %v6571_v50, %v10799_v39 }
 0x6cf   : > { %v6659_v31 = vpop.f32.mrf.mxu0 }
 0x6d0   : > { %v5915_v58 = vadd.f32 %v10689_v27, %v5826_v48  ;;  %v6660_v61 = vadd.f32 %v6659_v31, %v6658_v46  ;;  %v6583_v31 = vpop.f32.mrf.mxu1 }
 0x6d1   : > { %v6661_v54 = vpop.f32.mrf.mxu0 }
 0x6d2   : > { %5948 = vst.msk [vmem:[%s10696_s22 + $0x78] sm:$0xff] %vm5932_vm0, %v5915_v58  ;;  %v5831_v23 = vadd.f32 %v6660_v61, %v6548_v11  ;;  %v6575_v58 = vadd.f32 %v6574_v47, %v6573_v40 }
 0x6d3   : > { %v6662_v60 = vpop.f32.mrf.mxu0 }
 0x6d4   : > { %v5916_v30 = vadd.f32 %v10689_v27, %v5831_v23  ;;  %v6663_v49 = vadd.f32 %v6662_v60, %v6661_v54  ;;  %v6585_v23 = vpop.f32.mrf.mxu1 }
 0x6d5   : > { %v6664_v5 = vpop.f32.mrf.mxu0 }
 0x6d6   : > { %5949 = vst.msk [vmem:[%s10696_s22 + $0x80] sm:$0xff] %vm5932_vm0, %v5916_v30  ;;  %v5834_v1 = vadd.f32 %v6663_v49, %v6551_v16  ;;  %v6578_v16 = vadd.f32 %v6577_v56, %v6576_v25 }
 0x6d7   : > { %v6665_v63 = vpop.f32.mrf.mxu0 }
 0x6d8   : > { %v5917_v62 = vadd.f32 %v10689_v27, %v5834_v1  ;;  %v6666_v34 = vadd.f32 %v6665_v63, %v6664_v5  ;;  %v6586_v5 = vpop.f32.mrf.mxu1 }
 0x6d9   : > { %v6667_v33 = vpop.f32.mrf.mxu0 }
 0x6da   : > { %5950 = vst.msk [vmem:[%s10696_s22 + $0x88] sm:$0xff] %vm5932_vm0, %v5917_v62  ;;  %v5839_v59 = vadd.f32 %v6666_v34, %v6554_v55  ;;  %v6581_v55 = vadd.f32 %v6580_v53, %v6579_v2  ;;  %v6588_v47 = vpop.f32.mrf.mxu1 }
 0x6db   : > { %v6668_v17 = vpop.f32.mrf.mxu0 }
 0x6dc   : > { %v5918_v12 = vadd.f32 %v10689_v27, %v5839_v59  ;;  %v6669_v42 = vadd.f32 %v6668_v17, %v6667_v33  ;;  %v6589_v25 = vpop.f32.mrf.mxu1 }
 0x6dd   : > { %v6670_v13 = vpop.f32.mrf.mxu0 }
 0x6de   : > { %5951 = vst.msk [vmem:[%s10696_s22 + $0x90] sm:$0xff] %vm5932_vm0, %v5918_v12  ;;  %v5842_v52 = vadd.f32 %v6669_v42, %v6557_v26  ;;  %v6584_v26 = vadd.f32 %v6583_v31, %v6582_v24  ;;  %v6591_v56 = vpop.f32.mrf.mxu1 }
 0x6df   : > { %v6671_v28 = vpop.f32.mrf.mxu0 }
 0x6e0   : > { %v5919_v38 = vadd.f32 %v10689_v27, %v5842_v52  ;;  %v6672_v45 = vadd.f32 %v6671_v28, %v6670_v13  ;;  %v6592_v2 = vpop.f32.mrf.mxu1 }
 0x6e1   : > { %v6673_v9 = vpop.f32.mrf.mxu0 }
 0x6e2   : > { %5952 = vst.msk [vmem:[%s10696_s22 + $0x98] sm:$0xff] %vm5932_vm0, %v5919_v38  ;;  %v5847_v41 = vadd.f32 %v6672_v45, %v6560_v7  ;;  %v6587_v7 = vadd.f32 %v6586_v5, %v6585_v23 }
 0x6e3   : > { %v6674_v0 = vpop.f32.mrf.mxu0 }
 0x6e4   : > { %v5920_v44 = vadd.f32 %v10689_v27, %v5847_v41  ;;  %v6675_v21 = vadd.f32 %v6674_v0, %v6673_v9 }
 0x6e5   : > { %v6676_v37 = vpop.f32.mrf.mxu0 }
 0x6e6   : > { %5953 = vst.msk [vmem:[%s10696_s22 + $0xa0] sm:$0xff] %vm5932_vm0, %v5920_v44  ;;  %v5850_v32 = vadd.f32 %v6675_v21, %v6563_v8  ;;  %v6590_v8 = vadd.f32 %v6589_v25, %v6588_v47 }
 0x6e7   : > { %v6677_v14 = vpop.f32.mrf.mxu0 }
 0x6e8   : > { %v5921_v18 = vadd.f32 %v10689_v27, %v5850_v32  ;;  %v6678_v19 = vadd.f32 %v6677_v14, %v6676_v37 }
 0x6e9   : > { %v6679_v22 = vpop.f32.mrf.mxu0 }
 0x6ea   : > { %5954 = vst.msk [vmem:[%s10696_s22 + $0xa8] sm:$0xff] %vm5932_vm0, %v5921_v18  ;;  %v5855_v51 = vadd.f32 %v6678_v19, %v6566_v10  ;;  %v6593_v10 = vadd.f32 %v6592_v2, %v6591_v56 }
 0x6eb   : > { %v6680_v4 = vpop.f32.mrf.mxu0 }
 0x6ec   : > { %v5922_v3 = vadd.f32 %v10689_v27, %v5855_v51  ;;  %v6681_v36 = vadd.f32 %v6680_v4, %v6679_v22 }
 0x6ed   : > { %v6682_v20 = vpop.f32.mrf.mxu0 }
 0x6ee   : > { %5955 = vst.msk [vmem:[%s10696_s22 + $0xb0] sm:$0xff] %vm5932_vm0, %v5922_v3  ;;  %v5858_v35 = vadd.f32 %v6681_v36, %v6569_v15 }
 0x6ef   : > { %v6683_v43 = vpop.f32.mrf.mxu0 }
 0x6f0   : > { %v5923_v46 = vadd.f32 %v10689_v27, %v5858_v35  ;;  %v6684_v48 = vadd.f32 %v6683_v43, %v6682_v20 }
 0x6f1   : > { %v6685_v11 = vpop.f32.mrf.mxu0 }
 0x6f2   : > { %5956 = vst.msk [vmem:[%s10696_s22 + $0xb8] sm:$0xff] %vm5932_vm0, %v5923_v46  ;;  %v5863_v6 = vadd.f32 %v6684_v48, %v6572_v57 }
 0x6f3   : > { %v6686_v29 = vpop.f32.mrf.mxu0 }
 0x6f4   : > { %v5924_v61 = vadd.f32 %v10689_v27, %v5863_v6  ;;  %v6687_v54 = vadd.f32 %v6686_v29, %v6685_v11 }
 0x6f5   : > { %v6688_v60 = vpop.f32.mrf.mxu0 }
 0x6f6   : > { %5957 = vst.msk [vmem:[%s10696_s22 + $0xc0] sm:$0xff] %vm5932_vm0, %v5924_v61  ;;  %v5866_v39 = vadd.f32 %v6687_v54, %v6575_v58 }
 0x6f7   : > { %v6689_v50 = vpop.f32.mrf.mxu0 }
 0x6f8   : > { %v5925_v30 = vadd.f32 %v10689_v27, %v5866_v39  ;;  %v6690_v49 = vadd.f32 %v6689_v50, %v6688_v60 }
 0x6f9   : > { %v6691_v1 = vpop.f32.mrf.mxu0 }
 0x6fa   : > { %5958 = vst.msk [vmem:[%s10696_s22 + $0xc8] sm:$0xff] %vm5932_vm0, %v5925_v30  ;;  %v5871_v40 = vadd.f32 %v6690_v49, %v6578_v16 }
 0x6fb   : > { %v6692_v63 = vpop.f32.mrf.mxu0 }
 0x6fc   : > { %v5926_v62 = vadd.f32 %v10689_v27, %v5871_v40  ;;  %v6693_v34 = vadd.f32 %v6692_v63, %v6691_v1 }
 0x6fd   : > { %v6694_v33 = vpop.f32.mrf.mxu0 }
 0x6fe   : > { %5959 = vst.msk [vmem:[%s10696_s22 + $0xd0] sm:$0xff] %vm5932_vm0, %v5926_v62  ;;  %v5874_v59 = vadd.f32 %v6693_v34, %v6581_v55 }
 0x6ff   : > { %v6695_v17 = vpop.f32.mrf.mxu0 }
 0x700   : > { %v5927_v12 = vadd.f32 %v10689_v27, %v5874_v59  ;;  %v6696_v42 = vadd.f32 %v6695_v17, %v6694_v33 }
 0x701   : > { %v6697_v13 = vpop.f32.mrf.mxu0 }
 0x702   : > { %5960 = vst.msk [vmem:[%s10696_s22 + $0xd8] sm:$0xff] %vm5932_vm0, %v5927_v12  ;;  %v5879_v52 = vadd.f32 %v6696_v42, %v6584_v26 }
 0x703   : > { %v6698_v28 = vpop.f32.mrf.mxu0 }
 0x704   : > { %v5928_v38 = vadd.f32 %v10689_v27, %v5879_v52  ;;  %v6699_v45 = vadd.f32 %v6698_v28, %v6697_v13 }
 0x705   : > { %v6700_v9 = vpop.f32.mrf.mxu0 }
 0x706   : > { %5961 = vst.msk [vmem:[%s10696_s22 + $0xe0] sm:$0xff] %vm5932_vm0, %v5928_v38  ;;  %v5882_v41 = vadd.f32 %v6699_v45, %v6587_v7 }
 0x707   : > { %v6701_v0 = vpop.f32.mrf.mxu0 }
 0x708   : > { %v5929_v44 = vadd.f32 %v10689_v27, %v5882_v41  ;;  %v6702_v21 = vadd.f32 %v6701_v0, %v6700_v9 }
 0x709   : > { %v6703_v37 = vpop.f32.mrf.mxu0 }
 0x70a   : > { %5962 = vst.msk [vmem:[%s10696_s22 + $0xe8] sm:$0xff] %vm5932_vm0, %v5929_v44  ;;  %v5887_v32 = vadd.f32 %v6702_v21, %v6590_v8 }
 0x70b   : > { %v6704_v14 = vpop.f32.mrf.mxu0 }
 0x70c   : > { %v5930_v18 = vadd.f32 %v10689_v27, %v5887_v32  ;;  %v6705_v19 = vadd.f32 %v6704_v14, %v6703_v37 }
 0x70e   : > { %5963 = vst.msk [vmem:[%s10696_s22 + $0xf0] sm:$0xff] %vm5932_vm0, %v5930_v18  ;;  %v5890_v53 = vadd.f32 %v6705_v19, %v6593_v10 }
 0x710   : > { %v5931_v22 = vadd.f32 %v10689_v27, %v5890_v53 }
 0x712   : > { %5964 = vst.msk [vmem:[%s10696_s22 + $0xf8] sm:$0xff] %vm5932_vm0, %v5931_v22 }
 0x713 PF: > { %s26_s19 = sadd.s32 1, %s7534_s19  }
 0x714   : > { %p23_p2 = scmp.ge.s32.totalorder %s26_s19, 4  }
 0x716   :  { %25 = sbr.rel (!%p23_p2) target bundleno = 6 (0x6), region = 115 }
 0x71b   :  { %5987 = vsyncpa [#allocation4], 1 }
 0x71c   :  { %5989 = vsyncpa [#allocation4 + $0x1], 1 }
 0x71d   :  { %5990 = vsyncpa [#allocation6], 1 }
 0x71e   :  { %5991 = vsyncpa [#allocation9], 1 }

</bundles_post_ra>
